<compile_context>
chip_gen: v7x
topology: tpu7x:2x2x1
jax: 0.10.0
libtpu: 0.0.40
codegen_flags: <defaults>
</compile_context>

<pallas_src>
import math

import jax
import jax.numpy as jnp
from jax.experimental import pallas as pl
from jax.experimental.pallas import tpu as pltpu  # noqa: F401  (TPU backend)

# ----------------------------- tiny XLM-R config -----------------------------
VOCAB = 100
HIDDEN = 64
N_LAYERS = 2
N_HEADS = 4
HEAD_DIM = HIDDEN // N_HEADS
INTER = 128
MAX_POS = 32
NUM_CLASSES = 3
PAD_ID = 1            # XLM-R tokenizer pad_token_id
LN_EPS = 1e-5
BATCH = 2
SEQ = 16


# ----------------------------- fused Pallas kernel ----------------------------
def _layer_norm(x, g, b, eps=LN_EPS):
    mu = jnp.mean(x, axis=-1, keepdims=True)
    var = jnp.mean((x - mu) ** 2, axis=-1, keepdims=True)
    return (x - mu) * jax.lax.rsqrt(var + eps) * g + b


def _encoder_kernel(x_ref, bias_ref, wqkv_ref, wo_ref, w1_ref, w2_ref,
                    misc_ref, cls_ref, pooled_ref, logits_ref):
    """Whole XLM-R encoder + pooler + classifier, all batch elements packed.

    Packed layouts (trailing rows carry vectors):
      wqkv_ref : (L, H+1, 3H)   rows [0:H]=Wqkv, [H]=bqkv
      wo_ref   : (L, H+3, H)    rows [0:H]=Wo, [H]=bo, [H+1]=ln1_g, [H+2]=ln1_b
      w1_ref   : (L, H+1, I)    rows [0:H]=W1, [H]=b1
      w2_ref   : (L, I+3, H)    rows [0:I]=W2, [I]=b2, [I+1]=ln2_g, [I+2]=ln2_b
      misc_ref : (H+3, H)       rows [0:H]=pool_w, [H]=pool_b, [H+1]=emb_ln_g, [H+2]=emb_ln_b
      cls_ref  : (H+1, C)       rows [0:H]=cls_w, [H]=cls_b
    """
    f32 = jnp.float32
    H = HIDDEN
    scale = 1.0 / math.sqrt(HEAD_DIM)

    bias = bias_ref[...]                          # (B*S, B*S) block-diag mask bias

    # ---- embedding LayerNorm ----
    x = _layer_norm(x_ref[...].astype(f32),
                    misc_ref[H + 1:H + 2, :], misc_ref[H + 2:H + 3, :])   # (B*S, H)

    for l in range(N_LAYERS):
        # ---- fused QKV projection: single (B*S,H) @ (H,3H) MXU matmul ----
        qkv = jnp.dot(x, wqkv_ref[l, :H, :],
                      preferred_element_type=f32) + wqkv_ref[l, H:H + 1, :]  # (B*S, 3H)

        # slice thirds ONCE per layer (lane offsets 0 / 64 / 128)
        q_all = qkv[:, :H]
        k_all = qkv[:, H:2 * H]
        v_all = qkv[:, 2 * H:]

        wo_l = wo_ref[l, :H, :]                                             # (H, H)

        # ---- multi-head attention; output projection accumulated per head ----
        attn_out = jnp.zeros_like(x)
        for h in range(N_HEADS):
            lo = h * HEAD_DIM
            hi = lo + HEAD_DIM
            q = q_all[:, lo:hi]                                             # (B*S, HD)
            k = k_all[:, lo:hi]
            v = v_all[:, lo:hi]
            s = jax.lax.dot_general(q, k, (((1,), (1,)), ((), ())),
                                    preferred_element_type=f32) * scale + bias  # (B*S, B*S)
            s = s - jnp.max(s, axis=-1, keepdims=True)
            p = jnp.exp(s)
            p = p / jnp.sum(p, axis=-1, keepdims=True)
            ctx = jnp.dot(p, v, preferred_element_type=f32)                 # (B*S, HD)
            attn_out = attn_out + jnp.dot(ctx, wo_l[lo:hi, :],
                                          preferred_element_type=f32)
        attn_out = attn_out + wo_ref[l, H:H + 1, :]                         # + bo

        # ---- residual + LayerNorm ----
        x = _layer_norm(x + attn_out,
                        wo_ref[l, H + 1:H + 2, :], wo_ref[l, H + 2:H + 3, :])

        # ---- feed-forward (GELU, exact erf form) ----
        hmid = jnp.dot(x, w1_ref[l, :H, :],
                       preferred_element_type=f32) + w1_ref[l, H:H + 1, :]  # (B*S, I)
        hmid = 0.5 * hmid * (1.0 + jax.lax.erf(hmid * (1.0 / math.sqrt(2.0))))
        ffn = jnp.dot(hmid, w2_ref[l, :INTER, :],
                      preferred_element_type=f32) + w2_ref[l, INTER:INTER + 1, :]
        x = _layer_norm(x + ffn,
                        w2_ref[l, INTER + 1:INTER + 2, :],
                        w2_ref[l, INTER + 2:INTER + 3, :])

    # ---- pooler on CLS tokens (row b*S per batch element) + classifier ----
    cls_rows = jnp.concatenate([x[b * SEQ:b * SEQ + 1, :] for b in range(BATCH)],
                               axis=0)                                      # (B, H)
    pooled = jnp.tanh(jnp.dot(cls_rows, misc_ref[:H, :],
                              preferred_element_type=f32) + misc_ref[H:H + 1, :])
    logits = jnp.dot(pooled, cls_ref[:H, :],
                     preferred_element_type=f32) + cls_ref[H:H + 1, :]      # (B, C)

    pooled_ref[...] = pooled.astype(pooled_ref.dtype)
    logits_ref[...] = logits.astype(logits_ref.dtype)


# ------------------------- parameters (deterministic) -------------------------
def init_params(key):
    keys = iter(jax.random.split(key, 64))

    def nrm(shape):
        return jax.random.normal(next(keys), shape, jnp.float32) * 0.02

    params = {
        "word_emb": nrm((VOCAB, HIDDEN)),
        "pos_emb": nrm((MAX_POS, HIDDEN)),
        "type_emb": nrm((2, HIDDEN)),
        "emb_ln_g": jnp.ones((HIDDEN,), jnp.float32),
        "emb_ln_b": jnp.zeros((HIDDEN,), jnp.float32),
        "layers": [],
        "pool_w": nrm((HIDDEN, HIDDEN)),
        "pool_b": jnp.zeros((HIDDEN,), jnp.float32),
        "cls_w": nrm((HIDDEN, NUM_CLASSES)),
        "cls_b": jnp.zeros((NUM_CLASSES,), jnp.float32),
    }
    for _ in range(N_LAYERS):
        params["layers"].append({
            "wq": nrm((HIDDEN, HIDDEN)), "bq": jnp.zeros((HIDDEN,), jnp.float32),
            "wk": nrm((HIDDEN, HIDDEN)), "bk": jnp.zeros((HIDDEN,), jnp.float32),
            "wv": nrm((HIDDEN, HIDDEN)), "bv": jnp.zeros((HIDDEN,), jnp.float32),
            "wo": nrm((HIDDEN, HIDDEN)), "bo": jnp.zeros((HIDDEN,), jnp.float32),
            "ln1_g": jnp.ones((HIDDEN,), jnp.float32),
            "ln1_b": jnp.zeros((HIDDEN,), jnp.float32),
            "w1": nrm((HIDDEN, INTER)), "b1": jnp.zeros((INTER,), jnp.float32),
            "w2": nrm((INTER, HIDDEN)), "b2": jnp.zeros((HIDDEN,), jnp.float32),
            "ln2_g": jnp.ones((HIDDEN,), jnp.float32),
            "ln2_b": jnp.zeros((HIDDEN,), jnp.float32),
        })
    return params


def pack_params(params):
    """One-time (outside jit) weight fusion/packing for the kernel."""
    layers = params["layers"]

    def stack(fn):
        return jnp.stack([fn(l) for l in layers])

    wqkv_p = stack(lambda l: jnp.concatenate(
        [jnp.concatenate([l["wq"], l["wk"], l["wv"]], axis=1),
         jnp.concatenate([l["bq"], l["bk"], l["bv"]])[None, :]], axis=0))     # (L, H+1, 3H)
    wo_p = stack(lambda l: jnp.concatenate(
        [l["wo"], l["bo"][None, :], l["ln1_g"][None, :], l["ln1_b"][None, :]],
        axis=0))                                                              # (L, H+3, H)
    w1_p = stack(lambda l: jnp.concatenate(
        [l["w1"], l["b1"][None, :]], axis=0))                                 # (L, H+1, I)
    w2_p = stack(lambda l: jnp.concatenate(
        [l["w2"], l["b2"][None, :], l["ln2_g"][None, :], l["ln2_b"][None, :]],
        axis=0))                                                              # (L, I+3, H)
    misc_p = jnp.concatenate(
        [params["pool_w"], params["pool_b"][None, :],
         params["emb_ln_g"][None, :], params["emb_ln_b"][None, :]], axis=0)   # (H+3, H)
    cls_p = jnp.concatenate(
        [params["cls_w"], params["cls_b"][None, :]], axis=0)                  # (H+1, C)

    return {
        "word_emb": params["word_emb"],
        "pos_emb": params["pos_emb"],
        "type_emb": params["type_emb"],
        "wqkv": wqkv_p, "wo": wo_p, "w1": w1_p, "w2": w2_p,
        "misc": misc_p, "cls": cls_p,
    }


# ------------------------------- forward pass --------------------------------
def model_forward(packed, input_ids):
    """Reproduces Model.forward: returns (cls_output=pooled, logits)."""
    B, S = input_ids.shape

    # attention_mask = (input_ids != pad_token_id).float()
    attention_mask = (input_ids != PAD_ID).astype(jnp.float32)               # (B, S)

    # RoBERTa position ids: cumsum(mask) * mask + padding_idx
    mask_i = (input_ids != PAD_ID).astype(jnp.int32)
    position_ids = jnp.cumsum(mask_i, axis=1) * mask_i + PAD_ID
    token_type_ids = jnp.zeros_like(input_ids)

    # embeddings (gathers stay in plain JAX), packed as (B*S, H)
    emb = (packed["word_emb"][input_ids]
           + packed["pos_emb"][position_ids]
           + packed["type_emb"][token_type_ids]).reshape(B * S, HIDDEN)

    # block-diagonal additive bias: padded keys get -1e4 (HF parity),
    # cross-batch attention gets -1e9 (exp underflows to exactly 0).
    pad_bias = (1.0 - attention_mask) * -10000.0                             # (B, S)
    same = jnp.arange(B)[:, None] == jnp.arange(B)[None, :]                  # (B, B)
    bias4 = jnp.where(same[:, None, :, None],                                # (B,1,B,1)
                      pad_bias[None, None, :, :],                            # (1,1,B,S)
                      jnp.float32(-1e9))                                     # (B,1,B,S)
    bias = jnp.broadcast_to(bias4, (B, S, B, S)).reshape(B * S, B * S)

    pooled, logits = pl.pallas_call(
        _encoder_kernel,
        out_shape=(jax.ShapeDtypeStruct((B, HIDDEN), jnp.float32),
                   jax.ShapeDtypeStruct((B, NUM_CLASSES), jnp.float32)),
    )(emb, bias, packed["wqkv"], packed["wo"], packed["w1"], packed["w2"],
      packed["misc"], packed["cls"])

    return pooled, logits


# ------------------------------------ main ------------------------------------
if __name__ == "__main__":
    key = jax.random.PRNGKey(0)
    pkey, dkey = jax.random.split(key)
    params = init_params(pkey)
    packed = pack_params(params)          # one-time weight fusion (outside jit)

    # deterministic example input: ids in [2, VOCAB), with trailing padding
    input_ids = jax.random.randint(dkey, (BATCH, SEQ), 2, VOCAB, dtype=jnp.int32)
    input_ids = input_ids.at[1, SEQ - 4:].set(PAD_ID)   # pad tail of 2nd example

    cls_output, logits = jax.jit(model_forward)(packed, input_ids)
    jax.block_until_ready((cls_output, logits))

    assert cls_output.shape == (BATCH, HIDDEN)
    assert logits.shape == (BATCH, NUM_CLASSES)
    assert bool(jnp.all(jnp.isfinite(cls_output))) and bool(jnp.all(jnp.isfinite(logits)))
    print("KERNEL_OK")
</pallas_src>

<mosaic_0001>
module attributes {stable_mosaic.version = 11 : i64} {
  func.func @_encoder_kernel(%arg0: memref<32x64xf32, #tpu.memory_space<vmem>>, %arg1: memref<32x32xf32, #tpu.memory_space<vmem>>, %arg2: memref<2x65x192xf32, #tpu.memory_space<vmem>>, %arg3: memref<2x67x64xf32, #tpu.memory_space<vmem>>, %arg4: memref<2x65x128xf32, #tpu.memory_space<vmem>>, %arg5: memref<2x131x64xf32, #tpu.memory_space<vmem>>, %arg6: memref<67x64xf32, #tpu.memory_space<vmem>>, %arg7: memref<65x3xf32, #tpu.memory_space<vmem>>, %arg8: memref<2x64xf32, #tpu.memory_space<vmem>>, %arg9: memref<2x3xf32, #tpu.memory_space<vmem>>) attributes {dimension_semantics = [], scalar_prefetch = 0 : i64, scratch_operands = 0 : i64, tpu.core_type = #tpu.core_type<tc>} {
    %c0 = arith.constant 0 : index
    %c0_0 = arith.constant 0 : index
    %0 = vector.load %arg1[%c0, %c0_0] : memref<32x32xf32, #tpu.memory_space<vmem>>, vector<32x32xf32>
    %c0_1 = arith.constant 0 : index
    %c0_2 = arith.constant 0 : index
    %1 = vector.load %arg0[%c0_1, %c0_2] : memref<32x64xf32, #tpu.memory_space<vmem>>, vector<32x64xf32>
    %c65 = arith.constant 65 : index
    %c0_3 = arith.constant 0 : index
    %2 = vector.load %arg6[%c65, %c0_3] : memref<67x64xf32, #tpu.memory_space<vmem>>, vector<1x64xf32>
    %c66 = arith.constant 66 : index
    %c0_4 = arith.constant 0 : index
    %3 = vector.load %arg6[%c66, %c0_4] : memref<67x64xf32, #tpu.memory_space<vmem>>, vector<1x64xf32>
    %cst = arith.constant dense<0.000000e+00> : vector<32xf32>
    %4 = vector.multi_reduction <add>, %1, %cst [1] : vector<32x64xf32> to vector<32xf32>
    %5 = vector.shape_cast %4 : vector<32xf32> to vector<32x1xf32>
    %cst_5 = arith.constant 6.400000e+01 : f32
    %6 = vector.broadcast %cst_5 : f32 to vector<32x1xf32>
    %7 = arith.divf %5, %6 : vector<32x1xf32>
    %8 = vector.broadcast %7 : vector<32x1xf32> to vector<32x64xf32>
    %9 = arith.subf %1, %8 : vector<32x64xf32>
    %10 = arith.mulf %9, %9 : vector<32x64xf32>
    %cst_6 = arith.constant dense<0.000000e+00> : vector<32xf32>
    %11 = vector.multi_reduction <add>, %10, %cst_6 [1] : vector<32x64xf32> to vector<32xf32>
    %12 = vector.shape_cast %11 : vector<32xf32> to vector<32x1xf32>
    %cst_7 = arith.constant 6.400000e+01 : f32
    %13 = vector.broadcast %cst_7 : f32 to vector<32x1xf32>
    %14 = arith.divf %12, %13 : vector<32x1xf32>
    %15 = vector.broadcast %7 : vector<32x1xf32> to vector<32x64xf32>
    %16 = arith.subf %1, %15 : vector<32x64xf32>
    %cst_8 = arith.constant 9.99999974E-6 : f32
    %17 = vector.broadcast %cst_8 : f32 to vector<32x1xf32>
    %18 = arith.addf %14, %17 : vector<32x1xf32>
    %19 = math.rsqrt %18 : vector<32x1xf32>
    %20 = vector.broadcast %19 : vector<32x1xf32> to vector<32x64xf32>
    %21 = arith.mulf %16, %20 : vector<32x64xf32>
    %22 = vector.broadcast %2 : vector<1x64xf32> to vector<32x64xf32>
    %23 = arith.mulf %21, %22 : vector<32x64xf32>
    %24 = vector.broadcast %3 : vector<1x64xf32> to vector<32x64xf32>
    %25 = arith.addf %23, %24 : vector<32x64xf32>
    %c0_9 = arith.constant 0 : index
    %c0_10 = arith.constant 0 : index
    %c0_11 = arith.constant 0 : index
    %26 = vector.load %arg2[%c0_9, %c0_10, %c0_11] : memref<2x65x192xf32, #tpu.memory_space<vmem>>, vector<1x64x192xf32>
    %27 = vector.shape_cast %26 : vector<1x64x192xf32> to vector<64x192xf32>
    %cst_12 = arith.constant dense<0.000000e+00> : vector<32x192xf32>
    %28 = tpu.matmul %25, %27, %cst_12 {dimension_numbers = #tpu.dot_dimension_numbers<[1], [0], [0], [1], [0, 0, 1, 1], [], []>} : vector<32x64xf32>, vector<64x192xf32>, vector<32x192xf32> -> vector<32x192xf32>
    %c0_13 = arith.constant 0 : index
    %c64 = arith.constant 64 : index
    %c0_14 = arith.constant 0 : index
    %29 = vector.load %arg2[%c0_13, %c64, %c0_14] : memref<2x65x192xf32, #tpu.memory_space<vmem>>, vector<1x1x192xf32>
    %30 = vector.shape_cast %29 : vector<1x1x192xf32> to vector<1x192xf32>
    %31 = vector.broadcast %30 : vector<1x192xf32> to vector<32x192xf32>
    %32 = arith.addf %28, %31 : vector<32x192xf32>
    %33 = vector.extract_strided_slice %32 {offsets = [0, 0], sizes = [32, 64], strides = [1, 1]} : vector<32x192xf32> to vector<32x64xf32>
    %34 = vector.extract_strided_slice %32 {offsets = [0, 64], sizes = [32, 64], strides = [1, 1]} : vector<32x192xf32> to vector<32x64xf32>
    %35 = vector.extract_strided_slice %32 {offsets = [0, 128], sizes = [32, 64], strides = [1, 1]} : vector<32x192xf32> to vector<32x64xf32>
    %c0_15 = arith.constant 0 : index
    %c0_16 = arith.constant 0 : index
    %c0_17 = arith.constant 0 : index
    %36 = vector.load %arg3[%c0_15, %c0_16, %c0_17] : memref<2x67x64xf32, #tpu.memory_space<vmem>>, vector<1x64x64xf32>
    %37 = vector.shape_cast %36 : vector<1x64x64xf32> to vector<64x64xf32>
    %cst_18 = arith.constant 0.000000e+00 : f32
    %38 = vector.broadcast %cst_18 : f32 to vector<32x64xf32>
    %39 = vector.extract_strided_slice %33 {offsets = [0, 0], sizes = [32, 16], strides = [1, 1]} : vector<32x64xf32> to vector<32x16xf32>
    %40 = vector.extract_strided_slice %34 {offsets = [0, 0], sizes = [32, 16], strides = [1, 1]} : vector<32x64xf32> to vector<32x16xf32>
    %41 = vector.extract_strided_slice %35 {offsets = [0, 0], sizes = [32, 16], strides = [1, 1]} : vector<32x64xf32> to vector<32x16xf32>
    %cst_19 = arith.constant dense<0.000000e+00> : vector<32x32xf32>
    %42 = tpu.matmul %39, %40, %cst_19 {dimension_numbers = #tpu.dot_dimension_numbers<[1], [1], [0], [0], [0, 0, 1, 0], [], []>} : vector<32x16xf32>, vector<32x16xf32>, vector<32x32xf32> -> vector<32x32xf32>
    %cst_20 = arith.constant 2.500000e-01 : f32
    %43 = vector.broadcast %cst_20 : f32 to vector<32x32xf32>
    %44 = arith.mulf %42, %43 : vector<32x32xf32>
    %45 = arith.addf %44, %0 : vector<32x32xf32>
    %cst_21 = arith.constant dense<0xFF800000> : vector<32xf32>
    %46 = vector.multi_reduction <maximumf>, %45, %cst_21 [1] : vector<32x32xf32> to vector<32xf32>
    %47 = vector.shape_cast %46 : vector<32xf32> to vector<32x1xf32>
    %48 = vector.broadcast %47 : vector<32x1xf32> to vector<32x32xf32>
    %49 = arith.subf %45, %48 : vector<32x32xf32>
    %50 = math.exp %49 : vector<32x32xf32>
    %cst_22 = arith.constant dense<0.000000e+00> : vector<32xf32>
    %51 = vector.multi_reduction <add>, %50, %cst_22 [1] : vector<32x32xf32> to vector<32xf32>
    %52 = vector.shape_cast %51 : vector<32xf32> to vector<32x1xf32>
    %53 = vector.broadcast %52 : vector<32x1xf32> to vector<32x32xf32>
    %54 = arith.divf %50, %53 : vector<32x32xf32>
    %cst_23 = arith.constant dense<0.000000e+00> : vector<32x16xf32>
    %55 = tpu.matmul %54, %41, %cst_23 {dimension_numbers = #tpu.dot_dimension_numbers<[1], [0], [0], [1], [0, 0, 1, 1], [], []>} : vector<32x32xf32>, vector<32x16xf32>, vector<32x16xf32> -> vector<32x16xf32>
    %56 = vector.extract_strided_slice %37 {offsets = [0, 0], sizes = [16, 64], strides = [1, 1]} : vector<64x64xf32> to vector<16x64xf32>
    %cst_24 = arith.constant dense<0.000000e+00> : vector<32x64xf32>
    %57 = tpu.matmul %55, %56, %cst_24 {dimension_numbers = #tpu.dot_dimension_numbers<[1], [0], [0], [1], [0, 0, 1, 1], [], []>} : vector<32x16xf32>, vector<16x64xf32>, vector<32x64xf32> -> vector<32x64xf32>
    %58 = arith.addf %38, %57 : vector<32x64xf32>
    %59 = vector.extract_strided_slice %33 {offsets = [0, 16], sizes = [32, 16], strides = [1, 1]} : vector<32x64xf32> to vector<32x16xf32>
    %60 = vector.extract_strided_slice %34 {offsets = [0, 16], sizes = [32, 16], strides = [1, 1]} : vector<32x64xf32> to vector<32x16xf32>
    %61 = vector.extract_strided_slice %35 {offsets = [0, 16], sizes = [32, 16], strides = [1, 1]} : vector<32x64xf32> to vector<32x16xf32>
    %cst_25 = arith.constant dense<0.000000e+00> : vector<32x32xf32>
    %62 = tpu.matmul %59, %60, %cst_25 {dimension_numbers = #tpu.dot_dimension_numbers<[1], [1], [0], [0], [0, 0, 1, 0], [], []>} : vector<32x16xf32>, vector<32x16xf32>, vector<32x32xf32> -> vector<32x32xf32>
    %cst_26 = arith.constant 2.500000e-01 : f32
    %63 = vector.broadcast %cst_26 : f32 to vector<32x32xf32>
    %64 = arith.mulf %62, %63 : vector<32x32xf32>
    %65 = arith.addf %64, %0 : vector<32x32xf32>
    %cst_27 = arith.constant dense<0xFF800000> : vector<32xf32>
    %66 = vector.multi_reduction <maximumf>, %65, %cst_27 [1] : vector<32x32xf32> to vector<32xf32>
    %67 = vector.shape_cast %66 : vector<32xf32> to vector<32x1xf32>
    %68 = vector.broadcast %67 : vector<32x1xf32> to vector<32x32xf32>
    %69 = arith.subf %65, %68 : vector<32x32xf32>
    %70 = math.exp %69 : vector<32x32xf32>
    %cst_28 = arith.constant dense<0.000000e+00> : vector<32xf32>
    %71 = vector.multi_reduction <add>, %70, %cst_28 [1] : vector<32x32xf32> to vector<32xf32>
    %72 = vector.shape_cast %71 : vector<32xf32> to vector<32x1xf32>
    %73 = vector.broadcast %72 : vector<32x1xf32> to vector<32x32xf32>
    %74 = arith.divf %70, %73 : vector<32x32xf32>
    %cst_29 = arith.constant dense<0.000000e+00> : vector<32x16xf32>
    %75 = tpu.matmul %74, %61, %cst_29 {dimension_numbers = #tpu.dot_dimension_numbers<[1], [0], [0], [1], [0, 0, 1, 1], [], []>} : vector<32x32xf32>, vector<32x16xf32>, vector<32x16xf32> -> vector<32x16xf32>
    %76 = vector.extract_strided_slice %37 {offsets = [16, 0], sizes = [16, 64], strides = [1, 1]} : vector<64x64xf32> to vector<16x64xf32>
    %cst_30 = arith.constant dense<0.000000e+00> : vector<32x64xf32>
    %77 = tpu.matmul %75, %76, %cst_30 {dimension_numbers = #tpu.dot_dimension_numbers<[1], [0], [0], [1], [0, 0, 1, 1], [], []>} : vector<32x16xf32>, vector<16x64xf32>, vector<32x64xf32> -> vector<32x64xf32>
    %78 = arith.addf %58, %77 : vector<32x64xf32>
    %79 = vector.extract_strided_slice %33 {offsets = [0, 32], sizes = [32, 16], strides = [1, 1]} : vector<32x64xf32> to vector<32x16xf32>
    %80 = vector.extract_strided_slice %34 {offsets = [0, 32], sizes = [32, 16], strides = [1, 1]} : vector<32x64xf32> to vector<32x16xf32>
    %81 = vector.extract_strided_slice %35 {offsets = [0, 32], sizes = [32, 16], strides = [1, 1]} : vector<32x64xf32> to vector<32x16xf32>
    %cst_31 = arith.constant dense<0.000000e+00> : vector<32x32xf32>
    %82 = tpu.matmul %79, %80, %cst_31 {dimension_numbers = #tpu.dot_dimension_numbers<[1], [1], [0], [0], [0, 0, 1, 0], [], []>} : vector<32x16xf32>, vector<32x16xf32>, vector<32x32xf32> -> vector<32x32xf32>
    %cst_32 = arith.constant 2.500000e-01 : f32
    %83 = vector.broadcast %cst_32 : f32 to vector<32x32xf32>
    %84 = arith.mulf %82, %83 : vector<32x32xf32>
    %85 = arith.addf %84, %0 : vector<32x32xf32>
    %cst_33 = arith.constant dense<0xFF800000> : vector<32xf32>
    %86 = vector.multi_reduction <maximumf>, %85, %cst_33 [1] : vector<32x32xf32> to vector<32xf32>
    %87 = vector.shape_cast %86 : vector<32xf32> to vector<32x1xf32>
    %88 = vector.broadcast %87 : vector<32x1xf32> to vector<32x32xf32>
    %89 = arith.subf %85, %88 : vector<32x32xf32>
    %90 = math.exp %89 : vector<32x32xf32>
    %cst_34 = arith.constant dense<0.000000e+00> : vector<32xf32>
    %91 = vector.multi_reduction <add>, %90, %cst_34 [1] : vector<32x32xf32> to vector<32xf32>
    %92 = vector.shape_cast %91 : vector<32xf32> to vector<32x1xf32>
    %93 = vector.broadcast %92 : vector<32x1xf32> to vector<32x32xf32>
    %94 = arith.divf %90, %93 : vector<32x32xf32>
    %cst_35 = arith.constant dense<0.000000e+00> : vector<32x16xf32>
    %95 = tpu.matmul %94, %81, %cst_35 {dimension_numbers = #tpu.dot_dimension_numbers<[1], [0], [0], [1], [0, 0, 1, 1], [], []>} : vector<32x32xf32>, vector<32x16xf32>, vector<32x16xf32> -> vector<32x16xf32>
    %96 = vector.extract_strided_slice %37 {offsets = [32, 0], sizes = [16, 64], strides = [1, 1]} : vector<64x64xf32> to vector<16x64xf32>
    %cst_36 = arith.constant dense<0.000000e+00> : vector<32x64xf32>
    %97 = tpu.matmul %95, %96, %cst_36 {dimension_numbers = #tpu.dot_dimension_numbers<[1], [0], [0], [1], [0, 0, 1, 1], [], []>} : vector<32x16xf32>, vector<16x64xf32>, vector<32x64xf32> -> vector<32x64xf32>
    %98 = arith.addf %78, %97 : vector<32x64xf32>
    %99 = vector.extract_strided_slice %33 {offsets = [0, 48], sizes = [32, 16], strides = [1, 1]} : vector<32x64xf32> to vector<32x16xf32>
    %100 = vector.extract_strided_slice %34 {offsets = [0, 48], sizes = [32, 16], strides = [1, 1]} : vector<32x64xf32> to vector<32x16xf32>
    %101 = vector.extract_strided_slice %35 {offsets = [0, 48], sizes = [32, 16], strides = [1, 1]} : vector<32x64xf32> to vector<32x16xf32>
    %cst_37 = arith.constant dense<0.000000e+00> : vector<32x32xf32>
    %102 = tpu.matmul %99, %100, %cst_37 {dimension_numbers = #tpu.dot_dimension_numbers<[1], [1], [0], [0], [0, 0, 1, 0], [], []>} : vector<32x16xf32>, vector<32x16xf32>, vector<32x32xf32> -> vector<32x32xf32>
    %cst_38 = arith.constant 2.500000e-01 : f32
    %103 = vector.broadcast %cst_38 : f32 to vector<32x32xf32>
    %104 = arith.mulf %102, %103 : vector<32x32xf32>
    %105 = arith.addf %104, %0 : vector<32x32xf32>
    %cst_39 = arith.constant dense<0xFF800000> : vector<32xf32>
    %106 = vector.multi_reduction <maximumf>, %105, %cst_39 [1] : vector<32x32xf32> to vector<32xf32>
    %107 = vector.shape_cast %106 : vector<32xf32> to vector<32x1xf32>
    %108 = vector.broadcast %107 : vector<32x1xf32> to vector<32x32xf32>
    %109 = arith.subf %105, %108 : vector<32x32xf32>
    %110 = math.exp %109 : vector<32x32xf32>
    %cst_40 = arith.constant dense<0.000000e+00> : vector<32xf32>
    %111 = vector.multi_reduction <add>, %110, %cst_40 [1] : vector<32x32xf32> to vector<32xf32>
    %112 = vector.shape_cast %111 : vector<32xf32> to vector<32x1xf32>
    %113 = vector.broadcast %112 : vector<32x1xf32> to vector<32x32xf32>
    %114 = arith.divf %110, %113 : vector<32x32xf32>
    %cst_41 = arith.constant dense<0.000000e+00> : vector<32x16xf32>
    %115 = tpu.matmul %114, %101, %cst_41 {dimension_numbers = #tpu.dot_dimension_numbers<[1], [0], [0], [1], [0, 0, 1, 1], [], []>} : vector<32x32xf32>, vector<32x16xf32>, vector<32x16xf32> -> vector<32x16xf32>
    %116 = vector.extract_strided_slice %37 {offsets = [48, 0], sizes = [16, 64], strides = [1, 1]} : vector<64x64xf32> to vector<16x64xf32>
    %cst_42 = arith.constant dense<0.000000e+00> : vector<32x64xf32>
    %117 = tpu.matmul %115, %116, %cst_42 {dimension_numbers = #tpu.dot_dimension_numbers<[1], [0], [0], [1], [0, 0, 1, 1], [], []>} : vector<32x16xf32>, vector<16x64xf32>, vector<32x64xf32> -> vector<32x64xf32>
    %118 = arith.addf %98, %117 : vector<32x64xf32>
    %c0_43 = arith.constant 0 : index
    %c64_44 = arith.constant 64 : index
    %c0_45 = arith.constant 0 : index
    %119 = vector.load %arg3[%c0_43, %c64_44, %c0_45] : memref<2x67x64xf32, #tpu.memory_space<vmem>>, vector<1x1x64xf32>
    %120 = vector.shape_cast %119 : vector<1x1x64xf32> to vector<1x64xf32>
    %121 = vector.broadcast %120 : vector<1x64xf32> to vector<32x64xf32>
    %122 = arith.addf %118, %121 : vector<32x64xf32>
    %123 = arith.addf %25, %122 : vector<32x64xf32>
    %c0_46 = arith.constant 0 : index
    %c65_47 = arith.constant 65 : index
    %c0_48 = arith.constant 0 : index
    %124 = vector.load %arg3[%c0_46, %c65_47, %c0_48] : memref<2x67x64xf32, #tpu.memory_space<vmem>>, vector<1x1x64xf32>
    %125 = vector.shape_cast %124 : vector<1x1x64xf32> to vector<1x64xf32>
    %c0_49 = arith.constant 0 : index
    %c66_50 = arith.constant 66 : index
    %c0_51 = arith.constant 0 : index
    %126 = vector.load %arg3[%c0_49, %c66_50, %c0_51] : memref<2x67x64xf32, #tpu.memory_space<vmem>>, vector<1x1x64xf32>
    %127 = vector.shape_cast %126 : vector<1x1x64xf32> to vector<1x64xf32>
    %cst_52 = arith.constant dense<0.000000e+00> : vector<32xf32>
    %128 = vector.multi_reduction <add>, %123, %cst_52 [1] : vector<32x64xf32> to vector<32xf32>
    %129 = vector.shape_cast %128 : vector<32xf32> to vector<32x1xf32>
    %cst_53 = arith.constant 6.400000e+01 : f32
    %130 = vector.broadcast %cst_53 : f32 to vector<32x1xf32>
    %131 = arith.divf %129, %130 : vector<32x1xf32>
    %132 = vector.broadcast %131 : vector<32x1xf32> to vector<32x64xf32>
    %133 = arith.subf %123, %132 : vector<32x64xf32>
    %134 = arith.mulf %133, %133 : vector<32x64xf32>
    %cst_54 = arith.constant dense<0.000000e+00> : vector<32xf32>
    %135 = vector.multi_reduction <add>, %134, %cst_54 [1] : vector<32x64xf32> to vector<32xf32>
    %136 = vector.shape_cast %135 : vector<32xf32> to vector<32x1xf32>
    %cst_55 = arith.constant 6.400000e+01 : f32
    %137 = vector.broadcast %cst_55 : f32 to vector<32x1xf32>
    %138 = arith.divf %136, %137 : vector<32x1xf32>
    %139 = vector.broadcast %131 : vector<32x1xf32> to vector<32x64xf32>
    %140 = arith.subf %123, %139 : vector<32x64xf32>
    %cst_56 = arith.constant 9.99999974E-6 : f32
    %141 = vector.broadcast %cst_56 : f32 to vector<32x1xf32>
    %142 = arith.addf %138, %141 : vector<32x1xf32>
    %143 = math.rsqrt %142 : vector<32x1xf32>
    %144 = vector.broadcast %143 : vector<32x1xf32> to vector<32x64xf32>
    %145 = arith.mulf %140, %144 : vector<32x64xf32>
    %146 = vector.broadcast %125 : vector<1x64xf32> to vector<32x64xf32>
    %147 = arith.mulf %145, %146 : vector<32x64xf32>
    %148 = vector.broadcast %127 : vector<1x64xf32> to vector<32x64xf32>
    %149 = arith.addf %147, %148 : vector<32x64xf32>
    %c0_57 = arith.constant 0 : index
    %c0_58 = arith.constant 0 : index
    %c0_59 = arith.constant 0 : index
    %150 = vector.load %arg4[%c0_57, %c0_58, %c0_59] : memref<2x65x128xf32, #tpu.memory_space<vmem>>, vector<1x64x128xf32>
    %151 = vector.shape_cast %150 : vector<1x64x128xf32> to vector<64x128xf32>
    %cst_60 = arith.constant dense<0.000000e+00> : vector<32x128xf32>
    %152 = tpu.matmul %149, %151, %cst_60 {dimension_numbers = #tpu.dot_dimension_numbers<[1], [0], [0], [1], [0, 0, 1, 1], [], []>} : vector<32x64xf32>, vector<64x128xf32>, vector<32x128xf32> -> vector<32x128xf32>
    %c0_61 = arith.constant 0 : index
    %c64_62 = arith.constant 64 : index
    %c0_63 = arith.constant 0 : index
    %153 = vector.load %arg4[%c0_61, %c64_62, %c0_63] : memref<2x65x128xf32, #tpu.memory_space<vmem>>, vector<1x1x128xf32>
    %154 = vector.shape_cast %153 : vector<1x1x128xf32> to vector<1x128xf32>
    %155 = vector.broadcast %154 : vector<1x128xf32> to vector<32x128xf32>
    %156 = arith.addf %152, %155 : vector<32x128xf32>
    %cst_64 = arith.constant 5.000000e-01 : f32
    %157 = vector.broadcast %cst_64 : f32 to vector<32x128xf32>
    %158 = arith.mulf %157, %156 : vector<32x128xf32>
    %cst_65 = arith.constant 0.707106769 : f32
    %159 = vector.broadcast %cst_65 : f32 to vector<32x128xf32>
    %160 = arith.mulf %156, %159 : vector<32x128xf32>
    %161 = math.erf %160 : vector<32x128xf32>
    %cst_66 = arith.constant 1.000000e+00 : f32
    %162 = vector.broadcast %cst_66 : f32 to vector<32x128xf32>
    %163 = arith.addf %162, %161 : vector<32x128xf32>
    %164 = arith.mulf %158, %163 : vector<32x128xf32>
    %c0_67 = arith.constant 0 : index
    %c0_68 = arith.constant 0 : index
    %c0_69 = arith.constant 0 : index
    %165 = vector.load %arg5[%c0_67, %c0_68, %c0_69] : memref<2x131x64xf32, #tpu.memory_space<vmem>>, vector<1x128x64xf32>
    %166 = vector.shape_cast %165 : vector<1x128x64xf32> to vector<128x64xf32>
    %cst_70 = arith.constant dense<0.000000e+00> : vector<32x64xf32>
    %167 = tpu.matmul %164, %166, %cst_70 {dimension_numbers = #tpu.dot_dimension_numbers<[1], [0], [0], [1], [0, 0, 1, 1], [], []>} : vector<32x128xf32>, vector<128x64xf32>, vector<32x64xf32> -> vector<32x64xf32>
    %c0_71 = arith.constant 0 : index
    %c128 = arith.constant 128 : index
    %c0_72 = arith.constant 0 : index
    %168 = vector.load %arg5[%c0_71, %c128, %c0_72] : memref<2x131x64xf32, #tpu.memory_space<vmem>>, vector<1x1x64xf32>
    %169 = vector.shape_cast %168 : vector<1x1x64xf32> to vector<1x64xf32>
    %170 = vector.broadcast %169 : vector<1x64xf32> to vector<32x64xf32>
    %171 = arith.addf %167, %170 : vector<32x64xf32>
    %172 = arith.addf %149, %171 : vector<32x64xf32>
    %c0_73 = arith.constant 0 : index
    %c129 = arith.constant 129 : index
    %c0_74 = arith.constant 0 : index
    %173 = vector.load %arg5[%c0_73, %c129, %c0_74] : memref<2x131x64xf32, #tpu.memory_space<vmem>>, vector<1x1x64xf32>
    %174 = vector.shape_cast %173 : vector<1x1x64xf32> to vector<1x64xf32>
    %c0_75 = arith.constant 0 : index
    %c130 = arith.constant 130 : index
    %c0_76 = arith.constant 0 : index
    %175 = vector.load %arg5[%c0_75, %c130, %c0_76] : memref<2x131x64xf32, #tpu.memory_space<vmem>>, vector<1x1x64xf32>
    %176 = vector.shape_cast %175 : vector<1x1x64xf32> to vector<1x64xf32>
    %cst_77 = arith.constant dense<0.000000e+00> : vector<32xf32>
    %177 = vector.multi_reduction <add>, %172, %cst_77 [1] : vector<32x64xf32> to vector<32xf32>
    %178 = vector.shape_cast %177 : vector<32xf32> to vector<32x1xf32>
    %cst_78 = arith.constant 6.400000e+01 : f32
    %179 = vector.broadcast %cst_78 : f32 to vector<32x1xf32>
    %180 = arith.divf %178, %179 : vector<32x1xf32>
    %181 = vector.broadcast %180 : vector<32x1xf32> to vector<32x64xf32>
    %182 = arith.subf %172, %181 : vector<32x64xf32>
    %183 = arith.mulf %182, %182 : vector<32x64xf32>
    %cst_79 = arith.constant dense<0.000000e+00> : vector<32xf32>
    %184 = vector.multi_reduction <add>, %183, %cst_79 [1] : vector<32x64xf32> to vector<32xf32>
    %185 = vector.shape_cast %184 : vector<32xf32> to vector<32x1xf32>
    %cst_80 = arith.constant 6.400000e+01 : f32
    %186 = vector.broadcast %cst_80 : f32 to vector<32x1xf32>
    %187 = arith.divf %185, %186 : vector<32x1xf32>
    %188 = vector.broadcast %180 : vector<32x1xf32> to vector<32x64xf32>
    %189 = arith.subf %172, %188 : vector<32x64xf32>
    %cst_81 = arith.constant 9.99999974E-6 : f32
    %190 = vector.broadcast %cst_81 : f32 to vector<32x1xf32>
    %191 = arith.addf %187, %190 : vector<32x1xf32>
    %192 = math.rsqrt %191 : vector<32x1xf32>
    %193 = vector.broadcast %192 : vector<32x1xf32> to vector<32x64xf32>
    %194 = arith.mulf %189, %193 : vector<32x64xf32>
    %195 = vector.broadcast %174 : vector<1x64xf32> to vector<32x64xf32>
    %196 = arith.mulf %194, %195 : vector<32x64xf32>
    %197 = vector.broadcast %176 : vector<1x64xf32> to vector<32x64xf32>
    %198 = arith.addf %196, %197 : vector<32x64xf32>
    %c1 = arith.constant 1 : index
    %c0_82 = arith.constant 0 : index
    %c0_83 = arith.constant 0 : index
    %199 = vector.load %arg2[%c1, %c0_82, %c0_83] : memref<2x65x192xf32, #tpu.memory_space<vmem>>, vector<1x64x192xf32>
    %200 = vector.shape_cast %199 : vector<1x64x192xf32> to vector<64x192xf32>
    %cst_84 = arith.constant dense<0.000000e+00> : vector<32x192xf32>
    %201 = tpu.matmul %198, %200, %cst_84 {dimension_numbers = #tpu.dot_dimension_numbers<[1], [0], [0], [1], [0, 0, 1, 1], [], []>} : vector<32x64xf32>, vector<64x192xf32>, vector<32x192xf32> -> vector<32x192xf32>
    %c1_85 = arith.constant 1 : index
    %c64_86 = arith.constant 64 : index
    %c0_87 = arith.constant 0 : index
    %202 = vector.load %arg2[%c1_85, %c64_86, %c0_87] : memref<2x65x192xf32, #tpu.memory_space<vmem>>, vector<1x1x192xf32>
    %203 = vector.shape_cast %202 : vector<1x1x192xf32> to vector<1x192xf32>
    %204 = vector.broadcast %203 : vector<1x192xf32> to vector<32x192xf32>
    %205 = arith.addf %201, %204 : vector<32x192xf32>
    %206 = vector.extract_strided_slice %205 {offsets = [0, 0], sizes = [32, 64], strides = [1, 1]} : vector<32x192xf32> to vector<32x64xf32>
    %207 = vector.extract_strided_slice %205 {offsets = [0, 64], sizes = [32, 64], strides = [1, 1]} : vector<32x192xf32> to vector<32x64xf32>
    %208 = vector.extract_strided_slice %205 {offsets = [0, 128], sizes = [32, 64], strides = [1, 1]} : vector<32x192xf32> to vector<32x64xf32>
    %c1_88 = arith.constant 1 : index
    %c0_89 = arith.constant 0 : index
    %c0_90 = arith.constant 0 : index
    %209 = vector.load %arg3[%c1_88, %c0_89, %c0_90] : memref<2x67x64xf32, #tpu.memory_space<vmem>>, vector<1x64x64xf32>
    %210 = vector.shape_cast %209 : vector<1x64x64xf32> to vector<64x64xf32>
    %cst_91 = arith.constant 0.000000e+00 : f32
    %211 = vector.broadcast %cst_91 : f32 to vector<32x64xf32>
    %212 = vector.extract_strided_slice %206 {offsets = [0, 0], sizes = [32, 16], strides = [1, 1]} : vector<32x64xf32> to vector<32x16xf32>
    %213 = vector.extract_strided_slice %207 {offsets = [0, 0], sizes = [32, 16], strides = [1, 1]} : vector<32x64xf32> to vector<32x16xf32>
    %214 = vector.extract_strided_slice %208 {offsets = [0, 0], sizes = [32, 16], strides = [1, 1]} : vector<32x64xf32> to vector<32x16xf32>
    %cst_92 = arith.constant dense<0.000000e+00> : vector<32x32xf32>
    %215 = tpu.matmul %212, %213, %cst_92 {dimension_numbers = #tpu.dot_dimension_numbers<[1], [1], [0], [0], [0, 0, 1, 0], [], []>} : vector<32x16xf32>, vector<32x16xf32>, vector<32x32xf32> -> vector<32x32xf32>
    %cst_93 = arith.constant 2.500000e-01 : f32
    %216 = vector.broadcast %cst_93 : f32 to vector<32x32xf32>
    %217 = arith.mulf %215, %216 : vector<32x32xf32>
    %218 = arith.addf %217, %0 : vector<32x32xf32>
    %cst_94 = arith.constant dense<0xFF800000> : vector<32xf32>
    %219 = vector.multi_reduction <maximumf>, %218, %cst_94 [1] : vector<32x32xf32> to vector<32xf32>
    %220 = vector.shape_cast %219 : vector<32xf32> to vector<32x1xf32>
    %221 = vector.broadcast %220 : vector<32x1xf32> to vector<32x32xf32>
    %222 = arith.subf %218, %221 : vector<32x32xf32>
    %223 = math.exp %222 : vector<32x32xf32>
    %cst_95 = arith.constant dense<0.000000e+00> : vector<32xf32>
    %224 = vector.multi_reduction <add>, %223, %cst_95 [1] : vector<32x32xf32> to vector<32xf32>
    %225 = vector.shape_cast %224 : vector<32xf32> to vector<32x1xf32>
    %226 = vector.broadcast %225 : vector<32x1xf32> to vector<32x32xf32>
    %227 = arith.divf %223, %226 : vector<32x32xf32>
    %cst_96 = arith.constant dense<0.000000e+00> : vector<32x16xf32>
    %228 = tpu.matmul %227, %214, %cst_96 {dimension_numbers = #tpu.dot_dimension_numbers<[1], [0], [0], [1], [0, 0, 1, 1], [], []>} : vector<32x32xf32>, vector<32x16xf32>, vector<32x16xf32> -> vector<32x16xf32>
    %229 = vector.extract_strided_slice %210 {offsets = [0, 0], sizes = [16, 64], strides = [1, 1]} : vector<64x64xf32> to vector<16x64xf32>
    %cst_97 = arith.constant dense<0.000000e+00> : vector<32x64xf32>
    %230 = tpu.matmul %228, %229, %cst_97 {dimension_numbers = #tpu.dot_dimension_numbers<[1], [0], [0], [1], [0, 0, 1, 1], [], []>} : vector<32x16xf32>, vector<16x64xf32>, vector<32x64xf32> -> vector<32x64xf32>
    %231 = arith.addf %211, %230 : vector<32x64xf32>
    %232 = vector.extract_strided_slice %206 {offsets = [0, 16], sizes = [32, 16], strides = [1, 1]} : vector<32x64xf32> to vector<32x16xf32>
    %233 = vector.extract_strided_slice %207 {offsets = [0, 16], sizes = [32, 16], strides = [1, 1]} : vector<32x64xf32> to vector<32x16xf32>
    %234 = vector.extract_strided_slice %208 {offsets = [0, 16], sizes = [32, 16], strides = [1, 1]} : vector<32x64xf32> to vector<32x16xf32>
    %cst_98 = arith.constant dense<0.000000e+00> : vector<32x32xf32>
    %235 = tpu.matmul %232, %233, %cst_98 {dimension_numbers = #tpu.dot_dimension_numbers<[1], [1], [0], [0], [0, 0, 1, 0], [], []>} : vector<32x16xf32>, vector<32x16xf32>, vector<32x32xf32> -> vector<32x32xf32>
    %cst_99 = arith.constant 2.500000e-01 : f32
    %236 = vector.broadcast %cst_99 : f32 to vector<32x32xf32>
    %237 = arith.mulf %235, %236 : vector<32x32xf32>
    %238 = arith.addf %237, %0 : vector<32x32xf32>
    %cst_100 = arith.constant dense<0xFF800000> : vector<32xf32>
    %239 = vector.multi_reduction <maximumf>, %238, %cst_100 [1] : vector<32x32xf32> to vector<32xf32>
    %240 = vector.shape_cast %239 : vector<32xf32> to vector<32x1xf32>
    %241 = vector.broadcast %240 : vector<32x1xf32> to vector<32x32xf32>
    %242 = arith.subf %238, %241 : vector<32x32xf32>
    %243 = math.exp %242 : vector<32x32xf32>
    %cst_101 = arith.constant dense<0.000000e+00> : vector<32xf32>
    %244 = vector.multi_reduction <add>, %243, %cst_101 [1] : vector<32x32xf32> to vector<32xf32>
    %245 = vector.shape_cast %244 : vector<32xf32> to vector<32x1xf32>
    %246 = vector.broadcast %245 : vector<32x1xf32> to vector<32x32xf32>
    %247 = arith.divf %243, %246 : vector<32x32xf32>
    %cst_102 = arith.constant dense<0.000000e+00> : vector<32x16xf32>
    %248 = tpu.matmul %247, %234, %cst_102 {dimension_numbers = #tpu.dot_dimension_numbers<[1], [0], [0], [1], [0, 0, 1, 1], [], []>} : vector<32x32xf32>, vector<32x16xf32>, vector<32x16xf32> -> vector<32x16xf32>
    %249 = vector.extract_strided_slice %210 {offsets = [16, 0], sizes = [16, 64], strides = [1, 1]} : vector<64x64xf32> to vector<16x64xf32>
    %cst_103 = arith.constant dense<0.000000e+00> : vector<32x64xf32>
    %250 = tpu.matmul %248, %249, %cst_103 {dimension_numbers = #tpu.dot_dimension_numbers<[1], [0], [0], [1], [0, 0, 1, 1], [], []>} : vector<32x16xf32>, vector<16x64xf32>, vector<32x64xf32> -> vector<32x64xf32>
    %251 = arith.addf %231, %250 : vector<32x64xf32>
    %252 = vector.extract_strided_slice %206 {offsets = [0, 32], sizes = [32, 16], strides = [1, 1]} : vector<32x64xf32> to vector<32x16xf32>
    %253 = vector.extract_strided_slice %207 {offsets = [0, 32], sizes = [32, 16], strides = [1, 1]} : vector<32x64xf32> to vector<32x16xf32>
    %254 = vector.extract_strided_slice %208 {offsets = [0, 32], sizes = [32, 16], strides = [1, 1]} : vector<32x64xf32> to vector<32x16xf32>
    %cst_104 = arith.constant dense<0.000000e+00> : vector<32x32xf32>
    %255 = tpu.matmul %252, %253, %cst_104 {dimension_numbers = #tpu.dot_dimension_numbers<[1], [1], [0], [0], [0, 0, 1, 0], [], []>} : vector<32x16xf32>, vector<32x16xf32>, vector<32x32xf32> -> vector<32x32xf32>
    %cst_105 = arith.constant 2.500000e-01 : f32
    %256 = vector.broadcast %cst_105 : f32 to vector<32x32xf32>
    %257 = arith.mulf %255, %256 : vector<32x32xf32>
    %258 = arith.addf %257, %0 : vector<32x32xf32>
    %cst_106 = arith.constant dense<0xFF800000> : vector<32xf32>
    %259 = vector.multi_reduction <maximumf>, %258, %cst_106 [1] : vector<32x32xf32> to vector<32xf32>
    %260 = vector.shape_cast %259 : vector<32xf32> to vector<32x1xf32>
    %261 = vector.broadcast %260 : vector<32x1xf32> to vector<32x32xf32>
    %262 = arith.subf %258, %261 : vector<32x32xf32>
    %263 = math.exp %262 : vector<32x32xf32>
    %cst_107 = arith.constant dense<0.000000e+00> : vector<32xf32>
    %264 = vector.multi_reduction <add>, %263, %cst_107 [1] : vector<32x32xf32> to vector<32xf32>
    %265 = vector.shape_cast %264 : vector<32xf32> to vector<32x1xf32>
    %266 = vector.broadcast %265 : vector<32x1xf32> to vector<32x32xf32>
    %267 = arith.divf %263, %266 : vector<32x32xf32>
    %cst_108 = arith.constant dense<0.000000e+00> : vector<32x16xf32>
    %268 = tpu.matmul %267, %254, %cst_108 {dimension_numbers = #tpu.dot_dimension_numbers<[1], [0], [0], [1], [0, 0, 1, 1], [], []>} : vector<32x32xf32>, vector<32x16xf32>, vector<32x16xf32> -> vector<32x16xf32>
    %269 = vector.extract_strided_slice %210 {offsets = [32, 0], sizes = [16, 64], strides = [1, 1]} : vector<64x64xf32> to vector<16x64xf32>
    %cst_109 = arith.constant dense<0.000000e+00> : vector<32x64xf32>
    %270 = tpu.matmul %268, %269, %cst_109 {dimension_numbers = #tpu.dot_dimension_numbers<[1], [0], [0], [1], [0, 0, 1, 1], [], []>} : vector<32x16xf32>, vector<16x64xf32>, vector<32x64xf32> -> vector<32x64xf32>
    %271 = arith.addf %251, %270 : vector<32x64xf32>
    %272 = vector.extract_strided_slice %206 {offsets = [0, 48], sizes = [32, 16], strides = [1, 1]} : vector<32x64xf32> to vector<32x16xf32>
    %273 = vector.extract_strided_slice %207 {offsets = [0, 48], sizes = [32, 16], strides = [1, 1]} : vector<32x64xf32> to vector<32x16xf32>
    %274 = vector.extract_strided_slice %208 {offsets = [0, 48], sizes = [32, 16], strides = [1, 1]} : vector<32x64xf32> to vector<32x16xf32>
    %cst_110 = arith.constant dense<0.000000e+00> : vector<32x32xf32>
    %275 = tpu.matmul %272, %273, %cst_110 {dimension_numbers = #tpu.dot_dimension_numbers<[1], [1], [0], [0], [0, 0, 1, 0], [], []>} : vector<32x16xf32>, vector<32x16xf32>, vector<32x32xf32> -> vector<32x32xf32>
    %cst_111 = arith.constant 2.500000e-01 : f32
    %276 = vector.broadcast %cst_111 : f32 to vector<32x32xf32>
    %277 = arith.mulf %275, %276 : vector<32x32xf32>
    %278 = arith.addf %277, %0 : vector<32x32xf32>
    %cst_112 = arith.constant dense<0xFF800000> : vector<32xf32>
    %279 = vector.multi_reduction <maximumf>, %278, %cst_112 [1] : vector<32x32xf32> to vector<32xf32>
    %280 = vector.shape_cast %279 : vector<32xf32> to vector<32x1xf32>
    %281 = vector.broadcast %280 : vector<32x1xf32> to vector<32x32xf32>
    %282 = arith.subf %278, %281 : vector<32x32xf32>
    %283 = math.exp %282 : vector<32x32xf32>
    %cst_113 = arith.constant dense<0.000000e+00> : vector<32xf32>
    %284 = vector.multi_reduction <add>, %283, %cst_113 [1] : vector<32x32xf32> to vector<32xf32>
    %285 = vector.shape_cast %284 : vector<32xf32> to vector<32x1xf32>
    %286 = vector.broadcast %285 : vector<32x1xf32> to vector<32x32xf32>
    %287 = arith.divf %283, %286 : vector<32x32xf32>
    %cst_114 = arith.constant dense<0.000000e+00> : vector<32x16xf32>
    %288 = tpu.matmul %287, %274, %cst_114 {dimension_numbers = #tpu.dot_dimension_numbers<[1], [0], [0], [1], [0, 0, 1, 1], [], []>} : vector<32x32xf32>, vector<32x16xf32>, vector<32x16xf32> -> vector<32x16xf32>
    %289 = vector.extract_strided_slice %210 {offsets = [48, 0], sizes = [16, 64], strides = [1, 1]} : vector<64x64xf32> to vector<16x64xf32>
    %cst_115 = arith.constant dense<0.000000e+00> : vector<32x64xf32>
    %290 = tpu.matmul %288, %289, %cst_115 {dimension_numbers = #tpu.dot_dimension_numbers<[1], [0], [0], [1], [0, 0, 1, 1], [], []>} : vector<32x16xf32>, vector<16x64xf32>, vector<32x64xf32> -> vector<32x64xf32>
    %291 = arith.addf %271, %290 : vector<32x64xf32>
    %c1_116 = arith.constant 1 : index
    %c64_117 = arith.constant 64 : index
    %c0_118 = arith.constant 0 : index
    %292 = vector.load %arg3[%c1_116, %c64_117, %c0_118] : memref<2x67x64xf32, #tpu.memory_space<vmem>>, vector<1x1x64xf32>
    %293 = vector.shape_cast %292 : vector<1x1x64xf32> to vector<1x64xf32>
    %294 = vector.broadcast %293 : vector<1x64xf32> to vector<32x64xf32>
    %295 = arith.addf %291, %294 : vector<32x64xf32>
    %296 = arith.addf %198, %295 : vector<32x64xf32>
    %c1_119 = arith.constant 1 : index
    %c65_120 = arith.constant 65 : index
    %c0_121 = arith.constant 0 : index
    %297 = vector.load %arg3[%c1_119, %c65_120, %c0_121] : memref<2x67x64xf32, #tpu.memory_space<vmem>>, vector<1x1x64xf32>
    %298 = vector.shape_cast %297 : vector<1x1x64xf32> to vector<1x64xf32>
    %c1_122 = arith.constant 1 : index
    %c66_123 = arith.constant 66 : index
    %c0_124 = arith.constant 0 : index
    %299 = vector.load %arg3[%c1_122, %c66_123, %c0_124] : memref<2x67x64xf32, #tpu.memory_space<vmem>>, vector<1x1x64xf32>
    %300 = vector.shape_cast %299 : vector<1x1x64xf32> to vector<1x64xf32>
    %cst_125 = arith.constant dense<0.000000e+00> : vector<32xf32>
    %301 = vector.multi_reduction <add>, %296, %cst_125 [1] : vector<32x64xf32> to vector<32xf32>
    %302 = vector.shape_cast %301 : vector<32xf32> to vector<32x1xf32>
    %cst_126 = arith.constant 6.400000e+01 : f32
    %303 = vector.broadcast %cst_126 : f32 to vector<32x1xf32>
    %304 = arith.divf %302, %303 : vector<32x1xf32>
    %305 = vector.broadcast %304 : vector<32x1xf32> to vector<32x64xf32>
    %306 = arith.subf %296, %305 : vector<32x64xf32>
    %307 = arith.mulf %306, %306 : vector<32x64xf32>
    %cst_127 = arith.constant dense<0.000000e+00> : vector<32xf32>
    %308 = vector.multi_reduction <add>, %307, %cst_127 [1] : vector<32x64xf32> to vector<32xf32>
    %309 = vector.shape_cast %308 : vector<32xf32> to vector<32x1xf32>
    %cst_128 = arith.constant 6.400000e+01 : f32
    %310 = vector.broadcast %cst_128 : f32 to vector<32x1xf32>
    %311 = arith.divf %309, %310 : vector<32x1xf32>
    %312 = vector.broadcast %304 : vector<32x1xf32> to vector<32x64xf32>
    %313 = arith.subf %296, %312 : vector<32x64xf32>
    %cst_129 = arith.constant 9.99999974E-6 : f32
    %314 = vector.broadcast %cst_129 : f32 to vector<32x1xf32>
    %315 = arith.addf %311, %314 : vector<32x1xf32>
    %316 = math.rsqrt %315 : vector<32x1xf32>
    %317 = vector.broadcast %316 : vector<32x1xf32> to vector<32x64xf32>
    %318 = arith.mulf %313, %317 : vector<32x64xf32>
    %319 = vector.broadcast %298 : vector<1x64xf32> to vector<32x64xf32>
    %320 = arith.mulf %318, %319 : vector<32x64xf32>
    %321 = vector.broadcast %300 : vector<1x64xf32> to vector<32x64xf32>
    %322 = arith.addf %320, %321 : vector<32x64xf32>
    %c1_130 = arith.constant 1 : index
    %c0_131 = arith.constant 0 : index
    %c0_132 = arith.constant 0 : index
    %323 = vector.load %arg4[%c1_130, %c0_131, %c0_132] : memref<2x65x128xf32, #tpu.memory_space<vmem>>, vector<1x64x128xf32>
    %324 = vector.shape_cast %323 : vector<1x64x128xf32> to vector<64x128xf32>
    %cst_133 = arith.constant dense<0.000000e+00> : vector<32x128xf32>
    %325 = tpu.matmul %322, %324, %cst_133 {dimension_numbers = #tpu.dot_dimension_numbers<[1], [0], [0], [1], [0, 0, 1, 1], [], []>} : vector<32x64xf32>, vector<64x128xf32>, vector<32x128xf32> -> vector<32x128xf32>
    %c1_134 = arith.constant 1 : index
    %c64_135 = arith.constant 64 : index
    %c0_136 = arith.constant 0 : index
    %326 = vector.load %arg4[%c1_134, %c64_135, %c0_136] : memref<2x65x128xf32, #tpu.memory_space<vmem>>, vector<1x1x128xf32>
    %327 = vector.shape_cast %326 : vector<1x1x128xf32> to vector<1x128xf32>
    %328 = vector.broadcast %327 : vector<1x128xf32> to vector<32x128xf32>
    %329 = arith.addf %325, %328 : vector<32x128xf32>
    %cst_137 = arith.constant 5.000000e-01 : f32
    %330 = vector.broadcast %cst_137 : f32 to vector<32x128xf32>
    %331 = arith.mulf %330, %329 : vector<32x128xf32>
    %cst_138 = arith.constant 0.707106769 : f32
    %332 = vector.broadcast %cst_138 : f32 to vector<32x128xf32>
    %333 = arith.mulf %329, %332 : vector<32x128xf32>
    %334 = math.erf %333 : vector<32x128xf32>
    %cst_139 = arith.constant 1.000000e+00 : f32
    %335 = vector.broadcast %cst_139 : f32 to vector<32x128xf32>
    %336 = arith.addf %335, %334 : vector<32x128xf32>
    %337 = arith.mulf %331, %336 : vector<32x128xf32>
    %c1_140 = arith.constant 1 : index
    %c0_141 = arith.constant 0 : index
    %c0_142 = arith.constant 0 : index
    %338 = vector.load %arg5[%c1_140, %c0_141, %c0_142] : memref<2x131x64xf32, #tpu.memory_space<vmem>>, vector<1x128x64xf32>
    %339 = vector.shape_cast %338 : vector<1x128x64xf32> to vector<128x64xf32>
    %cst_143 = arith.constant dense<0.000000e+00> : vector<32x64xf32>
    %340 = tpu.matmul %337, %339, %cst_143 {dimension_numbers = #tpu.dot_dimension_numbers<[1], [0], [0], [1], [0, 0, 1, 1], [], []>} : vector<32x128xf32>, vector<128x64xf32>, vector<32x64xf32> -> vector<32x64xf32>
    %c1_144 = arith.constant 1 : index
    %c128_145 = arith.constant 128 : index
    %c0_146 = arith.constant 0 : index
    %341 = vector.load %arg5[%c1_144, %c128_145, %c0_146] : memref<2x131x64xf32, #tpu.memory_space<vmem>>, vector<1x1x64xf32>
    %342 = vector.shape_cast %341 : vector<1x1x64xf32> to vector<1x64xf32>
    %343 = vector.broadcast %342 : vector<1x64xf32> to vector<32x64xf32>
    %344 = arith.addf %340, %343 : vector<32x64xf32>
    %345 = arith.addf %322, %344 : vector<32x64xf32>
    %c1_147 = arith.constant 1 : index
    %c129_148 = arith.constant 129 : index
    %c0_149 = arith.constant 0 : index
    %346 = vector.load %arg5[%c1_147, %c129_148, %c0_149] : memref<2x131x64xf32, #tpu.memory_space<vmem>>, vector<1x1x64xf32>
    %347 = vector.shape_cast %346 : vector<1x1x64xf32> to vector<1x64xf32>
    %c1_150 = arith.constant 1 : index
    %c130_151 = arith.constant 130 : index
    %c0_152 = arith.constant 0 : index
    %348 = vector.load %arg5[%c1_150, %c130_151, %c0_152] : memref<2x131x64xf32, #tpu.memory_space<vmem>>, vector<1x1x64xf32>
    %349 = vector.shape_cast %348 : vector<1x1x64xf32> to vector<1x64xf32>
    %cst_153 = arith.constant dense<0.000000e+00> : vector<32xf32>
    %350 = vector.multi_reduction <add>, %345, %cst_153 [1] : vector<32x64xf32> to vector<32xf32>
    %351 = vector.shape_cast %350 : vector<32xf32> to vector<32x1xf32>
    %cst_154 = arith.constant 6.400000e+01 : f32
    %352 = vector.broadcast %cst_154 : f32 to vector<32x1xf32>
    %353 = arith.divf %351, %352 : vector<32x1xf32>
    %354 = vector.broadcast %353 : vector<32x1xf32> to vector<32x64xf32>
    %355 = arith.subf %345, %354 : vector<32x64xf32>
    %356 = arith.mulf %355, %355 : vector<32x64xf32>
    %cst_155 = arith.constant dense<0.000000e+00> : vector<32xf32>
    %357 = vector.multi_reduction <add>, %356, %cst_155 [1] : vector<32x64xf32> to vector<32xf32>
    %358 = vector.shape_cast %357 : vector<32xf32> to vector<32x1xf32>
    %cst_156 = arith.constant 6.400000e+01 : f32
    %359 = vector.broadcast %cst_156 : f32 to vector<32x1xf32>
    %360 = arith.divf %358, %359 : vector<32x1xf32>
    %361 = vector.broadcast %353 : vector<32x1xf32> to vector<32x64xf32>
    %362 = arith.subf %345, %361 : vector<32x64xf32>
    %cst_157 = arith.constant 9.99999974E-6 : f32
    %363 = vector.broadcast %cst_157 : f32 to vector<32x1xf32>
    %364 = arith.addf %360, %363 : vector<32x1xf32>
    %365 = math.rsqrt %364 : vector<32x1xf32>
    %366 = vector.broadcast %365 : vector<32x1xf32> to vector<32x64xf32>
    %367 = arith.mulf %362, %366 : vector<32x64xf32>
    %368 = vector.broadcast %347 : vector<1x64xf32> to vector<32x64xf32>
    %369 = arith.mulf %367, %368 : vector<32x64xf32>
    %370 = vector.broadcast %349 : vector<1x64xf32> to vector<32x64xf32>
    %371 = arith.addf %369, %370 : vector<32x64xf32>
    %372 = vector.extract_strided_slice %371 {offsets = [0, 0], sizes = [1, 64], strides = [1, 1]} : vector<32x64xf32> to vector<1x64xf32>
    %373 = vector.extract_strided_slice %371 {offsets = [16, 0], sizes = [1, 64], strides = [1, 1]} : vector<32x64xf32> to vector<1x64xf32>
    %374 = tpu.concatenate %372, %373 in 0 : vector<1x64xf32>, vector<1x64xf32> -> vector<2x64xf32>
    %c0_158 = arith.constant 0 : index
    %c0_159 = arith.constant 0 : index
    %375 = vector.load %arg6[%c0_158, %c0_159] : memref<67x64xf32, #tpu.memory_space<vmem>>, vector<64x64xf32>
    %cst_160 = arith.constant dense<0.000000e+00> : vector<2x64xf32>
    %376 = tpu.matmul %374, %375, %cst_160 {dimension_numbers = #tpu.dot_dimension_numbers<[1], [0], [0], [1], [0, 0, 1, 1], [], []>} : vector<2x64xf32>, vector<64x64xf32>, vector<2x64xf32> -> vector<2x64xf32>
    %c64_161 = arith.constant 64 : index
    %c0_162 = arith.constant 0 : index
    %377 = vector.load %arg6[%c64_161, %c0_162] : memref<67x64xf32, #tpu.memory_space<vmem>>, vector<1x64xf32>
    %378 = vector.broadcast %377 : vector<1x64xf32> to vector<2x64xf32>
    %379 = arith.addf %376, %378 : vector<2x64xf32>
    %380 = math.tanh %379 : vector<2x64xf32>
    %c0_163 = arith.constant 0 : index
    %c0_164 = arith.constant 0 : index
    %381 = vector.load %arg7[%c0_163, %c0_164] : memref<65x3xf32, #tpu.memory_space<vmem>>, vector<64x3xf32>
    %cst_165 = arith.constant dense<0.000000e+00> : vector<2x3xf32>
    %382 = tpu.matmul %380, %381, %cst_165 {dimension_numbers = #tpu.dot_dimension_numbers<[1], [0], [0], [1], [0, 0, 1, 1], [], []>} : vector<2x64xf32>, vector<64x3xf32>, vector<2x3xf32> -> vector<2x3xf32>
    %c64_166 = arith.constant 64 : index
    %c0_167 = arith.constant 0 : index
    %383 = vector.load %arg7[%c64_166, %c0_167] : memref<65x3xf32, #tpu.memory_space<vmem>>, vector<1x3xf32>
    %384 = vector.broadcast %383 : vector<1x3xf32> to vector<2x3xf32>
    %385 = arith.addf %382, %384 : vector<2x3xf32>
    %c0_168 = arith.constant 0 : index
    %c0_169 = arith.constant 0 : index
    %386 = vector.load %arg8[%c0_168, %c0_169] : memref<2x64xf32, #tpu.memory_space<vmem>>, vector<2x64xf32>
    tpu.vector_store %arg8[%c0_168, %c0_169], %380 {strides = array<i32>} : memref<2x64xf32, #tpu.memory_space<vmem>>, vector<2x64xf32>,
    %c0_170 = arith.constant 0 : index
    %c0_171 = arith.constant 0 : index
    %387 = vector.load %arg9[%c0_170, %c0_171] : memref<2x3xf32, #tpu.memory_space<vmem>>, vector<2x3xf32>
    tpu.vector_store %arg9[%c0_170, %c0_171], %385 {strides = array<i32>} : memref<2x3xf32, #tpu.memory_space<vmem>>, vector<2x3xf32>,
    return
  }
}

</mosaic_0001>

<bundles_post_ra>
// kernel: model_forward.1
= control target key start
LH: loop header
LB: loop body
LE: loop exit
PB: predicated region body
PF: predicated region fallthrough
CT: control target
= control target key end

     0   :  { %15 = vsyncpa [#allocation3], 0  ;;  %vm43_vm0 = vcmask 523264   ;;  %s7319_s0 = inlined_call_operand.vmem [shape: f32[32,64], index: 0, kind: input, shape index: {}]   ;;  %s7320_s1 = inlined_call_operand.vmem [shape: f32[32,32], index: 1, kind: input, shape index: {}]   ;;  %s7321_s2 = inlined_call_operand.vmem [shape: f32[2,65,192], index: 2, kind: input, shape index: {}]   ;;  %s7322_s3 = inlined_call_operand.vmem [shape: f32[2,67,64], index: 3, kind: input, shape index: {}]   ;;  %s7323_s4 = inlined_call_operand.vmem [shape: f32[2,65,128], index: 4, kind: input, shape index: {}]   ;;  %s7324_s5 = inlined_call_operand.vmem [shape: f32[2,131,64], index: 5, kind: input, shape index: {}]   ;;  %s7325_s6 = inlined_call_operand.vmem [shape: f32[67,64], index: 6, kind: input, shape index: {}]   ;;  %s7326_s7 = inlined_call_operand.vmem [shape: f32[65,3], index: 7, kind: input, shape index: {}]   ;;  %s7327_s8 = inlined_call_operand.hbm [shape: f32[2,64], index: 8, kind: output, shape index: {0}]   ;;  %s7328_s9 = inlined_call_operand.hbm [shape: f32[2,3], index: 9, kind: output, shape index: {1}]  }
   0x1   :  { %v37_v0 = vld [vmem:[%s7319_s0] sm:$0xff]  ;;  %v39_v1 = vld [vmem:[%s7319_s0 + $0x10] sm:$0xff]  ;;  %v38_v2 = vld [vmem:[%s7319_s0 + $0x8] sm:$0xff] }
   0x2   :  { %v44_v3 = vsel %vm43_vm0, %v37_v0, 0.0  ;;  %v50_v4 = vsel %vm43_vm0, %v39_v1, 0.0  ;;  %v40_v5 = vld [vmem:[%s7319_s0 + $0x18] sm:$0xff] }
   0x3   :  { %16 = vsyncpa [#allocation5], 0  ;;  %45 = vadd.xlane.f32.xlu0 %v44_v3  ;;  %51 = vadd.xlane.f32.xlu1 %v50_v4  ;;  %v47_v6 = vsel %vm43_vm0, %v38_v2, 0.0  ;;  %v53_v7 = vsel %vm43_vm0, %v40_v5, 0.0  ;;  %v114_v28 = vld [vmem:[%s7321_s2 + $0x8] sm:$0xff]  ;;  %v116_v29 = vld [vmem:[%s7321_s2 + $0x18] sm:$0xff] }
   0x4   :  { %v5291_v30 = vpack.c.bf16 %v116_v29, %v114_v28  ;;  %v113_v31 = vld [vmem:[%s7321_s2] sm:$0xff]  ;;  %v115_v32 = vld [vmem:[%s7321_s2 + $0x10] sm:$0xff]  ;;  %v118_v34 = vld [vmem:[%s7321_s2 + $0x28] sm:$0xff]  ;;  %v6045_v50 = vmov 0.0   ;;  %vm263_vm1 = vcmask 130048   ;;  %s6046_s11 = smov 64  }
   0x5   :  { %v5293_v33 = vpack.c.bf16 %v115_v32, %v113_v31  ;;  %v120_v35 = vld [vmem:[%s7321_s2 + $0x38] sm:$0xff]  ;;  %v117_v37 = vld [vmem:[%s7321_s2 + $0x20] sm:$0xff]  ;;  %v119_v38 = vld [vmem:[%s7321_s2 + $0x30] sm:$0xff]  ;;  %218 = vmatprep.mubr.f32.mxu0 %v6045_v50  ;;  %s6047_s12 = smov 112   ;;  %s6048_s13 = smov 48   ;;  %vm373_vm3 = vcmask 261120  }
   0x6   :  { %5292 = vmatprep.subr.bf16.mxu0 %v5291_v30  ;;  %v5295_v36 = vpack.c.bf16 %v120_v35, %v118_v34  ;;  %v5297_v39 = vpack.c.bf16 %v119_v38, %v117_v37  ;;  %v122_v40 = vld [vmem:[%s7321_s2 + $0x48] sm:$0xff]  ;;  %v124_v41 = vld [vmem:[%s7321_s2 + $0x58] sm:$0xff]  ;;  %v121_v43 = vld [vmem:[%s7321_s2 + $0x40] sm:$0xff]  ;;  %s6049_s21 = smov 32   ;;  %s6050_s22 = smov 96   ;;  %vm6054_vm4 = vmmov 0  }
   0x7   :  { %48 = vadd.xlane.f32.xlu0 %v47_v6  ;;  %54 = vadd.xlane.f32.xlu1 %v53_v7  ;;  %v5299_v42 = vpack.c.bf16 %v124_v41, %v122_v40  ;;  %v123_v44 = vld [vmem:[%s7321_s2 + $0x50] sm:$0xff]  ;;  %v126_v45 = vld [vmem:[%s7321_s2 + $0x68] sm:$0xff]  ;;  %v128_v47 = vld [vmem:[%s7321_s2 + $0x78] sm:$0xff]  ;;  %s6051_s23 = smov 16   ;;  %s6052_s24 = smov 80   ;;  %vm4142_vm5 = vcmask 1040384  }
   0x8   :  { %5294 = vmatpush1.bf16.msra.mxu0 %v5293_v33  ;;  %v5301_v46 = vpack.c.bf16 %v123_v44, %v121_v43  ;;  %v125_v48 = vld [vmem:[%s7321_s2 + $0x60] sm:$0xff]  ;;  %v127_v49 = vld [vmem:[%s7321_s2 + $0x70] sm:$0xff]  ;;  %v5303_v51 = vpack.c.bf16 %v128_v47, %v126_v45  ;;  %vm6272_vm2 = vmpackc.low %vm263_vm1, %vm263_vm1  ;;  %vm4317_vm6 = vcmask 517120   ;;  %s6055_s27 = smov [#allocation2]  }
   0x9   :  { %5296 = vmatprep.subr.bf16.mxu0 %v5295_v36  ;;  %v5305_v52 = vpack.c.bf16 %v127_v49, %v125_v48  ;;  %v4351_v4 = vld [vmem:[%s7325_s6 + $0x42] ss:$0 sm:$0xff]  ;;  %s4327_s28 = sshll.u32 %s6055_s27, 4  ;;  %s4328_s28 = int_to_ptr.vmem [resolvable:$true] %s4327_s28 }
   0xa   :  { %p6002_p1 = scmp.lt.s32.totalorder %s4328_s28, %s4328_s28 }
   0xc   :  { %5298 = vmatpush1.bf16.msra.mxu0 %v5297_v39 }
   0xd   :  { %5300 = vmatprep.subr.bf16.mxu0 %v5299_v42 }
  0x10   :  { %5302 = vmatpush1.bf16.msra.mxu0 %v5301_v46 }
  0x11   :  { %5304 = vmatprep.subr.bf16.mxu0 %v5303_v51 }
  0x14   :  { %5306 = vmatpush1.bf16.msra.mxu0 %v5305_v52 }
  0x90   :  { %v46_v8 = vpop.xlane.xlu0 %45  ;;  %v52_v9 = vpop.xlane.xlu1 %51 }
  0x91   :  { %v57_v10 = vmul.f32 0.015625, %v46_v8  ;;  %v59_v11 = vmul.f32 0.015625, %v52_v9 }
  0x93   :  { %v6123_v12 = vsub.f32 %v37_v0, %v57_v10  ;;  %v6125_v13 = vsub.f32 %v39_v1, %v59_v11 }
  0x94   :  { %v49_v14 = vpop.xlane.xlu0 %48  ;;  %v55_v15 = vpop.xlane.xlu1 %54 }
  0x95   :  { %v58_v16 = vmul.f32 0.015625, %v49_v14  ;;  %v60_v17 = vmul.f32 0.015625, %v55_v15  ;;  %v65_v18 = vmul.f32 %v6123_v12, %v6123_v12  ;;  %v67_v19 = vmul.f32 %v6125_v13, %v6125_v13 }
  0x97   :  { %v6131_v20 = vsub.f32 %v38_v2, %v58_v16  ;;  %v6133_v21 = vsub.f32 %v40_v5, %v60_v17  ;;  %v69_v22 = vsel %vm43_vm0, %v65_v18, 0.0  ;;  %v75_v23 = vsel %vm43_vm0, %v67_v19, 0.0  ;;  %v4350_v2 = vld [vmem:[%s7325_s6 + $0x41] ss:$0 sm:$0xff] }
  0x98   :  { %70 = vadd.xlane.f32.xlu0 %v69_v22  ;;  %v132_v19 = vlaneseq  ;;  %v4352_v22 = vld [vmem:[%s7321_s2 + $0x80] ss:$8 sm:$0x3] }
  0x99   :  { %v66_v24 = vmul.f32 %v6131_v20, %v6131_v20  ;;  %v68_v25 = vmul.f32 %v6133_v21, %v6133_v21 }
  0x9b   :  { %v72_v26 = vsel %vm43_vm0, %v66_v24, 0.0  ;;  %v78_v27 = vsel %vm43_vm0, %v68_v25, 0.0 }
  0x9c   :  { %76 = vadd.xlane.f32.xlu0 %v75_v23  ;;  %73 = vadd.xlane.f32.xlu1 %v72_v26 }
  0xa0   :  { %79 = vadd.xlane.f32.xlu1 %v78_v27 }
 0x125   :  { %v71_v53 = vpop.xlane.xlu0 %70 }
 0x126   :  { %v81_v54 = vmul.f32 0.015625, %v71_v53 }
 0x128   :  { %v85_v55 = vadd.f32 1e-05, %v81_v54 }
 0x129   :  { %v74_v56 = vpop.xlane.xlu1 %73  ;;  %v77_v57 = vpop.xlane.xlu0 %76 }
 0x12a   :  { %5811 = vrsqrt.f32 %v85_v55  ;;  %v82_v58 = vmul.f32 0.015625, %v74_v56  ;;  %v83_v59 = vmul.f32 0.015625, %v77_v57 }
 0x12c   :  { %v86_v60 = vadd.f32 1e-05, %v82_v58  ;;  %v87_v61 = vadd.f32 1e-05, %v83_v59 }
 0x12d   :  { %v80_v62 = vpop.xlane.xlu1 %79 }
 0x12e   :  { %5813 = vrsqrt.f32 %v86_v60  ;;  %v84_v63 = vmul.f32 0.015625, %v80_v62 }
 0x12f   :  { %5815 = vrsqrt.f32 %v87_v61 }
 0x130   :  { %v88_v0 = vadd.f32 1e-05, %v84_v63 }
 0x132   :  { %5817 = vrsqrt.f32 %v88_v0 }
 0x134   :  { %v5812_v1 = vpop.eup %5811 }
 0x135   :  { %v93_v3 = vmul.f32 %v5812_v1, %v6123_v12 }
 0x137   :  { %v101_v5 = vmul.f32 %v4350_v2, %v93_v3 }
 0x138   :  { %v5814_v6 = vpop.eup %5813 }
 0x139   :  { %v5816_v7 = vpop.eup %5815  ;;  %v6199_v8 = vadd.f32 %v4351_v4, %v101_v5  ;;  %v94_v9 = vmul.f32 %v5814_v6, %v6131_v20  ;;  %v6221_v20 = vshrl.u32 %v132_v19, 7  ;;  %v6317_v19 = vld [vmem:[%s7320_s1 + $0x18] sm:$0xff] }
 0x13a   :  { %v95_v10 = vmul.f32 %v5816_v7, %v6125_v13  ;;  %v6305_v7 = vld [vmem:[%s7320_s1 + $0x8] sm:$0xff] }
 0x13b   :  { %4353 = vmatmul.mubr.msk.f32.vlgmr.msra.gmra.mrb[0].mxu0 %vm43_vm0, %v6199_v8  ;;  %v102_v11 = vmul.f32 %v4350_v2, %v94_v9  ;;  %v138_v24 = vsub.s32 1, %v6221_v20 }
 0x13c   :  { %v5818_v14 = vpop.eup %5817  ;;  %224 = vmatprep.mubr.f32.mxu0 %v6045_v50  ;;  %v103_v15 = vmul.f32 %v4350_v2, %v95_v10 }
 0x13d   :  { %v6206_v12 = vadd.f32 %v4351_v4, %v102_v11  ;;  %v96_v16 = vmul.f32 %v5818_v14, %v6133_v21  ;;  %v134_v21 = vsub.s32 0, %v6221_v20  ;;  %v139_v28 = vrot.slane %v4352_v22, %v138_v24  ;;  %v6310_v11 = vld [vmem:[%s7320_s1] sm:$0xff] }
 0x13e   :  { %v6212_v17 = vadd.f32 %v4351_v4, %v103_v15 }
 0x13f   :  { %4354 = vmatmul.mubr.msk.f32.gmra.mrb[2].mxu0 %vm43_vm0, %v6206_v12  ;;  %v104_v13 = vmul.f32 %v4350_v2, %v96_v16  ;;  %v135_v23 = vrot.slane %v4352_v22, %v134_v21 }
 0x140   :  { %230 = vmatprep.mubr.f32.mxu0 %v6045_v50 }
 0x141   :  { %v6217_v18 = vadd.f32 %v4351_v4, %v104_v13 }
 0x143   :  { %4355 = vmatmul.mubr.msk.f32.gmra.mrb[4].mxu0 %vm43_vm0, %v6212_v17 }
 0x144   :  { %236 = vmatprep.mubr.f32.mxu0 %v6045_v50 }
 0x147   :  { %4356 = vmatmul.mubr.msk.f32.gmra.mrb[6].mxu0 %vm43_vm0, %v6217_v18 }
 0x20e   :  { %v220_v25 = vpop.f32.mrb[0].mxu0 }
 0x20f   :  { %v6230_v26 = vadd.f32 %v220_v25, %v135_v23  ;;  %v222_v27 = vpop.f32.mrb[1].mxu0 }
 0x210   :  { %v223_v32 = vadd.f32 %v222_v27, %v139_v28 }
 0x211   :  { %4837 = vmatprep.mubr.msk.f32.mxu1 %vm263_vm1, %v6230_v26 }
 0x212   :  { %v226_v29 = vpop.f32.mrb[2].mxu0 }
 0x213   :  { %v6236_v30 = vadd.f32 %v226_v29, %v135_v23  ;;  %v228_v31 = vpop.f32.mrb[3].mxu0 }
 0x214   :  { %v229_v33 = vadd.f32 %v228_v31, %v139_v28  ;;  %v6325_v31 = vld [vmem:[%s7320_s1 + $0x10] sm:$0xff] }
 0x215   :  { %v6240_v34 = vpack.i.bf16 %v6236_v30, %v6230_v26 }
 0x216   :  { %v232_v35 = vpop.f32.mrb[4].mxu0  ;;  %v5319_v36 = vpack.c.bf16 %v229_v33, %v223_v32  ;;  %v6242_v37 = vpack.i.bf16 %v229_v33, %v223_v32 }
 0x217   :  { %5672 = vrot.lane.b32.xlu0 %v6240_v34, %s6046_s11  ;;  %v234_v38 = vpop.f32.mrb[5].mxu0  ;;  %v6246_v40 = vadd.f32 %v232_v35, %v135_v23 }
 0x218   :  { %v235_v43 = vadd.f32 %v234_v38, %v139_v28 }
 0x21a   :  { %v238_v39 = vpop.f32.mrb[6].mxu0 }
 0x21b   :  { %v6248_v41 = vadd.f32 %v238_v39, %v135_v23  ;;  %515 = vrot.lane.b32.xlu0 %v6230_v26, %s6047_s12  ;;  %v240_v42 = vpop.f32.mrb[7].mxu0 }
 0x21c   :  { %v241_v44 = vadd.f32 %v240_v42, %v139_v28 }
 0x21d   :  { %v6254_v45 = vpack.i.bf16 %v6248_v41, %v6246_v40 }
 0x21e   :  { %v5323_v46 = vpack.c.bf16 %v241_v44, %v235_v43  ;;  %v6256_v47 = vpack.i.bf16 %v241_v44, %v235_v43 }
 0x21f   :  { %519 = vrot.lane.b32.xlu0 %v6246_v40, %s6047_s12  ;;  %5677 = vrot.lane.b32.xlu1 %v6254_v45, %s6046_s11 }
 0x223   :  { %5682 = vrot.lane.b32.xlu1 %v6240_v34, %s6048_s13 }
 0x227   :  { %5687 = vrot.lane.b32.xlu1 %v6254_v45, %s6048_s13 }
 0x22b   :  { %517 = vrot.lane.b32.xlu1 %v6236_v30, %s6047_s12 }
 0x22f   :  { %521 = vrot.lane.b32.xlu1 %v6248_v41, %s6047_s12 }
 0x289   :  { %v5673_v48 = vpop.permute.xlu0 %5672 }
 0x28a   :  { %v5675_v49 = vunpack.i.h.bf16 %v5673_v48  ;;  %v5674_v51 = vunpack.i.l.bf16 %v5673_v48 }
 0x28c   :  { %v5307_v53 = vpack.c.bf16 %v5675_v49, %v5674_v51 }
 0x28d   :  { %v516_v54 = vpop.permute.xlu0 %515 }
 0x28e   :  { %5309 = vmatprep.subr.msk.bf16.mxu1 %vm6272_vm2, %v5307_v53  ;;  %4865 = vmatprep.mubr.msk.f32.mxu0 %vm263_vm1, %v516_v54 }
 0x28f   :  { %5312 = vmatpush3.bf16.xpose.msk.msra.mxu1 %vm6272_vm2, %v5307_v53 }
 0x291   :  { %v5678_v55 = vpop.permute.xlu1 %5677  ;;  %v520_v4 = vpop.permute.xlu0 %519 }
 0x292   :  { %v5680_v56 = vunpack.i.h.bf16 %v5678_v55  ;;  %v5679_v57 = vunpack.i.l.bf16 %v5678_v55 }
 0x294   :  { %v5313_v58 = vpack.c.bf16 %v5680_v56, %v5679_v57 }
 0x295   :  { %v5683_v59 = vpop.permute.xlu1 %5682 }
 0x296   :  { %v5685_v60 = vunpack.i.h.bf16 %v5683_v59  ;;  %v5684_v61 = vunpack.i.l.bf16 %v5683_v59  ;;  %5315 = vmatprep.subr.msk.bf16.mxu1 %vm6272_vm2, %v5313_v58 }
 0x297   :  { %5318 = vmatpush3.bf16.xpose.msk.msra.mxu1 %vm6272_vm2, %v5313_v58 }
 0x298   :  { %v5327_v62 = vpack.c.bf16 %v5685_v60, %v5684_v61  ;;  %5320 = vmatprep.subr.bf16.mxu1 %v5319_v36 }
 0x299   :  { %v5688_v63 = vpop.permute.xlu1 %5687 }
 0x29a   :  { %v5690_v0 = vunpack.i.h.bf16 %v5688_v63  ;;  %v5689_v1 = vunpack.i.l.bf16 %v5688_v63  ;;  %5329 = vmatprep.subr.msk.bf16.mxu0 %vm6272_vm2, %v5327_v62 }
 0x29b   :  { %5332 = vmatpush3.bf16.xpose.msk.msra.mxu0 %vm6272_vm2, %v5327_v62 }
 0x29c   :  { %v5333_v2 = vpack.c.bf16 %v5690_v0, %v5689_v1 }
 0x29d   :  { %v518_v3 = vpop.permute.xlu1 %517 }
 0x29e   :  { %4838 = vmatmul.mubr.msk.f32.vlgmr.msra.gmra.mrb[0].mxu1 %vm263_vm1, %v6236_v30  ;;  %5335 = vmatprep.subr.msk.bf16.mxu0 %vm6272_vm2, %v5333_v2 }
 0x29f   :  { %4840 = vmatprep.mubr.msk.f32.mxu1 %vm263_vm1, %v6246_v40  ;;  %5322 = vmatpush3.bf16.msra.mxu1 %v5319_v36 }
 0x2a0   :  { %5324 = vmatprep.subr.bf16.mxu1 %v5323_v46 }
 0x2a1   :  { %v522_v5 = vpop.permute.xlu1 %521 }
 0x2a2   :  { %4841 = vmatmul.mubr.msk.f32.gmra.mrb[2].mxu1 %vm263_vm1, %v6248_v41 }
 0x2a3   :  { %5326 = vmatpush3.bf16.msra.mxu1 %v5323_v46  ;;  %5338 = vmatpush3.bf16.xpose.msk.msra.mxu0 %vm6272_vm2, %v5333_v2 }
 0x2aa   :  { %4866 = vmatmul.mubr.msk.f32.vlgmr.msra.gmra.mrb[8].mxu0 %vm263_vm1, %v518_v3 }
 0x2ab   :  { %4868 = vmatprep.mubr.msk.f32.mxu0 %vm263_vm1, %v520_v4 }
 0x2ae   :  { %4869 = vmatmul.mubr.msk.f32.gmra.mrb[10].mxu0 %vm263_vm1, %v522_v5 }
 0x371   :  { %v4839_v6 = vpop.f32.mrb[0].mxu1 }
 0x372   :  { %v366_v9 = vmul.f32 0.25, %v4839_v6  ;;  %v346_v10 = vpop.f32.mrb[1].mxu1 }
 0x373   :  { %v365_v14 = vmul.f32 0.25, %v346_v10 }
 0x374   :  { %v370_v15 = vadd.f32 %v366_v9, %v6305_v7 }
 0x375   :  { %v4842_v16 = vpop.f32.mrb[2].mxu1  ;;  %v369_v13 = vadd.f32 %v365_v14, %v6310_v11 }
 0x376   :  { %v368_v22 = vmul.f32 0.25, %v4842_v16  ;;  %v356_v23 = vpop.f32.mrb[3].mxu1  ;;  %v377_v25 = vsel %vm373_vm3, %v370_v15, -inf }
 0x377   :  { %v367_v27 = vmul.f32 0.25, %v356_v23  ;;  %378 = vmax.xlane.f32.xlu1 %v377_v25  ;;  %v374_v28 = vsel %vm373_vm3, %v369_v13, -inf }
 0x378   :  { %375 = vmax.xlane.f32.xlu0 %v374_v28  ;;  %v372_v29 = vadd.f32 %v368_v22, %v6317_v19 }
 0x379   :  { %v371_v33 = vadd.f32 %v367_v27, %v6325_v31 }
 0x37a   :  { %v383_v32 = vsel %vm373_vm3, %v372_v29, -inf }
 0x37b   :  { %v380_v42 = vsel %vm373_vm3, %v371_v33, -inf }
 0x37c   :  { %384 = vmax.xlane.f32.xlu0 %v383_v32 }
 0x37d   :  { %v4867_v35 = vpop.f32.mrb[8].mxu0 }
 0x37e   :  { %v633_v36 = vmul.f32 0.25, %v4867_v35  ;;  %v613_v38 = vpop.f32.mrb[9].mxu0 }
 0x37f   :  { %v632_v39 = vmul.f32 0.25, %v613_v38 }
 0x380   :  { %381 = vmax.xlane.f32.xlu0 %v380_v42  ;;  %v637_v43 = vadd.f32 %v633_v36, %v6305_v7 }
 0x381   :  { %v4870_v44 = vpop.f32.mrb[10].mxu0  ;;  %v636_v46 = vadd.f32 %v632_v39, %v6310_v11 }
 0x382   :  { %v635_v48 = vmul.f32 0.25, %v4870_v44  ;;  %v623_v49 = vpop.f32.mrb[11].mxu0  ;;  %v643_v51 = vsel %vm373_vm3, %v637_v43, -inf }
 0x383   :  { %v634_v53 = vmul.f32 0.25, %v623_v49  ;;  %644 = vmax.xlane.f32.xlu1 %v643_v51  ;;  %v640_v54 = vsel %vm373_vm3, %v636_v46, -inf }
 0x384   :  { %641 = vmax.xlane.f32.xlu0 %v640_v54  ;;  %v639_v55 = vadd.f32 %v635_v48, %v6317_v19 }
 0x385   :  { %v6336_v56 = vadd.f32 %v634_v53, %v6325_v31 }
 0x386   :  { %v649_v57 = vsel %vm373_vm3, %v639_v55, -inf }
 0x387   :  { %650 = vmax.xlane.f32.xlu1 %v649_v57  ;;  %v646_v58 = vsel %vm373_vm3, %v6336_v56, -inf }
 0x388   :  { %647 = vmax.xlane.f32.xlu0 %v646_v58 }
 0x404   :  { %v379_v59 = vpop.xlane.xlu1 %378 }
 0x405   :  { %v387_v60 = vsub.f32 %v370_v15, %v379_v59  ;;  %v376_v61 = vpop.xlane.xlu0 %375 }
 0x406   :  { %v386_v62 = vsub.f32 %v369_v13, %v376_v61 }
 0x407   :  { %v392_v63 = vmul.f32 1.442695, %v387_v60 }
 0x408   :  { %v390_v0 = vmul.f32 1.442695, %v386_v62 }
 0x409   :  { %5819 = vpow2.f32 %v392_v63  ;;  %v385_v1 = vpop.xlane.xlu0 %384 }
 0x40a   :  { %5821 = vpow2.f32 %v390_v0  ;;  %v389_v3 = vsub.f32 %v372_v29, %v385_v1 }
 0x40c   :  { %v396_v16 = vmul.f32 1.442695, %v389_v3 }
 0x40d   :  { %v382_v2 = vpop.xlane.xlu0 %381 }
 0x40e   :  { %v388_v4 = vsub.f32 %v371_v33, %v382_v2 }
 0x410   :  { %v645_v5 = vpop.xlane.xlu1 %644  ;;  %v394_v15 = vmul.f32 1.442695, %v388_v4 }
 0x411   :  { %v653_v6 = vsub.f32 %v637_v43, %v645_v5  ;;  %v642_v9 = vpop.xlane.xlu0 %641 }
 0x412   :  { %v652_v10 = vsub.f32 %v636_v46, %v642_v9 }
 0x413   :  { %v6341_v14 = vpop.eup %5819  ;;  %v658_v22 = vmul.f32 1.442695, %v653_v6 }
 0x414   :  { %v6343_v23 = vpop.eup %5821  ;;  %v656_v13 = vmul.f32 1.442695, %v652_v10  ;;  %v651_v25 = vpop.xlane.xlu1 %650  ;;  %v401_v27 = vsel %vm373_vm3, %v6341_v14, 0.0 }
 0x415   :  { %5823 = vpow2.f32 %v658_v22  ;;  %v655_v28 = vsub.f32 %v639_v55, %v651_v25  ;;  %402 = vadd.xlane.f32.xlu1 %v401_v27  ;;  %v398_v29 = vsel %vm373_vm3, %v6343_v23, 0.0  ;;  %v648_v49 = vpop.xlane.xlu0 %647 }
 0x416   :  { %5825 = vpow2.f32 %v656_v13  ;;  %399 = vadd.xlane.f32.xlu0 %v398_v29  ;;  %v654_v51 = vsub.f32 %v6336_v56, %v648_v49 }
 0x417   :  { %5827 = vpow2.f32 %v396_v16  ;;  %v662_v32 = vmul.f32 1.442695, %v655_v28 }
 0x418   :  { %5829 = vpow2.f32 %v394_v15  ;;  %v660_v53 = vmul.f32 1.442695, %v654_v51 }
 0x419   :  { %5831 = vpow2.f32 %v662_v32 }
 0x41a   :  { %5833 = vpow2.f32 %v660_v53 }
 0x41f   :  { %v6349_v33 = vpop.eup %5823 }
 0x420   :  { %v6351_v35 = vpop.eup %5825  ;;  %v667_v36 = vsel %vm373_vm3, %v6349_v33, 0.0 }
 0x421   :  { %v6355_v38 = vpop.eup %5827  ;;  %668 = vadd.xlane.f32.xlu1 %v667_v36  ;;  %v664_v39 = vsel %vm373_vm3, %v6351_v35, 0.0 }
 0x422   :  { %v6359_v42 = vpop.eup %5829  ;;  %665 = vadd.xlane.f32.xlu0 %v664_v39  ;;  %v407_v43 = vsel %vm373_vm3, %v6355_v38, 0.0 }
 0x423   :  { %v6363_v44 = vpop.eup %5831  ;;  %v404_v46 = vsel %vm373_vm3, %v6359_v42, 0.0 }
 0x424   :  { %v673_v48 = vsel %vm373_vm3, %v6363_v44, 0.0  ;;  %v6388_v54 = vpop.eup %5833 }
 0x425   :  { %408 = vadd.xlane.f32.xlu1 %v407_v43  ;;  %v670_v55 = vsel %vm373_vm3, %v6388_v54, 0.0 }
 0x426   :  { %405 = vadd.xlane.f32.xlu0 %v404_v46 }
 0x429   :  { %674 = vadd.xlane.f32.xlu1 %v673_v48 }
 0x43a   :  { %5697 = vrot.lane.b32.xlu1 %v6256_v47, %s6047_s12 }
 0x43c   :  { %5692 = vrot.lane.b32.xlu0 %v6242_v37, %s6047_s12 }
 0x43e   :  { %5702 = vrot.lane.b32.xlu1 %v6240_v34, %s6049_s21 }
 0x442   :  { %5707 = vrot.lane.b32.xlu1 %v6254_v45, %s6049_s21 }
 0x446   :  { %993 = vrot.lane.b32.xlu1 %v6236_v30, %s6050_s22 }
 0x44a   :  { %997 = vrot.lane.b32.xlu1 %v6248_v41, %s6050_s22 }
 0x44e   :  { %5717 = vrot.lane.b32.xlu1 %v6254_v45, %s6051_s23 }
 0x452   :  { %1372 = vrot.lane.b32.xlu1 %v6236_v30, %s6052_s24 }
 0x456   :  { %1376 = vrot.lane.b32.xlu1 %v6248_v41, %s6052_s24 }
 0x45b   :  { %671 = vadd.xlane.f32.xlu0 %v670_v55 }
 0x471   :  { %991 = vrot.lane.b32.xlu0 %v6230_v26, %s6050_s22 }
 0x475   :  { %995 = vrot.lane.b32.xlu0 %v6246_v40, %s6050_s22 }
 0x479   :  { %5712 = vrot.lane.b32.xlu0 %v6240_v34, %s6051_s23 }
 0x47d   :  { %1370 = vrot.lane.b32.xlu0 %v6230_v26, %s6052_s24 }
 0x481   :  { %1374 = vrot.lane.b32.xlu0 %v6246_v40, %s6052_s24 }
 0x4a2   :  { %v403_v30 = vpop.xlane.xlu1 %402 }
 0x4a3   :  { %5835 = vrcp.f32 %v403_v30  ;;  %v400_v41 = vpop.xlane.xlu0 %399 }
 0x4a4   :  { %5837 = vrcp.f32 %v400_v41 }
 0x4ad   :  { %v5836_v45 = vpop.eup %5835 }
 0x4ae   :  { %v5838_v56 = vpop.eup %5837  ;;  %v669_v57 = vpop.xlane.xlu1 %668  ;;  %v413_v60 = vmul.f32 %v5836_v45, %v6341_v14 }
 0x4af   :  { %v666_v58 = vpop.xlane.xlu0 %665  ;;  %v411_v59 = vmul.f32 %v5838_v56, %v6343_v23 }
 0x4b0   :  { %5839 = vrcp.f32 %v666_v58 }
 0x4b1   :  { %4851 = vmatprep.mubr.msk.f32.mxu1 %vm373_vm3, %v411_v59 }
 0x4b2   :  { %v409_v34 = vpop.xlane.xlu1 %408  ;;  %4852 = vmatmul.mubr.msk.f32.vlgmr.msra.gmra.mrb[4].mxu1 %vm373_vm3, %v413_v60  ;;  %v245_v60 = vld [vmem:[%s7322_s3 + $0x10] sm:$0xff] }
 0x4b3   :  { %5841 = vrcp.f32 %v409_v34  ;;  %v406_v26 = vpop.xlane.xlu0 %405  ;;  %v246_v34 = vld [vmem:[%s7322_s3 + $0x18] sm:$0xff] }
 0x4b4   :  { %5843 = vrcp.f32 %v406_v26  ;;  %v5347_v26 = vpack.c.bf16 %v246_v34, %v245_v60 }
 0x4b5   :  { %5845 = vrcp.f32 %v669_v57 }
 0x4b6   :  { %v675_v40 = vpop.xlane.xlu1 %674  ;;  %5348 = vmatprep.subr.bf16.mxu0 %v5347_v26 }
 0x4b7   :  { %v5693_v61 = vpop.permute.xlu0 %5692  ;;  %5847 = vrcp.f32 %v675_v40  ;;  %5350 = vmatpush3.bf16.msra.mxu0 %v5347_v26  ;;  %v243_v40 = vld [vmem:[%s7322_s3] sm:$0xff] }
 0x4b8   :  { %v5695_v62 = vunpack.i.h.bf16 %v5693_v61  ;;  %v5694_v63 = vunpack.i.l.bf16 %v5693_v61  ;;  %v244_v61 = vld [vmem:[%s7322_s3 + $0x8] sm:$0xff] }
 0x4ba   :  { %v5698_v0 = vpop.permute.xlu1 %5697  ;;  %v5339_v1 = vpack.c.bf16 %v5695_v62, %v5694_v63  ;;  %v5840_v4 = vpop.eup %5839  ;;  %v5351_v62 = vpack.c.bf16 %v244_v61, %v243_v40 }
 0x4bb   :  { %v5700_v2 = vunpack.i.h.bf16 %v5698_v0  ;;  %v5699_v3 = vunpack.i.l.bf16 %v5698_v0  ;;  %v677_v25 = vmul.f32 %v5840_v4, %v6351_v35 }
 0x4bc   :  { %5340 = vmatprep.subr.bf16.mxu1 %v5339_v1  ;;  %5352 = vmatprep.subr.bf16.mxu0 %v5351_v62 }
 0x4bd   :  { %v5842_v5 = vpop.eup %5841  ;;  %5342 = vmatpush3.bf16.msra.mxu1 %v5339_v1  ;;  %v5343_v6 = vpack.c.bf16 %v5700_v2, %v5699_v3 }
 0x4be   :  { %v5844_v9 = vpop.eup %5843  ;;  %v5703_v10 = vpop.permute.xlu1 %5702  ;;  %v417_v23 = vmul.f32 %v5842_v5, %v6355_v38 }
 0x4bf   :  { %v5705_v14 = vunpack.i.h.bf16 %v5703_v10  ;;  %v5704_v16 = vunpack.i.l.bf16 %v5703_v10  ;;  %5344 = vmatprep.subr.bf16.mxu1 %v5343_v6  ;;  %v415_v22 = vmul.f32 %v5844_v9, %v6359_v42  ;;  %v5846_v15 = vpop.eup %5845 }
 0x4c0   :  { %v679_v28 = vmul.f32 %v5846_v15, %v6349_v33 }
 0x4c1   :  { %v5355_v13 = vpack.c.bf16 %v5705_v14, %v5704_v16  ;;  %4854 = vmatprep.mubr.msk.f32.mxu1 %vm373_vm3, %v415_v22  ;;  %5346 = vmatpush3.bf16.msra.mxu1 %v5343_v6  ;;  %v5848_v43 = vpop.eup %5847 }
 0x4c2   :  { %v5708_v27 = vpop.permute.xlu1 %5707  ;;  %4855 = vmatmul.mubr.msk.f32.gmra.mrb[6].mxu1 %vm373_vm3, %v417_v23  ;;  %v683_v30 = vmul.f32 %v5848_v43, %v6363_v44 }
 0x4c3   :  { %4879 = vmatprep.mubr.msk.f32.mxu1 %vm373_vm3, %v677_v25  ;;  %5357 = vmatprep.subr.msk.bf16.mxu1 %vm6272_vm2, %v5355_v13  ;;  %v5710_v29 = vunpack.i.h.bf16 %v5708_v27  ;;  %v5709_v32 = vunpack.i.l.bf16 %v5708_v27 }
 0x4c5   :  { %v5361_v36 = vpack.c.bf16 %v5710_v29, %v5709_v32 }
 0x4c6   :  { %4880 = vmatmul.mubr.msk.f32.vlgmr.msra.gmra.mrb[8].mxu1 %vm373_vm3, %v679_v28  ;;  %v994_v35 = vpop.permute.xlu1 %993 }
 0x4ca   :  { %5360 = vmatpush3.bf16.xpose.msk.msra.mxu1 %vm6272_vm2, %v5355_v13  ;;  %v998_v33 = vpop.permute.xlu1 %997 }
 0x4cb   :  { %5363 = vmatprep.subr.msk.bf16.mxu1 %vm6272_vm2, %v5361_v36 }
 0x4ce   :  { %v5718_v48 = vpop.permute.xlu1 %5717 }
 0x4cf   :  { %v5720_v41 = vunpack.i.h.bf16 %v5718_v48  ;;  %v5719_v45 = vunpack.i.l.bf16 %v5718_v48 }
 0x4d1   :  { %v5385_v57 = vpack.c.bf16 %v5720_v41, %v5719_v45 }
 0x4d2   :  { %5366 = vmatpush3.bf16.xpose.msk.msra.mxu1 %vm6272_vm2, %v5361_v36 }
 0x4e8   :  { %v672_v38 = vpop.xlane.xlu0 %671 }
 0x4e9   :  { %5849 = vrcp.f32 %v672_v38 }
 0x4ec   :  { %v992_v39 = vpop.permute.xlu0 %991 }
 0x4f0   :  { %v996_v42 = vpop.permute.xlu0 %995 }
 0x4f3   :  { %v5850_v46 = vpop.eup %5849 }
 0x4f4   :  { %v5713_v49 = vpop.permute.xlu0 %5712  ;;  %v681_v51 = vmul.f32 %v5850_v46, %v6388_v54  ;;  %v1373_v54 = vpop.permute.xlu1 %1372 }
 0x4f5   :  { %v5715_v53 = vunpack.i.h.bf16 %v5713_v49  ;;  %v5714_v55 = vunpack.i.l.bf16 %v5713_v49 }
 0x4f6   :  { %4882 = vmatprep.mubr.msk.f32.mxu1 %vm373_vm3, %v681_v51 }
 0x4f7   :  { %v5379_v56 = vpack.c.bf16 %v5715_v53, %v5714_v55  ;;  %4883 = vmatmul.mubr.msk.f32.gmra.mrb[10].mxu1 %vm373_vm3, %v683_v30 }
 0x4f8   :  { %4913 = vmatprep.mubr.msk.f32.mxu1 %vm263_vm1, %v992_v39  ;;  %v1371_v44 = vpop.permute.xlu0 %1370  ;;  %v1377_v59 = vpop.permute.xlu1 %1376 }
 0x4f9   :  { %5381 = vmatprep.subr.msk.bf16.mxu1 %vm6272_vm2, %v5379_v56 }
 0x4fb   :  { %4914 = vmatmul.mubr.msk.f32.vlgmr.msra.gmra.mrb[12].mxu1 %vm263_vm1, %v994_v35 }
 0x4fc   :  { %5384 = vmatpush3.bf16.xpose.msk.msra.mxu1 %vm6272_vm2, %v5379_v56  ;;  %4916 = vmatprep.mubr.msk.f32.mxu1 %vm263_vm1, %v996_v42  ;;  %v1375_v58 = vpop.permute.xlu0 %1374 }
 0x4fd   :  { %5387 = vmatprep.subr.msk.bf16.mxu1 %vm6272_vm2, %v5385_v57 }
 0x4ff   :  { %4917 = vmatmul.mubr.msk.f32.gmra.mrb[14].mxu1 %vm263_vm1, %v998_v33 }
 0x500   :  { %4951 = vmatprep.mubr.msk.f32.mxu1 %vm263_vm1, %v1371_v44 }
 0x504   :  { %5390 = vmatpush3.bf16.xpose.msk.msra.mxu1 %vm6272_vm2, %v5385_v57 }
 0x50b   :  { %4952 = vmatmul.mubr.msk.f32.vlgmr.msra.gmra.mrb[16].mxu1 %vm263_vm1, %v1373_v54 }
 0x50c   :  { %4954 = vmatprep.mubr.msk.f32.mxu1 %vm263_vm1, %v1375_v58 }
 0x50f   :  { %4955 = vmatmul.mubr.msk.f32.gmra.mrb[18].mxu1 %vm263_vm1, %v1377_v59 }
 0x585   :  { %v4853_v63 = vpop.f32.mrb[4].mxu1 }
 0x586   :  { %v496_v0 = vpop.f32.mrb[5].mxu1 }
 0x595   :  { %v4856_v1 = vpop.f32.mrb[6].mxu1 }
 0x596   :  { %v506_v2 = vpop.f32.mrb[7].mxu1 }
 0x599   :  { %v4881_v3 = vpop.f32.mrb[8].mxu1 }
 0x59a   :  { %v778_v4 = vpop.f32.mrb[9].mxu1 }
 0x59b   :  { %4889 = vmatprep.mubr.msk.f32.mxu0 %vm263_vm1, %v778_v4 }
 0x59c   :  { %4890 = vmatmul.mubr.msk.f32.vlgmr.msra.gmra.mrb[12].mxu0 %vm263_vm1, %v4881_v3 }
 0x59d   :  { %5354 = vmatpush3.bf16.msra.mxu0 %v5351_v62 }
 0x5ca   :  { %v4884_v5 = vpop.f32.mrb[10].mxu1 }
 0x5cb   :  { %v788_v6 = vpop.f32.mrb[11].mxu1 }
 0x5cc   :  { %4892 = vmatprep.mubr.msk.f32.mxu0 %vm263_vm1, %v788_v6 }
 0x5cd   :  { %4893 = vmatmul.mubr.msk.f32.gmra.mrb[14].mxu0 %vm263_vm1, %v4884_v5 }
 0x5ce   :  { %4899 = vmatprep.mubr.msk.f32.mxu0 %vm263_vm1, %v496_v0  ;;  %v4915_v9 = vpop.f32.mrb[12].mxu1 }
 0x5cf   :  { %v1109_v10 = vmul.f32 0.25, %v4915_v9  ;;  %v1089_v14 = vpop.f32.mrb[13].mxu1 }
 0x5d0   :  { %v1108_v16 = vmul.f32 0.25, %v1089_v14 }
 0x5d1   :  { %4900 = vmatmul.mubr.msk.f32.vlgmr.msra.gmra.mrb[12].mxu0 %vm263_vm1, %v4853_v63  ;;  %v1113_v22 = vadd.f32 %v1109_v10, %v6305_v7 }
 0x5d2   :  { %4902 = vmatprep.mubr.msk.f32.mxu0 %vm263_vm1, %v506_v2  ;;  %v4918_v23 = vpop.f32.mrb[14].mxu1  ;;  %v1112_v15 = vadd.f32 %v1108_v16, %v6310_v11 }
 0x5d3   :  { %v1099_v13 = vpop.f32.mrb[15].mxu1  ;;  %v1119_v25 = vsel %vm373_vm3, %v1113_v22, -inf  ;;  %v1111_v27 = vmul.f32 0.25, %v4918_v23 }
 0x5d4   :  { %v1110_v28 = vmul.f32 0.25, %v1099_v13  ;;  %1120 = vmax.xlane.f32.xlu1 %v1119_v25  ;;  %v1116_v29 = vsel %vm373_vm3, %v1112_v15, -inf }
 0x5d5   :  { %1117 = vmax.xlane.f32.xlu0 %v1116_v29  ;;  %4903 = vmatmul.mubr.msk.f32.gmra.mrb[14].mxu0 %vm263_vm1, %v4856_v1  ;;  %v1115_v35 = vadd.f32 %v1111_v27, %v6317_v19 }
 0x5d6   :  { %v1114_v32 = vadd.f32 %v1110_v28, %v6325_v31 }
 0x5d7   :  { %v1125_v38 = vsel %vm373_vm3, %v1115_v35, -inf }
 0x5d8   :  { %v1122_v36 = vsel %vm373_vm3, %v1114_v32, -inf }
 0x5d9   :  { %1123 = vmax.xlane.f32.xlu0 %v1122_v36 }
 0x5dd   :  { %1126 = vmax.xlane.f32.xlu0 %v1125_v38 }
 0x5de   :  { %v4953_v39 = vpop.f32.mrb[16].mxu1 }
 0x5df   :  { %v1468_v33 = vpop.f32.mrb[17].mxu1  ;;  %v1488_v62 = vmul.f32 0.25, %v4953_v39 }
 0x5e0   :  { %v1487_v63 = vmul.f32 0.25, %v1468_v33 }
 0x5e1   :  { %v1492_v1 = vadd.f32 %v1488_v62, %v6305_v7  ;;  %v248_v62 = vld [vmem:[%s7322_s3 + $0x28] sm:$0xff] }
 0x5e2   :  { %v4956_v42 = vpop.f32.mrb[18].mxu1  ;;  %v1491_v5 = vadd.f32 %v1487_v63, %v6310_v11 }
 0x5e3   :  { %v1478_v43 = vpop.f32.mrb[19].mxu1  ;;  %v1490_v2 = vmul.f32 0.25, %v4956_v42  ;;  %v1498_v3 = vsel %vm373_vm3, %v1492_v1, -inf }
 0x5e4   :  { %v1489_v0 = vmul.f32 0.25, %v1478_v43  ;;  %v1495_v9 = vsel %vm373_vm3, %v1491_v5, -inf }
 0x5e5   :  { %v1494_v10 = vadd.f32 %v1490_v2, %v6317_v19 }
 0x5e6   :  { %v1493_v4 = vadd.f32 %v1489_v0, %v6325_v31 }
 0x5e7   :  { %v1504_v14 = vsel %vm373_vm3, %v1494_v10, -inf }
 0x5e8   :  { %v1501_v6 = vsel %vm373_vm3, %v1493_v4, -inf }
 0x661   :  { %v1121_v46 = vpop.xlane.xlu1 %1120 }
 0x662   :  { %v1129_v48 = vsub.f32 %v1113_v22, %v1121_v46  ;;  %v1118_v49 = vpop.xlane.xlu0 %1117 }
 0x663   :  { %v1128_v51 = vsub.f32 %v1112_v15, %v1118_v49 }
 0x664   :  { %v1134_v53 = vmul.f32 1.442695, %v1129_v48 }
 0x665   :  { %v1132_v55 = vmul.f32 1.442695, %v1128_v51 }
 0x666   :  { %5851 = vpow2.f32 %v1134_v53  ;;  %v1124_v30 = vpop.xlane.xlu0 %1123 }
 0x667   :  { %5853 = vpow2.f32 %v1132_v55  ;;  %v1130_v41 = vsub.f32 %v1114_v32, %v1124_v30 }
 0x669   :  { %v1136_v45 = vmul.f32 1.442695, %v1130_v41 }
 0x66a   :  { %v1127_v56 = vpop.xlane.xlu0 %1126 }
 0x66b   :  { %5855 = vpow2.f32 %v1136_v45  ;;  %v1131_v57 = vsub.f32 %v1115_v35, %v1127_v56 }
 0x66d   :  { %v1138_v44 = vmul.f32 1.442695, %v1131_v57 }
 0x66f   :  { %5857 = vpow2.f32 %v1138_v44 }
 0x670   :  { %v5852_v54 = vpop.eup %5851 }
 0x671   :  { %v5854_v58 = vpop.eup %5853  ;;  %v1143_v59 = vsel %vm373_vm3, %v5852_v54, 0.0 }
 0x672   :  { %1144 = vadd.xlane.f32.xlu1 %v1143_v59  ;;  %v1140_v60 = vsel %vm373_vm3, %v5854_v58, 0.0 }
 0x673   :  { %1141 = vadd.xlane.f32.xlu0 %v1140_v60 }
 0x675   :  { %v5856_v34 = vpop.eup %5855 }
 0x676   :  { %v1146_v26 = vsel %vm373_vm3, %v5856_v34, 0.0 }
 0x677   :  { %1147 = vadd.xlane.f32.xlu0 %v1146_v26 }
 0x679   :  { %v5858_v40 = vpop.eup %5857 }
 0x67a   :  { %v1149_v61 = vsel %vm373_vm3, %v5858_v40, 0.0 }
 0x67b   :  { %1150 = vadd.xlane.f32.xlu1 %v1149_v61  ;;  %v247_v61 = vld [vmem:[%s7322_s3 + $0x20] sm:$0xff] }
 0x67c   :  { %v5375_v63 = vpack.c.bf16 %v248_v62, %v247_v61 }
 0x68c   :  { %5727 = vrot.lane.b32.xlu1 %v6256_v47, %s6050_s22 }
 0x68d   :  { %5722 = vrot.lane.b32.xlu0 %v6242_v37, %s6050_s22 }
 0x6ac   :  { %1499 = vmax.xlane.f32.xlu0 %v1498_v3 }
 0x6b0   :  { %1502 = vmax.xlane.f32.xlu0 %v1501_v6  ;;  %1496 = vmax.xlane.f32.xlu1 %v1495_v9 }
 0x6b4   :  { %1505 = vmax.xlane.f32.xlu1 %v1504_v14 }
 0x6ff   :  { %v1145_v16 = vpop.xlane.xlu1 %1144 }
 0x700   :  { %v1142_v7 = vpop.xlane.xlu0 %1141 }
 0x701   :  { %5859 = vrcp.f32 %v1142_v7 }
 0x702   :  { %5861 = vrcp.f32 %v1145_v16 }
 0x704   :  { %v1148_v22 = vpop.xlane.xlu0 %1147 }
 0x705   :  { %5863 = vrcp.f32 %v1148_v22  ;;  %v250_v22 = vld [vmem:[%s7322_s3 + $0x38] sm:$0xff] }
 0x708   :  { %v1151_v31 = vpop.xlane.xlu1 %1150  ;;  %v5723_v11 = vpop.permute.xlu0 %5722 }
 0x709   :  { %v5725_v23 = vunpack.i.h.bf16 %v5723_v11  ;;  %v5724_v15 = vunpack.i.l.bf16 %v5723_v11  ;;  %5865 = vrcp.f32 %v1151_v31 }
 0x70b   :  { %v5860_v13 = vpop.eup %5859  ;;  %v5367_v25 = vpack.c.bf16 %v5725_v23, %v5724_v15 }
 0x70c   :  { %v5728_v27 = vpop.permute.xlu1 %5727  ;;  %v1153_v19 = vmul.f32 %v5860_v13, %v5854_v58  ;;  %v5862_v36 = vpop.eup %5861 }
 0x70d   :  { %v5730_v28 = vunpack.i.h.bf16 %v5728_v27  ;;  %v5729_v29 = vunpack.i.l.bf16 %v5728_v27  ;;  %5368 = vmatprep.subr.bf16.mxu0 %v5367_v25  ;;  %v1155_v38 = vmul.f32 %v5862_v36, %v5852_v54 }
 0x70e   :  { %5370 = vmatpush3.bf16.msra.mxu0 %v5367_v25  ;;  %4927 = vmatprep.mubr.msk.f32.mxu0 %vm373_vm3, %v1153_v19 }
 0x70f   :  { %v5371_v32 = vpack.c.bf16 %v5730_v28, %v5729_v29  ;;  %v5864_v35 = vpop.eup %5863 }
 0x710   :  { %v1157_v33 = vmul.f32 %v5864_v35, %v5856_v34 }
 0x711   :  { %5372 = vmatprep.subr.bf16.mxu0 %v5371_v32 }
 0x712   :  { %5374 = vmatpush3.bf16.msra.mxu0 %v5371_v32 }
 0x713   :  { %v5866_v39 = vpop.eup %5865  ;;  %5376 = vmatprep.subr.bf16.mxu0 %v5375_v63 }
 0x714   :  { %v1159_v42 = vmul.f32 %v5866_v39, %v5858_v40 }
 0x715   :  { %4928 = vmatmul.mubr.msk.f32.vlgmr.msra.gmra.mrb[16].mxu0 %vm373_vm3, %v1155_v38 }
 0x716   :  { %4930 = vmatprep.mubr.msk.f32.mxu0 %vm373_vm3, %v1157_v33  ;;  %5378 = vmatpush3.bf16.msra.mxu0 %v5375_v63 }
 0x719   :  { %4931 = vmatmul.mubr.msk.f32.gmra.mrb[18].mxu0 %vm373_vm3, %v1159_v42  ;;  %v4421_v42 = vld [vmem:[%s7322_s3 + $0x40] ss:$0 sm:$0xff] }
 0x739   :  { %v1500_v43 = vpop.xlane.xlu0 %1499 }
 0x73a   :  { %v1508_v46 = vsub.f32 %v1492_v1, %v1500_v43 }
 0x73c   :  { %v1513_v48 = vmul.f32 1.442695, %v1508_v46 }
 0x73d   :  { %v1497_v49 = vpop.xlane.xlu1 %1496  ;;  %v1503_v51 = vpop.xlane.xlu0 %1502 }
 0x73e   :  { %5867 = vpow2.f32 %v1513_v48  ;;  %v1507_v53 = vsub.f32 %v1491_v5, %v1497_v49  ;;  %v1509_v55 = vsub.f32 %v1493_v4, %v1503_v51 }
 0x740   :  { %v1511_v30 = vmul.f32 1.442695, %v1507_v53  ;;  %v1515_v41 = vmul.f32 1.442695, %v1509_v55 }
 0x741   :  { %v1506_v45 = vpop.xlane.xlu1 %1505 }
 0x742   :  { %5869 = vpow2.f32 %v1511_v30  ;;  %v1510_v56 = vsub.f32 %v1494_v10, %v1506_v45 }
 0x743   :  { %5871 = vpow2.f32 %v1515_v41 }
 0x744   :  { %v1517_v57 = vmul.f32 1.442695, %v1510_v56 }
 0x746   :  { %5873 = vpow2.f32 %v1517_v57 }
 0x748   :  { %v5868_v44 = vpop.eup %5867 }
 0x749   :  { %v1522_v54 = vsel %vm373_vm3, %v5868_v44, 0.0 }
 0x74a   :  { %1523 = vadd.xlane.f32.xlu1 %v1522_v54 }
 0x74c   :  { %v5870_v58 = vpop.eup %5869 }
 0x74d   :  { %v1519_v59 = vsel %vm373_vm3, %v5870_v58, 0.0  ;;  %v5872_v60 = vpop.eup %5871 }
 0x74e   :  { %1520 = vadd.xlane.f32.xlu0 %v1519_v59  ;;  %v1525_v40 = vsel %vm373_vm3, %v5872_v60, 0.0 }
 0x750   :  { %v5874_v34 = vpop.eup %5873 }
 0x751   :  { %v1528_v26 = vsel %vm373_vm3, %v5874_v34, 0.0 }
 0x752   :  { %1529 = vadd.xlane.f32.xlu1 %v1528_v26  ;;  %1526 = vadd.xlane.f32.xlu0 %v1525_v40 }
 0x763   :  { %5737 = vrot.lane.b32.xlu1 %v6256_v47, %s6052_s24 }
 0x768   :  { %5732 = vrot.lane.b32.xlu0 %v6242_v37, %s6052_s24  ;;  %v249_v37 = vld [vmem:[%s7322_s3 + $0x30] sm:$0xff] }
 0x769   :  { %v5399_v13 = vpack.c.bf16 %v250_v22, %v249_v37  ;;  %v1835_v37 = vld [vmem:[%s7323_s4 + $0x18] sm:$0xff] }
 0x7d7   :  { %v1524_v0 = vpop.xlane.xlu1 %1523 }
 0x7db   :  { %v1521_v1 = vpop.xlane.xlu0 %1520 }
 0x7dc   :  { %5875 = vrcp.f32 %v1521_v1 }
 0x7dd   :  { %5877 = vrcp.f32 %v1524_v0 }
 0x7df   :  { %v1530_v2 = vpop.xlane.xlu1 %1529  ;;  %v1527_v3 = vpop.xlane.xlu0 %1526 }
 0x7e0   :  { %5879 = vrcp.f32 %v1527_v3 }
 0x7e1   :  { %5881 = vrcp.f32 %v1530_v2 }
 0x7e3   :  { %v5733_v47 = vpop.permute.xlu0 %5732  ;;  %v5738_v4 = vpop.permute.xlu1 %5737 }
 0x7e4   :  { %v5735_v5 = vunpack.i.h.bf16 %v5733_v47  ;;  %v5734_v6 = vunpack.i.l.bf16 %v5733_v47  ;;  %v5740_v10 = vunpack.i.h.bf16 %v5738_v4  ;;  %v5739_v14 = vunpack.i.l.bf16 %v5738_v4 }
 0x7e6   :  { %v5391_v9 = vpack.c.bf16 %v5735_v5, %v5734_v6  ;;  %v5876_v31 = vpop.eup %5875  ;;  %v5395_v11 = vpack.c.bf16 %v5740_v10, %v5739_v14  ;;  %v1832_v10 = vld [vmem:[%s7323_s4] sm:$0xff]  ;;  %v1833_v14 = vld [vmem:[%s7323_s4 + $0x8] sm:$0xff] }
 0x7e7   :  { %v5878_v25 = vpop.eup %5877  ;;  %v1532_v27 = vmul.f32 %v5876_v31, %v5870_v58  ;;  %v1836_v31 = vld [vmem:[%s7323_s4 + $0x20] sm:$0xff] }
 0x7e8   :  { %v4929_v7 = vpop.f32.mrb[16].mxu0  ;;  %5392 = vmatprep.subr.bf16.mxu0 %v5391_v9  ;;  %v1534_v28 = vmul.f32 %v5878_v25, %v5868_v44 }
 0x7e9   :  { %v1250_v16 = vpop.f32.mrb[17].mxu0 }
 0x7ea   :  { %4937 = vmatprep.mubr.msk.f32.mxu0 %vm263_vm1, %v1250_v16  ;;  %v5880_v19 = vpop.eup %5879  ;;  %v1834_v16 = vld [vmem:[%s7323_s4 + $0x10] sm:$0xff] }
 0x7eb   :  { %4938 = vmatmul.mubr.msk.f32.vlgmr.msra.gmra.mrb[12].mxu0 %vm263_vm1, %v4929_v7  ;;  %v5882_v29 = vpop.eup %5881  ;;  %v1536_v32 = vmul.f32 %v5880_v19, %v5872_v60  ;;  %v5403_v7 = vpack.c.bf16 %v1833_v14, %v1832_v10  ;;  %v5407_v22 = vpack.c.bf16 %v1835_v37, %v1834_v16  ;;  %v1963_v19 = vld [vmem:[%s7324_s5 + $0x8] sm:$0xff]  ;;  %v1974_v14 = vld [vmem:[%s7324_s5 + $0x60] sm:$0xff]  ;;  %v1976_v37 = vld [vmem:[%s7324_s5 + $0x70] sm:$0xff] }
 0x7ec   :  { %5394 = vmatpush3.bf16.msra.mxu0 %v5391_v9  ;;  %v4932_v23 = vpop.f32.mrb[18].mxu0  ;;  %v1538_v36 = vmul.f32 %v5882_v29, %v5874_v34 }
 0x7ed   :  { %5396 = vmatprep.subr.bf16.mxu0 %v5395_v11  ;;  %v1260_v15 = vpop.f32.mrb[19].mxu0  ;;  %5404 = vmatprep.subr.bf16.mxu1 %v5403_v7 }
 0x7ee   :  { %4940 = vmatprep.mubr.msk.f32.mxu0 %vm263_vm1, %v1260_v15  ;;  %5406 = vmatpush3.bf16.msra.mxu1 %v5403_v7  ;;  %v1838_v15 = vld [vmem:[%s7323_s4 + $0x30] sm:$0xff]  ;;  %v1975_v7 = vld [vmem:[%s7324_s5 + $0x68] sm:$0xff] }
 0x7ef   :  { %4941 = vmatmul.mubr.msk.f32.gmra.mrb[14].mxu0 %vm263_vm1, %v4932_v23  ;;  %5408 = vmatprep.subr.bf16.mxu1 %v5407_v22  ;;  %v5443_v16 = vpack.c.bf16 %v1975_v7, %v1974_v14 }
 0x7f0   :  { %5398 = vmatpush3.bf16.msra.mxu0 %v5395_v11  ;;  %4965 = vmatprep.mubr.msk.f32.mxu0 %vm373_vm3, %v1532_v27  ;;  %v1837_v11 = vld [vmem:[%s7323_s4 + $0x28] sm:$0xff]  ;;  %v1962_v27 = vld [vmem:[%s7324_s5] sm:$0xff] }
 0x7f1   :  { %5400 = vmatprep.subr.bf16.mxu0 %v5399_v13  ;;  %v5411_v23 = vpack.c.bf16 %v1837_v11, %v1836_v31  ;;  %v5419_v29 = vpack.c.bf16 %v1963_v19, %v1962_v27  ;;  %v4424_v11 = vld [vmem:[%s7323_s4 + $0x40] ss:$0 sm:$0xff] }
 0x7f2   :  { %5410 = vmatpush3.bf16.msra.mxu1 %v5407_v22  ;;  %v1977_v22 = vld [vmem:[%s7324_s5 + $0x78] sm:$0xff] }
 0x7f3   :  { %4966 = vmatmul.mubr.msk.f32.vlgmr.msra.gmra.mrb[20].mxu0 %vm373_vm3, %v1534_v28  ;;  %5412 = vmatprep.subr.bf16.mxu1 %v5411_v23  ;;  %v1964_v28 = vld [vmem:[%s7324_s5 + $0x10] sm:$0xff]  ;;  %v5447_v31 = vpack.c.bf16 %v1977_v22, %v1976_v37 }
 0x7f4   :  { %4968 = vmatprep.mubr.msk.f32.mxu0 %vm373_vm3, %v1536_v32  ;;  %5402 = vmatpush3.bf16.msra.mxu0 %v5399_v13  ;;  %v1839_v13 = vld [vmem:[%s7323_s4 + $0x38] sm:$0xff] }
 0x7f5   :  { %v5415_v25 = vpack.c.bf16 %v1839_v13, %v1838_v15  ;;  %v1965_v32 = vld [vmem:[%s7324_s5 + $0x18] sm:$0xff]  ;;  %5420 = vmatprep.subr.bf16.mxu0 %v5419_v29 }
 0x7f6   :  { %5414 = vmatpush3.bf16.msra.mxu1 %v5411_v23 }
 0x7f7   :  { %4969 = vmatmul.mubr.msk.f32.gmra.mrb[22].mxu0 %vm373_vm3, %v1538_v36  ;;  %5416 = vmatprep.subr.bf16.mxu1 %v5415_v25  ;;  %v5423_v36 = vpack.c.bf16 %v1965_v32, %v1964_v28 }
 0x7fa   :  { %5418 = vmatpush3.bf16.msra.mxu1 %v5415_v25 }
 0x8c6   :  { %v4967_v35 = vpop.f32.mrb[20].mxu0 }
 0x8c7   :  { %v1629_v38 = vpop.f32.mrb[21].mxu0 }
 0x8c8   :  { %4975 = vmatprep.mubr.msk.f32.mxu0 %vm263_vm1, %v1629_v38  ;;  %v1967_v38 = vld [vmem:[%s7324_s5 + $0x28] sm:$0xff] }
 0x8c9   :  { %4976 = vmatmul.mubr.msk.f32.vlgmr.msra.gmra.mrb[12].mxu0 %vm263_vm1, %v4967_v35  ;;  %v1966_v35 = vld [vmem:[%s7324_s5 + $0x20] sm:$0xff] }
 0x8ca   :  { %v4970_v39 = vpop.f32.mrb[22].mxu0  ;;  %5422 = vmatpush3.bf16.msra.mxu0 %v5419_v29 }
 0x8cb   :  { %v1639_v33 = vpop.f32.mrb[23].mxu0  ;;  %5424 = vmatprep.subr.bf16.mxu0 %v5423_v36 }
 0x8cc   :  { %4978 = vmatprep.mubr.msk.f32.mxu0 %vm263_vm1, %v1639_v33 }
 0x8cd   :  { %4979 = vmatmul.mubr.msk.f32.gmra.mrb[14].mxu0 %vm263_vm1, %v4970_v39  ;;  %v5427_v39 = vpack.c.bf16 %v1967_v38, %v1966_v35 }
 0x8ce   :  { %5426 = vmatpush3.bf16.msra.mxu0 %v5423_v36 }
 0x8cf   :  { %5428 = vmatprep.subr.bf16.mxu0 %v5427_v39 }
 0x8d2   :  { %5430 = vmatpush3.bf16.msra.mxu0 %v5427_v39 }
 0x99c   :  { %v4977_v43 = vpop.f32.mrb[12].mxu0 }
 0x99d   :  { %v1755_v46 = vadd.f32 %v4977_v43, %v4421_v42  ;;  %v1726_v48 = vpop.f32.mrb[13].mxu0 }
 0x99e   :  { %v1754_v49 = vadd.f32 %v4421_v42, %v1726_v48 }
 0x99f   :  { %v1759_v51 = vadd.f32 %v1755_v46, %v6206_v12 }
 0x9a0   :  { %v4980_v53 = vpop.f32.mrb[14].mxu0  ;;  %v1758_v55 = vadd.f32 %v1754_v49, %v6199_v8 }
 0x9a1   :  { %v1757_v30 = vadd.f32 %v4980_v53, %v4421_v42  ;;  %v1736_v41 = vpop.f32.mrb[15].mxu0  ;;  %v1767_v45 = vsel %vm43_vm0, %v1759_v51, 0.0 }
 0x9a2   :  { %v1756_v56 = vadd.f32 %v4421_v42, %v1736_v41  ;;  %1768 = vadd.xlane.f32.xlu0 %v1767_v45  ;;  %v1764_v57 = vsel %vm43_vm0, %v1758_v55, 0.0 }
 0x9a3   :  { %1765 = vadd.xlane.f32.xlu1 %v1764_v57  ;;  %v1761_v44 = vadd.f32 %v1757_v30, %v6217_v18  ;;  %v4422_v57 = vld [vmem:[%s7322_s3 + $0x41] ss:$0 sm:$0xff] }
 0x9a4   :  { %v1760_v54 = vadd.f32 %v1756_v56, %v6212_v17 }
 0x9a5   :  { %v1773_v58 = vsel %vm43_vm0, %v1761_v44, 0.0 }
 0x9a6   :  { %v1770_v12 = vsel %vm43_vm0, %v1760_v54, 0.0 }
 0x9a7   :  { %1774 = vadd.xlane.f32.xlu1 %v1773_v58  ;;  %1771 = vadd.xlane.f32.xlu0 %v1770_v12  ;;  %v4423_v12 = vld [vmem:[%s7322_s3 + $0x42] ss:$0 sm:$0xff] }
 0xa2f   :  { %v1769_v8 = vpop.xlane.xlu0 %1768 }
 0xa30   :  { %v1777_v59 = vmul.f32 0.015625, %v1769_v8  ;;  %v1766_v60 = vpop.xlane.xlu1 %1765 }
 0xa31   :  { %v1776_v34 = vmul.f32 0.015625, %v1766_v60 }
 0xa32   :  { %v6533_v26 = vsub.f32 %v1759_v51, %v1777_v59 }
 0xa33   :  { %v6535_v40 = vsub.f32 %v1758_v55, %v1776_v34 }
 0xa34   :  { %v1775_v61 = vpop.xlane.xlu1 %1774  ;;  %v1772_v62 = vpop.xlane.xlu0 %1771  ;;  %v1785_v18 = vmul.f32 %v6533_v26, %v6533_v26 }
 0xa35   :  { %v1779_v17 = vmul.f32 0.015625, %v1775_v61  ;;  %v1778_v63 = vmul.f32 0.015625, %v1772_v62  ;;  %v1784_v0 = vmul.f32 %v6535_v40, %v6535_v40 }
 0xa36   :  { %v1791_v1 = vsel %vm43_vm0, %v1785_v18, 0.0 }
 0xa37   :  { %v6542_v2 = vsub.f32 %v1761_v44, %v1779_v17  ;;  %v6544_v3 = vsub.f32 %v1760_v54, %v1778_v63  ;;  %1792 = vadd.xlane.f32.xlu1 %v1791_v1  ;;  %v1788_v47 = vsel %vm43_vm0, %v1784_v0, 0.0  ;;  %v1968_v1 = vld [vmem:[%s7324_s5 + $0x30] sm:$0xff] }
 0xa38   :  { %1789 = vadd.xlane.f32.xlu0 %v1788_v47  ;;  %v1970_v47 = vld [vmem:[%s7324_s5 + $0x40] sm:$0xff] }
 0xa39   :  { %v1787_v4 = vmul.f32 %v6542_v2, %v6542_v2  ;;  %v1786_v5 = vmul.f32 %v6544_v3, %v6544_v3 }
 0xa3b   :  { %v1797_v6 = vsel %vm43_vm0, %v1787_v4, 0.0  ;;  %v1794_v9 = vsel %vm43_vm0, %v1786_v5, 0.0  ;;  %v1971_v4 = vld [vmem:[%s7324_s5 + $0x48] sm:$0xff] }
 0xa3c   :  { %1798 = vadd.xlane.f32.xlu1 %v1797_v6  ;;  %1795 = vadd.xlane.f32.xlu0 %v1794_v9  ;;  %v5435_v5 = vpack.c.bf16 %v1971_v4, %v1970_v47  ;;  %v1972_v6 = vld [vmem:[%s7324_s5 + $0x50] sm:$0xff]  ;;  %v1973_v9 = vld [vmem:[%s7324_s5 + $0x58] sm:$0xff] }
 0xa3d   :  { %v5439_v10 = vpack.c.bf16 %v1973_v9, %v1972_v6 }
 0xac4   :  { %v1793_v33 = vpop.xlane.xlu1 %1792 }
 0xac5   :  { %v1801_v42 = vmul.f32 0.015625, %v1793_v33  ;;  %v1790_v43 = vpop.xlane.xlu0 %1789 }
 0xac6   :  { %v1800_v46 = vmul.f32 0.015625, %v1790_v43 }
 0xac7   :  { %v1805_v48 = vadd.f32 1e-05, %v1801_v42 }
 0xac8   :  { %v1804_v49 = vadd.f32 1e-05, %v1800_v46 }
 0xac9   :  { %5883 = vrsqrt.f32 %v1805_v48  ;;  %v1799_v51 = vpop.xlane.xlu1 %1798  ;;  %v1796_v53 = vpop.xlane.xlu0 %1795 }
 0xaca   :  { %5885 = vrsqrt.f32 %v1804_v49  ;;  %v1803_v55 = vmul.f32 0.015625, %v1799_v51  ;;  %v1802_v30 = vmul.f32 0.015625, %v1796_v53 }
 0xacc   :  { %v1807_v41 = vadd.f32 1e-05, %v1803_v55  ;;  %v1806_v45 = vadd.f32 1e-05, %v1802_v30 }
 0xace   :  { %5887 = vrsqrt.f32 %v1807_v41 }
 0xacf   :  { %5889 = vrsqrt.f32 %v1806_v45 }
 0xad3   :  { %v5884_v56 = vpop.eup %5883 }
 0xad4   :  { %v5886_v44 = vpop.eup %5885  ;;  %v1813_v54 = vmul.f32 %v5884_v56, %v6533_v26 }
 0xad5   :  { %v1812_v58 = vmul.f32 %v5886_v44, %v6535_v40 }
 0xad6   :  { %v1821_v8 = vmul.f32 %v4422_v57, %v1813_v54  ;;  %v4429_v54 = vld [vmem:[%s7324_s5 + $0x80] ss:$0 sm:$0xff] }
 0xad7   :  { %v1820_v59 = vmul.f32 %v4422_v57, %v1812_v58 }
 0xad8   :  { %v5888_v60 = vpop.eup %5887  ;;  %v6606_v18 = vadd.f32 %v4423_v12, %v1821_v8 }
 0xad9   :  { %v5890_v34 = vpop.eup %5889  ;;  %v6603_v61 = vadd.f32 %v4423_v12, %v1820_v59  ;;  %v1815_v62 = vmul.f32 %v5888_v60, %v6542_v2  ;;  %v1969_v2 = vld [vmem:[%s7324_s5 + $0x38] sm:$0xff] }
 0xada   :  { %v1814_v17 = vmul.f32 %v5890_v34, %v6544_v3  ;;  %v5431_v3 = vpack.c.bf16 %v1969_v2, %v1968_v1 }
 0xadb   :  { %4997 = vmatprep.mubr.msk.f32.mxu1 %vm43_vm0, %v6603_v61  ;;  %v1823_v26 = vmul.f32 %v4422_v57, %v1815_v62 }
 0xadc   :  { %4998 = vmatmul.mubr.msk.f32.vlgmr.msra.gmra.mrb[20].mxu1 %vm43_vm0, %v6606_v18  ;;  %v1822_v40 = vmul.f32 %v4422_v57, %v1814_v17  ;;  %5432 = vmatprep.subr.bf16.mxu0 %v5431_v3 }
 0xadd   :  { %v6613_v63 = vadd.f32 %v4423_v12, %v1823_v26  ;;  %5434 = vmatpush3.bf16.msra.mxu0 %v5431_v3 }
 0xade   :  { %v6615_v0 = vadd.f32 %v4423_v12, %v1822_v40  ;;  %5436 = vmatprep.subr.bf16.mxu0 %v5435_v5 }
 0xae0   :  { %5000 = vmatprep.mubr.msk.f32.mxu1 %vm43_vm0, %v6615_v0 }
 0xae1   :  { %5001 = vmatmul.mubr.msk.f32.gmra.mrb[22].mxu1 %vm43_vm0, %v6613_v63  ;;  %5438 = vmatpush3.bf16.msra.mxu0 %v5435_v5 }
 0xae2   :  { %2248 = vmatprep.mubr.f32.mxu1 %v6045_v50  ;;  %5440 = vmatprep.subr.bf16.mxu0 %v5439_v10 }
 0xae5   :  { %5442 = vmatpush3.bf16.msra.mxu0 %v5439_v10 }
 0xae6   :  { %5444 = vmatprep.subr.bf16.mxu0 %v5443_v16 }
 0xae9   :  { %5446 = vmatpush3.bf16.msra.mxu0 %v5443_v16 }
 0xaea   :  { %5448 = vmatprep.subr.bf16.mxu0 %v5447_v31 }
 0xaed   :  { %5450 = vmatpush3.bf16.msra.mxu0 %v5447_v31 }
 0xbaf   :  { %v4999_v23 = vpop.f32.mrb[20].mxu1 }
 0xbb0   :  { %v1929_v15 = vadd.f32 %v4999_v23, %v4424_v11  ;;  %v1923_v13 = vpop.f32.mrb[21].mxu1 }
 0xbb1   :  { %v1924_v25 = vadd.f32 %v4424_v11, %v1923_v13 }
 0xbb2   :  { %v1947_v27 = vmul.f32 0.70710677, %v1929_v15  ;;  %v1943_v48 = vmul.f32 0.5, %v1929_v15 }
 0xbb3   :  { %v1946_v19 = vmul.f32 0.70710677, %v1924_v25  ;;  %v1942_v43 = vmul.f32 0.5, %v1924_v25 }
 0xbb4   :  { %5891 = verf.f32 %v1947_v27  ;;  %v5002_v28 = vpop.f32.mrb[22].mxu1 }
 0xbb5   :  { %5893 = verf.f32 %v1946_v19  ;;  %v1939_v29 = vadd.f32 %v5002_v28, %v4424_v11  ;;  %v1933_v32 = vpop.f32.mrb[23].mxu1  ;;  %v4433_v28 = vld [vmem:[%s7321_s2 + $0x98] sm:$0xff] }
 0xbb6   :  { %v1934_v36 = vadd.f32 %v4424_v11, %v1933_v32  ;;  %v4432_v32 = vld [vmem:[%s7321_s2 + $0x90] sm:$0xff] }
 0xbb7   :  { %v1949_v35 = vmul.f32 0.70710677, %v1939_v29  ;;  %v1945_v56 = vmul.f32 0.5, %v1939_v29  ;;  %v4435_v29 = vld [vmem:[%s7321_s2 + $0xa8] sm:$0xff] }
 0xbb8   :  { %v1948_v38 = vmul.f32 0.70710677, %v1934_v36  ;;  %v1944_v41 = vmul.f32 0.5, %v1934_v36  ;;  %v4434_v36 = vld [vmem:[%s7321_s2 + $0xa0] sm:$0xff] }
 0xbb9   :  { %5895 = verf.f32 %v1949_v35  ;;  %v5451_v35 = vpack.c.bf16 %v4435_v29, %v4433_v28 }
 0xbba   :  { %5897 = verf.f32 %v1948_v38  ;;  %v5453_v38 = vpack.c.bf16 %v4434_v36, %v4432_v32 }
 0xbbb   :  { %5452 = vmatprep.subr.bf16.mxu1 %v5451_v35 }
 0xbbc   :  { %5454 = vmatpush1.bf16.msra.mxu1 %v5453_v38 }
 0xbbe   :  { %v5892_v39 = vpop.eup %5891 }
 0xbbf   :  { %v5894_v33 = vpop.eup %5893  ;;  %v1955_v42 = vadd.f32 1.0, %v5892_v39  ;;  %v4437_v39 = vld [vmem:[%s7321_s2 + $0xb8] sm:$0xff] }
 0xbc0   :  { %v1954_v46 = vadd.f32 1.0, %v5894_v33  ;;  %v4439_v33 = vld [vmem:[%s7321_s2 + $0xc8] sm:$0xff] }
 0xbc1   :  { %v1959_v53 = vmul.f32 %v1955_v42, %v1943_v48  ;;  %v5455_v42 = vpack.c.bf16 %v4439_v33, %v4437_v39 }
 0xbc2   :  { %v1958_v49 = vmul.f32 %v1954_v46, %v1942_v43  ;;  %v4436_v43 = vld [vmem:[%s7321_s2 + $0xb0] sm:$0xff]  ;;  %v4438_v46 = vld [vmem:[%s7321_s2 + $0xc0] sm:$0xff] }
 0xbc3   :  { %v5896_v51 = vpop.eup %5895  ;;  %v5457_v48 = vpack.c.bf16 %v4438_v46, %v4436_v43  ;;  %5456 = vmatprep.subr.bf16.mxu1 %v5455_v42 }
 0xbc4   :  { %v5898_v55 = vpop.eup %5897  ;;  %v1957_v30 = vadd.f32 1.0, %v5896_v51  ;;  %5035 = vmatprep.mubr.f32.mxu0 %v1958_v49  ;;  %v4441_v49 = vld [vmem:[%s7321_s2 + $0xd8] sm:$0xff]  ;;  %v4443_v51 = vld [vmem:[%s7321_s2 + $0xe8] sm:$0xff] }
 0xbc5   :  { %v1956_v45 = vadd.f32 1.0, %v5898_v55  ;;  %5036 = vmatmul.mubr.f32.vlgmr.msra.gmra.mrb[24].mxu0 %v1959_v53  ;;  %5458 = vmatpush1.bf16.msra.mxu1 %v5457_v48  ;;  %v5459_v53 = vpack.c.bf16 %v4443_v51, %v4441_v49  ;;  %v4440_v55 = vld [vmem:[%s7321_s2 + $0xd0] sm:$0xff] }
 0xbc6   :  { %v1961_v44 = vmul.f32 %v1957_v30, %v1945_v56  ;;  %v4442_v30 = vld [vmem:[%s7321_s2 + $0xe0] sm:$0xff]  ;;  %v4447_v56 = vld [vmem:[%s7321_s2 + $0x108] sm:$0xff] }
 0xbc7   :  { %v1960_v57 = vmul.f32 %v1956_v45, %v1944_v41  ;;  %v5461_v41 = vpack.c.bf16 %v4442_v30, %v4440_v55  ;;  %5460 = vmatprep.subr.bf16.mxu1 %v5459_v53  ;;  %v4445_v45 = vld [vmem:[%s7321_s2 + $0xf8] sm:$0xff] }
 0xbc9   :  { %5038 = vmatprep.mubr.f32.mxu0 %v1960_v57  ;;  %5462 = vmatpush1.bf16.msra.mxu1 %v5461_v41  ;;  %v5463_v57 = vpack.c.bf16 %v4447_v56, %v4445_v45 }
 0xbca   :  { %5039 = vmatmul.mubr.f32.gmra.mrb[26].mxu0 %v1961_v44  ;;  %v4444_v44 = vld [vmem:[%s7321_s2 + $0xf0] sm:$0xff] }
 0xbcb   :  { %5464 = vmatprep.subr.bf16.mxu1 %v5463_v57 }
 0xc98   :  { %v5037_v58 = vpop.f32.mrb[24].mxu0 }
 0xc99   :  { %v2055_v12 = vadd.f32 %v5037_v58, %v4429_v54  ;;  %v2049_v8 = vpop.f32.mrb[25].mxu0 }
 0xc9a   :  { %v2050_v59 = vadd.f32 %v4429_v54, %v2049_v8 }
 0xc9b   :  { %v2069_v60 = vadd.f32 %v2055_v12, %v6606_v18 }
 0xc9c   :  { %v2068_v34 = vadd.f32 %v2050_v59, %v6603_v61 }
 0xc9d   :  { %v5040_v62 = vpop.f32.mrb[26].mxu0  ;;  %v2077_v17 = vsel %vm43_vm0, %v2069_v60, 0.0 }
 0xc9e   :  { %v2065_v26 = vadd.f32 %v5040_v62, %v4429_v54  ;;  %v2059_v40 = vpop.f32.mrb[27].mxu0  ;;  %2078 = vadd.xlane.f32.xlu1 %v2077_v17  ;;  %v2074_v1 = vsel %vm43_vm0, %v2068_v34, 0.0 }
 0xc9f   :  { %v2060_v2 = vadd.f32 %v4429_v54, %v2059_v40  ;;  %2075 = vadd.xlane.f32.xlu0 %v2074_v1  ;;  %v4446_v54 = vld [vmem:[%s7321_s2 + $0x100] sm:$0xff] }
 0xca0   :  { %v2071_v3 = vadd.f32 %v2065_v26, %v6613_v63  ;;  %v5465_v58 = vpack.c.bf16 %v4446_v54, %v4444_v44 }
 0xca1   :  { %v2070_v47 = vadd.f32 %v2060_v2, %v6615_v0 }
 0xca2   :  { %v2083_v4 = vsel %vm43_vm0, %v2071_v3, 0.0  ;;  %5466 = vmatpush1.bf16.msra.mxu1 %v5465_v58 }
 0xca3   :  { %2084 = vadd.xlane.f32.xlu1 %v2083_v4  ;;  %v2080_v18 = vsel %vm43_vm0, %v2070_v47, 0.0 }
 0xca4   :  { %2081 = vadd.xlane.f32.xlu0 %v2080_v18  ;;  %v4430_v18 = vld [vmem:[%s7324_s5 + $0x81] ss:$0 sm:$0xff] }
 0xd2b   :  { %v2079_v61 = vpop.xlane.xlu1 %2078 }
 0xd2c   :  { %v2087_v5 = vmul.f32 0.015625, %v2079_v61  ;;  %v2076_v6 = vpop.xlane.xlu0 %2075 }
 0xd2d   :  { %v2086_v9 = vmul.f32 0.015625, %v2076_v6  ;;  %v4431_v6 = vld [vmem:[%s7324_s5 + $0x82] ss:$0 sm:$0xff] }
 0xd2e   :  { %v6666_v10 = vsub.f32 %v2069_v60, %v2087_v5 }
 0xd2f   :  { %v6668_v14 = vsub.f32 %v2068_v34, %v2086_v9 }
 0xd30   :  { %v2085_v7 = vpop.xlane.xlu1 %2084  ;;  %v2095_v63 = vmul.f32 %v6666_v10, %v6666_v10 }
 0xd31   :  { %v2089_v16 = vmul.f32 0.015625, %v2085_v7  ;;  %v2082_v0 = vpop.xlane.xlu0 %2081  ;;  %v2094_v37 = vmul.f32 %v6668_v14, %v6668_v14 }
 0xd32   :  { %v2088_v22 = vmul.f32 0.015625, %v2082_v0  ;;  %v2101_v31 = vsel %vm43_vm0, %v2095_v63, 0.0 }
 0xd33   :  { %v6675_v11 = vsub.f32 %v2071_v3, %v2089_v16  ;;  %2102 = vadd.xlane.f32.xlu1 %v2101_v31  ;;  %v2098_v23 = vsel %vm43_vm0, %v2094_v37, 0.0 }
 0xd34   :  { %v6678_v15 = vsub.f32 %v2070_v47, %v2088_v22  ;;  %2099 = vadd.xlane.f32.xlu0 %v2098_v23 }
 0xd35   :  { %v2097_v13 = vmul.f32 %v6675_v11, %v6675_v11 }
 0xd36   :  { %v2096_v25 = vmul.f32 %v6678_v15, %v6678_v15 }
 0xd37   :  { %v2107_v27 = vsel %vm43_vm0, %v2097_v13, 0.0 }
 0xd38   :  { %2108 = vadd.xlane.f32.xlu1 %v2107_v27  ;;  %v2104_v19 = vsel %vm43_vm0, %v2096_v25, 0.0 }
 0xd39   :  { %2105 = vadd.xlane.f32.xlu0 %v2104_v19 }
 0xdc0   :  { %v2103_v12 = vpop.xlane.xlu1 %2102 }
 0xdc1   :  { %v2111_v8 = vmul.f32 0.015625, %v2103_v12  ;;  %v2100_v59 = vpop.xlane.xlu0 %2099 }
 0xdc2   :  { %v2110_v60 = vmul.f32 0.015625, %v2100_v59 }
 0xdc3   :  { %v2115_v34 = vadd.f32 1e-05, %v2111_v8 }
 0xdc4   :  { %v2114_v62 = vadd.f32 1e-05, %v2110_v60 }
 0xdc5   :  { %5899 = vrsqrt.f32 %v2115_v34  ;;  %v2109_v17 = vpop.xlane.xlu1 %2108 }
 0xdc6   :  { %5901 = vrsqrt.f32 %v2114_v62  ;;  %v2113_v26 = vmul.f32 0.015625, %v2109_v17  ;;  %v2106_v40 = vpop.xlane.xlu0 %2105 }
 0xdc7   :  { %v2112_v1 = vmul.f32 0.015625, %v2106_v40 }
 0xdc8   :  { %v2117_v2 = vadd.f32 1e-05, %v2113_v26 }
 0xdc9   :  { %v2116_v3 = vadd.f32 1e-05, %v2112_v1 }
 0xdcb   :  { %5903 = vrsqrt.f32 %v2116_v3 }
 0xdcc   :  { %5905 = vrsqrt.f32 %v2117_v2 }
 0xdcf   :  { %v5900_v47 = vpop.eup %5899 }
 0xdd0   :  { %v5902_v4 = vpop.eup %5901  ;;  %v2123_v5 = vmul.f32 %v5900_v47, %v6666_v10 }
 0xdd1   :  { %v2122_v61 = vmul.f32 %v5902_v4, %v6668_v14 }
 0xdd2   :  { %v2131_v16 = vmul.f32 %v4430_v18, %v2123_v5 }
 0xdd3   :  { %v2130_v9 = vmul.f32 %v4430_v18, %v2122_v61 }
 0xdd4   :  { %v6748_v14 = vadd.f32 %v4431_v6, %v2131_v16 }
 0xdd5   :  { %v5904_v7 = vpop.eup %5903  ;;  %v6742_v63 = vadd.f32 %v4431_v6, %v2130_v9 }
 0xdd6   :  { %v5906_v0 = vpop.eup %5905  ;;  %v2124_v37 = vmul.f32 %v5904_v7, %v6678_v15 }
 0xdd7   :  { %4449 = vmatmul.mubr.msk.f32.vlgmr.msra.gmra.mrb[24].mxu1 %vm43_vm0, %v6742_v63  ;;  %v2125_v22 = vmul.f32 %v5906_v0, %v6675_v11  ;;  %v4448_v11 = vld [vmem:[%s7321_s2 + $0x110] ss:$8 sm:$0x3] }
 0xdd8   :  { %2254 = vmatprep.mubr.f32.mxu1 %v6045_v50  ;;  %v2132_v10 = vmul.f32 %v4430_v18, %v2124_v37  ;;  %v2165_v13 = vrot.slane %v4448_v11, %v134_v21  ;;  %v2169_v28 = vrot.slane %v4448_v11, %v138_v24 }
 0xdd9   :  { %v2133_v23 = vmul.f32 %v4430_v18, %v2125_v22 }
 0xdda   :  { %v6754_v31 = vadd.f32 %v4431_v6, %v2132_v10 }
 0xddb   :  { %4450 = vmatmul.mubr.msk.f32.gmra.mrb[26].mxu1 %vm43_vm0, %v6748_v14  ;;  %v6759_v15 = vadd.f32 %v4431_v6, %v2133_v23 }
 0xddc   :  { %2260 = vmatprep.mubr.f32.mxu1 %v6045_v50 }
 0xddf   :  { %4451 = vmatmul.mubr.msk.f32.gmra.mrb[28].mxu1 %vm43_vm0, %v6754_v31 }
 0xde0   :  { %2266 = vmatprep.mubr.f32.mxu1 %v6045_v50 }
 0xde3   :  { %4452 = vmatmul.mubr.msk.f32.gmra.mrb[30].mxu1 %vm43_vm0, %v6759_v15 }
 0xeaa   :  { %v2250_v25 = vpop.f32.mrb[24].mxu1 }
 0xeab   :  { %v6768_v27 = vadd.f32 %v2250_v25, %v2165_v13  ;;  %v2252_v19 = vpop.f32.mrb[25].mxu1 }
 0xeac   :  { %v2253_v35 = vadd.f32 %v2252_v19, %v2169_v28  ;;  %v6861_v19 = vld [vmem:[%s7320_s1 + $0x8] sm:$0xff] }
 0xead   :  { %5049 = vmatprep.mubr.msk.f32.mxu1 %vm263_vm1, %v6768_v27 }
 0xeae   :  { %v2256_v29 = vpop.f32.mrb[26].mxu1 }
 0xeaf   :  { %v6774_v32 = vadd.f32 %v2256_v29, %v2165_v13  ;;  %v2258_v36 = vpop.f32.mrb[27].mxu1 }
 0xeb0   :  { %v2259_v38 = vadd.f32 %v2258_v36, %v2169_v28  ;;  %v6867_v36 = vld [vmem:[%s7320_s1] sm:$0xff] }
 0xeb1   :  { %v6778_v39 = vpack.i.bf16 %v6774_v32, %v6768_v27 }
 0xeb2   :  { %v2262_v21 = vpop.f32.mrb[28].mxu1  ;;  %v5479_v33 = vpack.c.bf16 %v2259_v38, %v2253_v35  ;;  %v6780_v42 = vpack.i.bf16 %v2259_v38, %v2253_v35 }
 0xeb3   :  { %5742 = vrot.lane.b32.xlu0 %v6778_v39, %s6046_s11  ;;  %v2264_v20 = vpop.f32.mrb[29].mxu1  ;;  %v6784_v43 = vadd.f32 %v2262_v21, %v2165_v13 }
 0xeb4   :  { %5480 = vmatprep.subr.bf16.mxu0 %v5479_v33  ;;  %v2265_v49 = vadd.f32 %v2264_v20, %v2169_v28 }
 0xeb5   :  { %5482 = vmatpush3.bf16.msra.mxu0 %v5479_v33 }
 0xeb6   :  { %v2268_v24 = vpop.f32.mrb[30].mxu1 }
 0xeb7   :  { %v6786_v46 = vadd.f32 %v2268_v24, %v2165_v13  ;;  %2544 = vrot.lane.b32.xlu0 %v6768_v27, %s6047_s12  ;;  %v2270_v48 = vpop.f32.mrb[31].mxu1 }
 0xeb8   :  { %v2271_v51 = vadd.f32 %v2270_v48, %v2169_v28  ;;  %v6875_v48 = vld [vmem:[%s7320_s1 + $0x18] sm:$0xff] }
 0xeb9   :  { %v6792_v53 = vpack.i.bf16 %v6786_v46, %v6784_v43 }
 0xeba   :  { %v5483_v55 = vpack.c.bf16 %v2271_v51, %v2265_v49  ;;  %v6794_v30 = vpack.i.bf16 %v2271_v51, %v2265_v49 }
 0xebb   :  { %2548 = vrot.lane.b32.xlu0 %v6784_v43, %s6047_s12  ;;  %5747 = vrot.lane.b32.xlu1 %v6792_v53, %s6046_s11 }
 0xebc   :  { %5484 = vmatprep.subr.bf16.mxu0 %v5483_v55 }
 0xebd   :  { %5486 = vmatpush3.bf16.msra.mxu0 %v5483_v55  ;;  %v6882_v55 = vld [vmem:[%s7320_s1 + $0x10] sm:$0xff] }
 0xebf   :  { %5762 = vrot.lane.b32.xlu0 %v6778_v39, %s6049_s21  ;;  %5752 = vrot.lane.b32.xlu1 %v6778_v39, %s6048_s13 }
 0xec3   :  { %3020 = vrot.lane.b32.xlu0 %v6768_v27, %s6050_s22  ;;  %5757 = vrot.lane.b32.xlu1 %v6792_v53, %s6048_s13 }
 0xec7   :  { %3024 = vrot.lane.b32.xlu0 %v6784_v43, %s6050_s22  ;;  %2546 = vrot.lane.b32.xlu1 %v6774_v32, %s6047_s12 }
 0xecb   :  { %2550 = vrot.lane.b32.xlu1 %v6786_v46, %s6047_s12 }
 0xecf   :  { %5767 = vrot.lane.b32.xlu1 %v6792_v53, %s6049_s21 }
 0xed3   :  { %3022 = vrot.lane.b32.xlu1 %v6774_v32, %s6050_s22 }
 0xed7   :  { %3026 = vrot.lane.b32.xlu1 %v6786_v46, %s6050_s22 }
 0xf25   :  { %v5743_v41 = vpop.permute.xlu0 %5742 }
 0xf26   :  { %v5745_v45 = vunpack.i.h.bf16 %v5743_v41  ;;  %v5744_v56 = vunpack.i.l.bf16 %v5743_v41 }
 0xf28   :  { %v5467_v57 = vpack.c.bf16 %v5745_v45, %v5744_v56 }
 0xf29   :  { %v2545_v12 = vpop.permute.xlu0 %2544 }
 0xf2a   :  { %5469 = vmatprep.subr.msk.bf16.mxu1 %vm6272_vm2, %v5467_v57 }
 0xf2b   :  { %5472 = vmatpush3.bf16.xpose.msk.msra.mxu1 %vm6272_vm2, %v5467_v57 }
 0xf2d   :  { %v5748_v44 = vpop.permute.xlu1 %5747  ;;  %v2549_v17 = vpop.permute.xlu0 %2548 }
 0xf2e   :  { %v5750_v54 = vunpack.i.h.bf16 %v5748_v44  ;;  %v5749_v58 = vunpack.i.l.bf16 %v5748_v44 }
 0xf30   :  { %v5473_v8 = vpack.c.bf16 %v5750_v54, %v5749_v58 }
 0xf31   :  { %v5753_v59 = vpop.permute.xlu1 %5752  ;;  %v5763_v47 = vpop.permute.xlu0 %5762 }
 0xf32   :  { %v5755_v60 = vunpack.i.h.bf16 %v5753_v59  ;;  %v5754_v34 = vunpack.i.l.bf16 %v5753_v59  ;;  %5475 = vmatprep.subr.msk.bf16.mxu1 %vm6272_vm2, %v5473_v8  ;;  %v5765_v18 = vunpack.i.h.bf16 %v5763_v47  ;;  %v5764_v61 = vunpack.i.l.bf16 %v5763_v47 }
 0xf33   :  { %5478 = vmatpush3.bf16.xpose.msk.msra.mxu1 %vm6272_vm2, %v5473_v8 }
 0xf34   :  { %v5487_v62 = vpack.c.bf16 %v5755_v60, %v5754_v34  ;;  %v5515_v5 = vpack.c.bf16 %v5765_v18, %v5764_v61 }
 0xf35   :  { %v5758_v26 = vpop.permute.xlu1 %5757  ;;  %v3021_v0 = vpop.permute.xlu0 %3020 }
 0xf36   :  { %v5760_v40 = vunpack.i.h.bf16 %v5758_v26  ;;  %v5759_v1 = vunpack.i.l.bf16 %v5758_v26  ;;  %5489 = vmatprep.subr.msk.bf16.mxu1 %vm6272_vm2, %v5487_v62 }
 0xf38   :  { %v5493_v3 = vpack.c.bf16 %v5760_v40, %v5759_v1 }
 0xf39   :  { %v2547_v2 = vpop.permute.xlu1 %2546  ;;  %v3025_v10 = vpop.permute.xlu0 %3024 }
 0xf3a   :  { %5050 = vmatmul.mubr.msk.f32.vlgmr.msra.gmra.mrb[32].mxu1 %vm263_vm1, %v6774_v32 }
 0xf3b   :  { %5052 = vmatprep.mubr.msk.f32.mxu1 %vm263_vm1, %v6784_v43  ;;  %5492 = vmatpush3.bf16.xpose.msk.msra.mxu1 %vm6272_vm2, %v5487_v62 }
 0xf3c   :  { %5495 = vmatprep.subr.msk.bf16.mxu1 %vm6272_vm2, %v5493_v3 }
 0xf3d   :  { %v2551_v4 = vpop.permute.xlu1 %2550 }
 0xf3e   :  { %5053 = vmatmul.mubr.msk.f32.gmra.mrb[34].mxu1 %vm263_vm1, %v6786_v46 }
 0xf3f   :  { %5077 = vmatprep.mubr.msk.f32.mxu1 %vm263_vm1, %v2545_v12 }
 0xf41   :  { %v5768_v6 = vpop.permute.xlu1 %5767 }
 0xf42   :  { %v5770_v9 = vunpack.i.h.bf16 %v5768_v6  ;;  %v5769_v7 = vunpack.i.l.bf16 %v5768_v6 }
 0xf43   :  { %5498 = vmatpush3.bf16.xpose.msk.msra.mxu1 %vm6272_vm2, %v5493_v3 }
 0xf44   :  { %5517 = vmatprep.subr.msk.bf16.mxu1 %vm6272_vm2, %v5515_v5  ;;  %v5521_v16 = vpack.c.bf16 %v5770_v9, %v5769_v7 }
 0xf45   :  { %v3023_v37 = vpop.permute.xlu1 %3022 }
 0xf49   :  { %v3027_v22 = vpop.permute.xlu1 %3026 }
 0xf4a   :  { %5078 = vmatmul.mubr.msk.f32.vlgmr.msra.gmra.mrb[36].mxu1 %vm263_vm1, %v2547_v2 }
 0xf4b   :  { %5080 = vmatprep.mubr.msk.f32.mxu1 %vm263_vm1, %v2549_v17  ;;  %5520 = vmatpush3.bf16.xpose.msk.msra.mxu1 %vm6272_vm2, %v5515_v5 }
 0xf4c   :  { %5523 = vmatprep.subr.msk.bf16.mxu1 %vm6272_vm2, %v5521_v16 }
 0xf4e   :  { %5081 = vmatmul.mubr.msk.f32.gmra.mrb[38].mxu1 %vm263_vm1, %v2551_v4 }
 0xf4f   :  { %5125 = vmatprep.mubr.msk.f32.mxu1 %vm263_vm1, %v3021_v0 }
 0xf53   :  { %5526 = vmatpush3.bf16.xpose.msk.msra.mxu1 %vm6272_vm2, %v5521_v16 }
 0xf5a   :  { %5126 = vmatmul.mubr.msk.f32.vlgmr.msra.gmra.mrb[40].mxu1 %vm263_vm1, %v3023_v37 }
 0xf5b   :  { %5128 = vmatprep.mubr.msk.f32.mxu1 %vm263_vm1, %v3025_v10 }
 0xf5e   :  { %5129 = vmatmul.mubr.msk.f32.gmra.mrb[42].mxu1 %vm263_vm1, %v3027_v22 }
0x100d   :  { %v5051_v23 = vpop.f32.mrb[32].mxu1 }
0x100e   :  { %v2396_v11 = vmul.f32 0.25, %v5051_v23  ;;  %v2376_v13 = vpop.f32.mrb[33].mxu1 }
0x100f   :  { %v2395_v25 = vmul.f32 0.25, %v2376_v13 }
0x1010   :  { %v2400_v28 = vadd.f32 %v6861_v19, %v2396_v11 }
0x1011   :  { %v5054_v29 = vpop.f32.mrb[34].mxu1  ;;  %v2399_v35 = vadd.f32 %v6867_v36, %v2395_v25 }
0x1012   :  { %v2398_v38 = vmul.f32 0.25, %v5054_v29  ;;  %v2386_v21 = vpop.f32.mrb[35].mxu1  ;;  %v2406_v33 = vsel %vm373_vm3, %v2400_v28, -inf }
0x1013   :  { %v2397_v20 = vmul.f32 0.25, %v2386_v21  ;;  %2407 = vmax.xlane.f32.xlu1 %v2406_v33  ;;  %v2403_v24 = vsel %vm373_vm3, %v2399_v35, -inf }
0x1014   :  { %2404 = vmax.xlane.f32.xlu0 %v2403_v24  ;;  %v2402_v49 = vadd.f32 %v6875_v48, %v2398_v38 }
0x1015   :  { %v2401_v41 = vadd.f32 %v6882_v55, %v2397_v20 }
0x1016   :  { %v2412_v51 = vsel %vm373_vm3, %v2402_v49, -inf }
0x1017   :  { %v2409_v45 = vsel %vm373_vm3, %v2401_v41, -inf }
0x1018   :  { %2413 = vmax.xlane.f32.xlu0 %v2412_v51 }
0x101c   :  { %2410 = vmax.xlane.f32.xlu0 %v2409_v45 }
0x101d   :  { %v5079_v56 = vpop.f32.mrb[36].mxu1 }
0x101e   :  { %v2662_v57 = vmul.f32 0.25, %v5079_v56  ;;  %v2642_v44 = vpop.f32.mrb[37].mxu1 }
0x101f   :  { %v2661_v54 = vmul.f32 0.25, %v2642_v44 }
0x1020   :  { %v2666_v58 = vadd.f32 %v6861_v19, %v2662_v57 }
0x1021   :  { %v2665_v12 = vadd.f32 %v6867_v36, %v2661_v54  ;;  %v5082_v8 = vpop.f32.mrb[38].mxu1 }
0x1022   :  { %v2664_v59 = vmul.f32 0.25, %v5082_v8  ;;  %v2652_v60 = vpop.f32.mrb[39].mxu1  ;;  %v2672_v34 = vsel %vm373_vm3, %v2666_v58, -inf }
0x1023   :  { %v2663_v62 = vmul.f32 0.25, %v2652_v60  ;;  %2673 = vmax.xlane.f32.xlu1 %v2672_v34  ;;  %v2669_v17 = vsel %vm373_vm3, %v2665_v12, -inf }
0x1024   :  { %v2668_v26 = vadd.f32 %v6875_v48, %v2664_v59  ;;  %2670 = vmax.xlane.f32.xlu0 %v2669_v17 }
0x1025   :  { %v2667_v40 = vadd.f32 %v6882_v55, %v2663_v62 }
0x1026   :  { %v2678_v1 = vsel %vm373_vm3, %v2668_v26, -inf }
0x1027   :  { %2679 = vmax.xlane.f32.xlu1 %v2678_v1  ;;  %v2675_v2 = vsel %vm373_vm3, %v2667_v40, -inf }
0x1028   :  { %2676 = vmax.xlane.f32.xlu0 %v2675_v2 }
0x102d   :  { %v6894_v3 = vpop.f32.mrb[40].mxu1 }
0x102e   :  { %v6896_v47 = vpop.f32.mrb[41].mxu1 }
0x1031   :  { %v6898_v4 = vpop.f32.mrb[42].mxu1 }
0x1032   :  { %v6900_v18 = vpop.f32.mrb[43].mxu1 }
0x1033   :  { %v3139_v2 = vmul.f32 0.25, %v6900_v18 }
0x10a0   :  { %v2408_v61 = vpop.xlane.xlu1 %2407 }
0x10a1   :  { %v2416_v5 = vsub.f32 %v2400_v28, %v2408_v61  ;;  %v2405_v6 = vpop.xlane.xlu0 %2404  ;;  %v6958_v61 = vadd.f32 %v6882_v55, %v3139_v2 }
0x10a2   :  { %v2415_v9 = vsub.f32 %v2399_v35, %v2405_v6 }
0x10a3   :  { %v2421_v7 = vmul.f32 1.442695, %v2416_v5 }
0x10a4   :  { %v2419_v16 = vmul.f32 1.442695, %v2415_v9 }
0x10a5   :  { %5907 = vpow2.f32 %v2421_v7  ;;  %v2414_v0 = vpop.xlane.xlu0 %2413 }
0x10a6   :  { %5909 = vpow2.f32 %v2419_v16  ;;  %v2418_v37 = vsub.f32 %v2402_v49, %v2414_v0 }
0x10a8   :  { %v2425_v10 = vmul.f32 1.442695, %v2418_v37 }
0x10a9   :  { %v2411_v22 = vpop.xlane.xlu0 %2410 }
0x10aa   :  { %5911 = vpow2.f32 %v2425_v10  ;;  %v2417_v23 = vsub.f32 %v2401_v41, %v2411_v22 }
0x10ac   :  { %v2423_v11 = vmul.f32 1.442695, %v2417_v23 }
0x10ae   :  { %5913 = vpow2.f32 %v2423_v11 }
0x10af   :  { %v6902_v13 = vpop.eup %5907 }
0x10b0   :  { %v6904_v25 = vpop.eup %5909  ;;  %v2674_v29 = vpop.xlane.xlu1 %2673  ;;  %v2430_v28 = vsel %vm373_vm3, %v6902_v13, 0.0 }
0x10b1   :  { %v2682_v35 = vsub.f32 %v2666_v58, %v2674_v29  ;;  %2431 = vadd.xlane.f32.xlu1 %v2430_v28  ;;  %v2671_v38 = vpop.xlane.xlu0 %2670  ;;  %v2427_v21 = vsel %vm373_vm3, %v6904_v25, 0.0 }
0x10b2   :  { %v2681_v33 = vsub.f32 %v2665_v12, %v2671_v38  ;;  %2428 = vadd.xlane.f32.xlu0 %v2427_v21 }
0x10b3   :  { %v2687_v20 = vmul.f32 1.442695, %v2682_v35 }
0x10b4   :  { %v6910_v24 = vpop.eup %5911  ;;  %v2685_v49 = vmul.f32 1.442695, %v2681_v33  ;;  %v2680_v51 = vpop.xlane.xlu1 %2679 }
0x10b5   :  { %5915 = vpow2.f32 %v2687_v20  ;;  %v2684_v41 = vsub.f32 %v2668_v26, %v2680_v51  ;;  %v2677_v45 = vpop.xlane.xlu0 %2676  ;;  %v2436_v56 = vsel %vm373_vm3, %v6910_v24, 0.0 }
0x10b6   :  { %5917 = vpow2.f32 %v2685_v49  ;;  %v2683_v57 = vsub.f32 %v2667_v40, %v2677_v45  ;;  %2437 = vadd.xlane.f32.xlu1 %v2436_v56 }
0x10b7   :  { %v2691_v44 = vmul.f32 1.442695, %v2684_v41 }
0x10b8   :  { %v6914_v54 = vpop.eup %5913  ;;  %v2689_v58 = vmul.f32 1.442695, %v2683_v57 }
0x10b9   :  { %5919 = vpow2.f32 %v2691_v44  ;;  %v2433_v12 = vsel %vm373_vm3, %v6914_v54, 0.0 }
0x10ba   :  { %5921 = vpow2.f32 %v2689_v58  ;;  %2434 = vadd.xlane.f32.xlu0 %v2433_v12 }
0x10bf   :  { %v6918_v8 = vpop.eup %5915 }
0x10c0   :  { %v6920_v59 = vpop.eup %5917  ;;  %v2696_v60 = vsel %vm373_vm3, %v6918_v8, 0.0 }
0x10c1   :  { %2697 = vadd.xlane.f32.xlu1 %v2696_v60  ;;  %v2693_v34 = vsel %vm373_vm3, %v6920_v59, 0.0 }
0x10c2   :  { %2694 = vadd.xlane.f32.xlu0 %v2693_v34 }
0x10c3   :  { %v6926_v62 = vpop.eup %5919 }
0x10c4   :  { %v6928_v17 = vpop.eup %5921  ;;  %v2702_v26 = vsel %vm373_vm3, %v6926_v62, 0.0 }
0x10c5   :  { %2703 = vadd.xlane.f32.xlu1 %v2702_v26  ;;  %v2699_v40 = vsel %vm373_vm3, %v6928_v17, 0.0 }
0x10c6   :  { %2700 = vadd.xlane.f32.xlu0 %v2699_v40 }
0x10d6   :  { %5777 = vrot.lane.b32.xlu1 %v6794_v30, %s6047_s12 }
0x10da   :  { %5782 = vrot.lane.b32.xlu1 %v6778_v39, %s6051_s23  ;;  %v3137_v39 = vmul.f32 0.25, %v6896_v47  ;;  %v3151_v47 = vsel %vm373_vm3, %v6958_v61, -inf }
0x10dc   :  { %5772 = vrot.lane.b32.xlu0 %v6780_v42, %s6047_s12  ;;  %v6952_v1 = vadd.f32 %v6867_v36, %v3137_v39 }
0x10de   :  { %5787 = vrot.lane.b32.xlu1 %v6792_v53, %s6051_s23  ;;  %v3138_v53 = vmul.f32 0.25, %v6894_v3 }
0x10e0   :  { %3399 = vrot.lane.b32.xlu0 %v6768_v27, %s6052_s24  ;;  %v3140_v27 = vmul.f32 0.25, %v6898_v4 }
0x10e2   :  { %3401 = vrot.lane.b32.xlu1 %v6774_v32, %s6052_s24  ;;  %v3145_v32 = vsel %vm373_vm3, %v6952_v1, -inf }
0x10e4   :  { %3403 = vrot.lane.b32.xlu0 %v6784_v43, %s6052_s24  ;;  %v6963_v43 = vadd.f32 %v6861_v19, %v3138_v53 }
0x10e6   :  { %3405 = vrot.lane.b32.xlu1 %v6786_v46, %s6052_s24  ;;  %v6966_v46 = vadd.f32 %v6875_v48, %v3140_v27  ;;  %v3148_v3 = vsel %vm373_vm3, %v6963_v43, -inf }
0x10e8   :  { %v3154_v4 = vsel %vm373_vm3, %v6966_v46, -inf }
0x1103   :  { %3146 = vmax.xlane.f32.xlu0 %v3145_v32 }
0x1107   :  { %3152 = vmax.xlane.f32.xlu0 %v3151_v47 }
0x110a   :  { %3149 = vmax.xlane.f32.xlu1 %v3148_v3 }
0x110b   :  { %3155 = vmax.xlane.f32.xlu0 %v3154_v4 }
0x113e   :  { %v2432_v18 = vpop.xlane.xlu1 %2431 }
0x113f   :  { %5923 = vrcp.f32 %v2432_v18  ;;  %v2429_v5 = vpop.xlane.xlu0 %2428 }
0x1140   :  { %5925 = vrcp.f32 %v2429_v5 }
0x1143   :  { %v2438_v6 = vpop.xlane.xlu1 %2437 }
0x1144   :  { %5927 = vrcp.f32 %v2438_v6 }
0x1147   :  { %v2435_v9 = vpop.xlane.xlu0 %2434 }
0x1148   :  { %5929 = vrcp.f32 %v2435_v9 }
0x1149   :  { %v5924_v7 = vpop.eup %5923 }
0x114a   :  { %v5926_v16 = vpop.eup %5925  ;;  %v2442_v37 = vmul.f32 %v5924_v7, %v6902_v13 }
0x114b   :  { %v2440_v0 = vmul.f32 %v5926_v16, %v6904_v25 }
0x114d   :  { %5063 = vmatprep.mubr.msk.f32.mxu0 %vm373_vm3, %v2440_v0 }
0x114e   :  { %v2698_v10 = vpop.xlane.xlu1 %2697  ;;  %5064 = vmatmul.mubr.msk.f32.vlgmr.msra.gmra.mrb[28].mxu0 %vm373_vm3, %v2442_v37  ;;  %v5928_v23 = vpop.eup %5927 }
0x114f   :  { %v2695_v22 = vpop.xlane.xlu0 %2694  ;;  %v2446_v38 = vmul.f32 %v5928_v23, %v6910_v24 }
0x1150   :  { %5931 = vrcp.f32 %v2695_v22 }
0x1151   :  { %5933 = vrcp.f32 %v2698_v10 }
0x1152   :  { %v5930_v11 = vpop.eup %5929  ;;  %v2704_v29 = vpop.xlane.xlu1 %2703 }
0x1153   :  { %v2701_v28 = vpop.xlane.xlu0 %2700  ;;  %v2444_v35 = vmul.f32 %v5930_v11, %v6914_v54  ;;  %v4455_v11 = vld [vmem:[%s7322_s3 + $0x58] sm:$0xff] }
0x1154   :  { %5935 = vrcp.f32 %v2701_v28 }
0x1155   :  { %5066 = vmatprep.mubr.msk.f32.mxu0 %vm373_vm3, %v2444_v35  ;;  %5937 = vrcp.f32 %v2704_v29  ;;  %v4456_v29 = vld [vmem:[%s7322_s3 + $0x60] sm:$0xff]  ;;  %v4453_v35 = vld [vmem:[%s7322_s3 + $0x48] sm:$0xff] }
0x1156   :  { %v5778_v13 = vpop.permute.xlu1 %5777  ;;  %5067 = vmatmul.mubr.msk.f32.gmra.mrb[30].mxu0 %vm373_vm3, %v2446_v38  ;;  %v5507_v28 = vpack.c.bf16 %v4456_v29, %v4455_v11  ;;  %v4454_v38 = vld [vmem:[%s7322_s3 + $0x50] sm:$0xff] }
0x1157   :  { %v5773_v25 = vpop.permute.xlu0 %5772  ;;  %v5780_v21 = vunpack.i.h.bf16 %v5778_v13  ;;  %v5779_v33 = vunpack.i.l.bf16 %v5778_v13  ;;  %v5511_v13 = vpack.c.bf16 %v4454_v38, %v4453_v35 }
0x1158   :  { %v5775_v20 = vunpack.i.h.bf16 %v5773_v25  ;;  %v5774_v49 = vunpack.i.l.bf16 %v5773_v25 }
0x1159   :  { %v5503_v54 = vpack.c.bf16 %v5780_v21, %v5779_v33 }
0x115a   :  { %v5932_v51 = vpop.eup %5931  ;;  %v5499_v41 = vpack.c.bf16 %v5775_v20, %v5774_v49  ;;  %v5783_v45 = vpop.permute.xlu1 %5782 }
0x115b   :  { %v5785_v56 = vunpack.i.h.bf16 %v5783_v45  ;;  %v5784_v57 = vunpack.i.l.bf16 %v5783_v45  ;;  %v3400_v44 = vpop.permute.xlu0 %3399  ;;  %v2706_v24 = vmul.f32 %v5932_v51, %v6920_v59  ;;  %v5934_v60 = vpop.eup %5933 }
0x115c   :  { %5500 = vmatprep.subr.bf16.mxu0 %v5499_v41  ;;  %5163 = vmatprep.mubr.msk.f32.mxu1 %vm263_vm1, %v3400_v44  ;;  %v2708_v39 = vmul.f32 %v5934_v60, %v6918_v8 }
0x115d   :  { %v5539_v58 = vpack.c.bf16 %v5785_v56, %v5784_v57  ;;  %5502 = vmatpush3.bf16.msra.mxu0 %v5499_v41  ;;  %5091 = vmatprep.mubr.msk.f32.mxu0 %vm373_vm3, %v2706_v24 }
0x115e   :  { %v5788_v12 = vpop.permute.xlu1 %5787  ;;  %5504 = vmatprep.subr.bf16.mxu0 %v5503_v54  ;;  %v5936_v40 = vpop.eup %5935 }
0x115f   :  { %v5790_v34 = vunpack.i.h.bf16 %v5788_v12  ;;  %v5789_v26 = vunpack.i.l.bf16 %v5788_v12  ;;  %5541 = vmatprep.subr.msk.bf16.mxu1 %vm6272_vm2, %v5539_v58  ;;  %v5938_v2 = vpop.eup %5937  ;;  %v2710_v53 = vmul.f32 %v5936_v40, %v6928_v17  ;;  %v3404_v47 = vpop.permute.xlu0 %3403 }
0x1160   :  { %5544 = vmatpush3.bf16.xpose.msk.msra.mxu1 %vm6272_vm2, %v5539_v58  ;;  %v2712_v27 = vmul.f32 %v5938_v2, %v6926_v62 }
0x1161   :  { %v5545_v59 = vpack.c.bf16 %v5790_v34, %v5789_v26  ;;  %5506 = vmatpush3.bf16.msra.mxu0 %v5503_v54 }
0x1162   :  { %v3402_v32 = vpop.permute.xlu1 %3401  ;;  %5508 = vmatprep.subr.bf16.mxu0 %v5507_v28 }
0x1163   :  { %5547 = vmatprep.subr.msk.bf16.mxu1 %vm6272_vm2, %v5545_v59 }
0x1164   :  { %5092 = vmatmul.mubr.msk.f32.vlgmr.msra.gmra.mrb[32].mxu0 %vm373_vm3, %v2708_v39 }
0x1165   :  { %5094 = vmatprep.mubr.msk.f32.mxu0 %vm373_vm3, %v2710_v53  ;;  %5510 = vmatpush3.bf16.msra.mxu0 %v5507_v28 }
0x1166   :  { %v3406_v8 = vpop.permute.xlu1 %3405  ;;  %5512 = vmatprep.subr.bf16.mxu0 %v5511_v13 }
0x1168   :  { %5095 = vmatmul.mubr.msk.f32.gmra.mrb[34].mxu0 %vm373_vm3, %v2712_v27  ;;  %5550 = vmatpush3.bf16.xpose.msk.msra.mxu1 %vm6272_vm2, %v5545_v59 }
0x116f   :  { %5164 = vmatmul.mubr.msk.f32.vlgmr.msra.gmra.mrb[44].mxu1 %vm263_vm1, %v3402_v32 }
0x1170   :  { %5166 = vmatprep.mubr.msk.f32.mxu1 %vm263_vm1, %v3404_v47 }
0x1173   :  { %5167 = vmatmul.mubr.msk.f32.gmra.mrb[46].mxu1 %vm263_vm1, %v3406_v8 }
0x1190   :  { %v3147_v17 = vpop.xlane.xlu0 %3146 }
0x1191   :  { %v3157_v3 = vsub.f32 %v6952_v1, %v3147_v17 }
0x1193   :  { %v3161_v4 = vmul.f32 1.442695, %v3157_v3 }
0x1194   :  { %v3153_v18 = vpop.xlane.xlu0 %3152 }
0x1195   :  { %5939 = vpow2.f32 %v3161_v4  ;;  %v3159_v62 = vsub.f32 %v6958_v61, %v3153_v18 }
0x1197   :  { %v3165_v5 = vmul.f32 1.442695, %v3159_v62  ;;  %v3150_v52 = vpop.xlane.xlu1 %3149 }
0x1198   :  { %v3158_v6 = vsub.f32 %v6963_v43, %v3150_v52  ;;  %v3156_v9 = vpop.xlane.xlu0 %3155 }
0x1199   :  { %5941 = vpow2.f32 %v3165_v5  ;;  %v3160_v7 = vsub.f32 %v6966_v46, %v3156_v9 }
0x119a   :  { %v3163_v16 = vmul.f32 1.442695, %v3158_v6 }
0x119b   :  { %v3167_v0 = vmul.f32 1.442695, %v3160_v7 }
0x119c   :  { %5943 = vpow2.f32 %v3163_v16 }
0x119d   :  { %5945 = vpow2.f32 %v3167_v0 }
0x119f   :  { %v7006_v37 = vpop.eup %5939 }
0x11a0   :  { %v3169_v1 = vsel %vm373_vm3, %v7006_v37, 0.0 }
0x11a1   :  { %3170 = vadd.xlane.f32.xlu0 %v3169_v1 }
0x11a3   :  { %v7010_v10 = vpop.eup %5941 }
0x11a4   :  { %v3175_v61 = vsel %vm373_vm3, %v7010_v10, 0.0 }
0x11a5   :  { %3176 = vadd.xlane.f32.xlu0 %v3175_v61 }
0x11a6   :  { %v7014_v43 = vpop.eup %5943 }
0x11a7   :  { %v3172_v46 = vsel %vm373_vm3, %v7014_v43, 0.0  ;;  %v7018_v22 = vpop.eup %5945 }
0x11a8   :  { %3173 = vadd.xlane.f32.xlu1 %v3172_v46  ;;  %v3178_v23 = vsel %vm373_vm3, %v7018_v22, 0.0 }
0x11ac   :  { %3179 = vadd.xlane.f32.xlu1 %v3178_v23 }
0x11bb   :  { %5792 = vrot.lane.b32.xlu0 %v6780_v42, %s6050_s22 }
0x11bd   :  { %5797 = vrot.lane.b32.xlu1 %v6794_v30, %s6050_s22 }
0x1221   :  { %v5065_v25 = vpop.f32.mrb[28].mxu0 }
0x1222   :  { %v2525_v21 = vpop.f32.mrb[29].mxu0 }
0x1229   :  { %v5068_v33 = vpop.f32.mrb[30].mxu0 }
0x122a   :  { %v2535_v20 = vpop.f32.mrb[31].mxu0 }
0x122e   :  { %v3171_v49 = vpop.xlane.xlu0 %3170 }
0x122f   :  { %5947 = vrcp.f32 %v3171_v49 }
0x1232   :  { %v3177_v51 = vpop.xlane.xlu0 %3176 }
0x1235   :  { %v3174_v41 = vpop.xlane.xlu1 %3173 }
0x1236   :  { %v5793_v45 = vpop.permute.xlu0 %5792  ;;  %5949 = vrcp.f32 %v3174_v41 }
0x1237   :  { %v5795_v56 = vunpack.i.h.bf16 %v5793_v45  ;;  %v5794_v57 = vunpack.i.l.bf16 %v5793_v45  ;;  %v5093_v44 = vpop.f32.mrb[32].mxu0  ;;  %5951 = vrcp.f32 %v3177_v51 }
0x1238   :  { %v2807_v24 = vpop.f32.mrb[33].mxu0 }
0x1239   :  { %v5527_v54 = vpack.c.bf16 %v5795_v56, %v5794_v57  ;;  %v3180_v58 = vpop.xlane.xlu1 %3179  ;;  %5101 = vmatprep.mubr.msk.f32.mxu0 %vm263_vm1, %v2807_v24  ;;  %v5948_v39 = vpop.eup %5947 }
0x123a   :  { %5102 = vmatmul.mubr.msk.f32.vlgmr.msra.gmra.mrb[36].mxu0 %vm263_vm1, %v5093_v44  ;;  %5953 = vrcp.f32 %v3180_v58  ;;  %v3182_v17 = vmul.f32 %v5948_v39, %v7006_v37 }
0x123b   :  { %5514 = vmatpush3.bf16.msra.mxu0 %v5511_v13  ;;  %v5096_v12 = vpop.f32.mrb[34].mxu0 }
0x123c   :  { %5528 = vmatprep.subr.bf16.mxu0 %v5527_v54  ;;  %v2817_v60 = vpop.f32.mrb[35].mxu0 }
0x123d   :  { %v5798_v34 = vpop.permute.xlu1 %5797  ;;  %5104 = vmatprep.mubr.msk.f32.mxu0 %vm263_vm1, %v2817_v60 }
0x123e   :  { %v5800_v26 = vunpack.i.h.bf16 %v5798_v34  ;;  %v5799_v40 = vunpack.i.l.bf16 %v5798_v34  ;;  %5105 = vmatmul.mubr.msk.f32.gmra.mrb[38].mxu0 %vm263_vm1, %v5096_v12 }
0x123f   :  { %5111 = vmatprep.mubr.msk.f32.mxu0 %vm263_vm1, %v2525_v21 }
0x1240   :  { %v5531_v59 = vpack.c.bf16 %v5800_v26, %v5799_v40  ;;  %v5950_v47 = vpop.eup %5949 }
0x1241   :  { %v5952_v3 = vpop.eup %5951  ;;  %v3184_v6 = vmul.f32 %v5950_v47, %v7014_v43  ;;  %v4459_v47 = vld [vmem:[%s7322_s3 + $0x78] sm:$0xff] }
0x1242   :  { %5112 = vmatmul.mubr.msk.f32.vlgmr.msra.gmra.mrb[36].mxu0 %vm263_vm1, %v5065_v25  ;;  %v5165_v2 = vpop.f32.mrb[44].mxu1 }
0x1243   :  { %5530 = vmatpush3.bf16.msra.mxu0 %v5527_v54  ;;  %v3517_v53 = vmul.f32 0.25, %v5165_v2  ;;  %5114 = vmatprep.mubr.msk.f32.mxu0 %vm263_vm1, %v2535_v20  ;;  %v3497_v27 = vpop.f32.mrb[45].mxu1 }
0x1244   :  { %5532 = vmatprep.subr.bf16.mxu0 %v5531_v59  ;;  %v3516_v32 = vmul.f32 0.25, %v3497_v27  ;;  %v5954_v7 = vpop.eup %5953 }
0x1245   :  { %v3521_v8 = vadd.f32 %v6861_v19, %v3517_v53  ;;  %v3188_v61 = vmul.f32 %v5954_v7, %v7018_v22 }
0x1246   :  { %v3520_v4 = vadd.f32 %v6867_v36, %v3516_v32  ;;  %5115 = vmatmul.mubr.msk.f32.gmra.mrb[38].mxu0 %vm263_vm1, %v5068_v33  ;;  %v5168_v18 = vpop.f32.mrb[46].mxu1  ;;  %v3186_v36 = vmul.f32 %v5952_v3, %v7010_v10 }
0x1247   :  { %5534 = vmatpush3.bf16.msra.mxu0 %v5531_v59  ;;  %v3519_v62 = vmul.f32 0.25, %v5168_v18  ;;  %5139 = vmatprep.mubr.msk.f32.mxu0 %vm373_vm3, %v3182_v17  ;;  %v3507_v5 = vpop.f32.mrb[47].mxu1  ;;  %v3527_v52 = vsel %vm373_vm3, %v3521_v8, -inf }
0x1248   :  { %v3518_v9 = vmul.f32 0.25, %v3507_v5  ;;  %3528 = vmax.xlane.f32.xlu0 %v3527_v52  ;;  %v3524_v19 = vsel %vm373_vm3, %v3520_v4, -inf }
0x1249   :  { %v3523_v16 = vadd.f32 %v6875_v48, %v3519_v62  ;;  %3525 = vmax.xlane.f32.xlu1 %v3524_v19  ;;  %v4457_v48 = vld [vmem:[%s7322_s3 + $0x68] sm:$0xff] }
0x124a   :  { %v3522_v0 = vadd.f32 %v6882_v55, %v3518_v9  ;;  %5140 = vmatmul.mubr.msk.f32.vlgmr.msra.gmra.mrb[40].mxu0 %vm373_vm3, %v3184_v6  ;;  %v4458_v55 = vld [vmem:[%s7322_s3 + $0x70] sm:$0xff] }
0x124b   :  { %5142 = vmatprep.mubr.msk.f32.mxu0 %vm373_vm3, %v3186_v36  ;;  %v3533_v37 = vsel %vm373_vm3, %v3523_v16, -inf  ;;  %v5535_v10 = vpack.c.bf16 %v4458_v55, %v4457_v48  ;;  %v4526_v36 = vld [vmem:[%s7322_s3 + $0x88] ss:$0 sm:$0xff] }
0x124c   :  { %v3530_v1 = vsel %vm373_vm3, %v3522_v0, -inf }
0x124d   :  { %3531 = vmax.xlane.f32.xlu0 %v3530_v1  ;;  %3534 = vmax.xlane.f32.xlu1 %v3533_v37 }
0x124e   :  { %5143 = vmatmul.mubr.msk.f32.gmra.mrb[42].mxu0 %vm373_vm3, %v3188_v61  ;;  %5536 = vmatprep.subr.bf16.mxu0 %v5535_v10 }
0x124f   :  { %5538 = vmatpush3.bf16.msra.mxu0 %v5535_v10 }
0x12d5   :  { %v3529_v43 = vpop.xlane.xlu0 %3528 }
0x12d6   :  { %v3537_v46 = vsub.f32 %v3521_v8, %v3529_v43  ;;  %v3526_v23 = vpop.xlane.xlu1 %3525  ;;  %v4460_v8 = vld [vmem:[%s7322_s3 + $0x80] sm:$0xff] }
0x12d7   :  { %v3536_v11 = vsub.f32 %v3520_v4, %v3526_v23  ;;  %v5559_v3 = vpack.c.bf16 %v4460_v8, %v4459_v47  ;;  %v4545_v47 = vld [vmem:[%s7324_s5 + $0x88] sm:$0xff]  ;;  %v4546_v8 = vld [vmem:[%s7324_s5 + $0x90] sm:$0xff] }
0x12d8   :  { %v3542_v22 = vmul.f32 1.442695, %v3537_v46 }
0x12d9   :  { %v3540_v29 = vmul.f32 1.442695, %v3536_v11 }
0x12da   :  { %5955 = vpow2.f32 %v3542_v22  ;;  %v3535_v28 = vpop.xlane.xlu1 %3534  ;;  %v3532_v35 = vpop.xlane.xlu0 %3531 }
0x12db   :  { %5957 = vpow2.f32 %v3540_v29  ;;  %v3539_v38 = vsub.f32 %v3523_v16, %v3535_v28  ;;  %v3538_v13 = vsub.f32 %v3522_v0, %v3532_v35 }
0x12dd   :  { %v3546_v25 = vmul.f32 1.442695, %v3539_v38  ;;  %v3544_v21 = vmul.f32 1.442695, %v3538_v13 }
0x12df   :  { %5959 = vpow2.f32 %v3546_v25 }
0x12e0   :  { %5961 = vpow2.f32 %v3544_v21 }
0x12e4   :  { %v5956_v33 = vpop.eup %5955 }
0x12e5   :  { %v5958_v20 = vpop.eup %5957  ;;  %v3551_v49 = vsel %vm373_vm3, %v5956_v33, 0.0 }
0x12e6   :  { %3552 = vadd.xlane.f32.xlu1 %v3551_v49  ;;  %v3548_v51 = vsel %vm373_vm3, %v5958_v20, 0.0 }
0x12e7   :  { %3549 = vadd.xlane.f32.xlu0 %v3548_v51 }
0x12e9   :  { %v5960_v41 = vpop.eup %5959 }
0x12ea   :  { %v5962_v45 = vpop.eup %5961  ;;  %v3557_v56 = vsel %vm373_vm3, %v5960_v41, 0.0 }
0x12eb   :  { %3558 = vadd.xlane.f32.xlu1 %v3557_v56  ;;  %v3554_v57 = vsel %vm373_vm3, %v5962_v45, 0.0 }
0x12ec   :  { %3555 = vadd.xlane.f32.xlu0 %v3554_v57 }
0x12fc   :  { %5807 = vrot.lane.b32.xlu1 %v6794_v30, %s6052_s24 }
0x1302   :  { %5802 = vrot.lane.b32.xlu0 %v6780_v42, %s6052_s24  ;;  %s5997_s24 = scalar_lea.vmem %s4328_s28, 32 }
0x1303   :  { %p5998_p0 = scmp.ne.s32.totalorder %s4328_s28, %s5997_s24  ;;  %p6003_p2 = scmp.lt.s32.totalorder %s5997_s24, %s5997_s24 }
0x1305   :  { %p6004_p3 = por %p6003_p2, %p6002_p1 }
0x1307   :  { %p6005_p4 = pnand %p6004_p3, %p5998_p0 }
0x131d   :  { %v5141_v44 = vpop.f32.mrb[40].mxu0 }
0x131e   :  { %v3279_v24 = vpop.f32.mrb[41].mxu0 }
0x131f   :  { %5149 = vmatprep.mubr.msk.f32.mxu0 %vm263_vm1, %v3279_v24 }
0x1320   :  { %5150 = vmatmul.mubr.msk.f32.vlgmr.msra.gmra.mrb[36].mxu0 %vm263_vm1, %v5141_v44 }
0x1321   :  { %v5144_v54 = vpop.f32.mrb[42].mxu0 }
0x1322   :  { %v3289_v58 = vpop.f32.mrb[43].mxu0 }
0x1323   :  { %5152 = vmatprep.mubr.msk.f32.mxu0 %vm263_vm1, %v3289_v58 }
0x1324   :  { %5153 = vmatmul.mubr.msk.f32.gmra.mrb[38].mxu0 %vm263_vm1, %v5144_v54 }
0x1373   :  { %v3553_v12 = vpop.xlane.xlu1 %3552 }
0x1374   :  { %v3550_v60 = vpop.xlane.xlu0 %3549 }
0x1375   :  { %5963 = vrcp.f32 %v3550_v60  ;;  %v4531_v60 = vld [vmem:[%s7323_s4 + $0x48] sm:$0xff] }
0x1376   :  { %5965 = vrcp.f32 %v3553_v12 }
0x1378   :  { %v3559_v34 = vpop.xlane.xlu1 %3558 }
0x1379   :  { %v3556_v30 = vpop.xlane.xlu0 %3555 }
0x137a   :  { %5967 = vrcp.f32 %v3556_v30 }
0x137b   :  { %5969 = vrcp.f32 %v3559_v34  ;;  %v4532_v34 = vld [vmem:[%s7323_s4 + $0x50] sm:$0xff] }
0x137c   :  { %v5808_v42 = vpop.permute.xlu1 %5807  ;;  %v5563_v30 = vpack.c.bf16 %v4532_v34, %v4531_v60  ;;  %v4559_v60 = vld [vmem:[%s7324_s5 + $0xf8] sm:$0xff]  ;;  %v4560_v34 = vld [vmem:[%s7324_s5 + $0x100] sm:$0xff] }
0x137d   :  { %v5803_v26 = vpop.permute.xlu0 %5802  ;;  %v5810_v40 = vunpack.i.h.bf16 %v5808_v42  ;;  %v5809_v59 = vunpack.i.l.bf16 %v5808_v42  ;;  %v4533_v42 = vld [vmem:[%s7323_s4 + $0x58] sm:$0xff] }
0x137e   :  { %v5805_v39 = vunpack.i.h.bf16 %v5803_v26  ;;  %v5804_v2 = vunpack.i.l.bf16 %v5803_v26  ;;  %5564 = vmatprep.subr.bf16.mxu1 %v5563_v30  ;;  %v4534_v26 = vld [vmem:[%s7323_s4 + $0x60] sm:$0xff] }
0x137f   :  { %v5964_v53 = vpop.eup %5963  ;;  %v5555_v17 = vpack.c.bf16 %v5810_v40, %v5809_v59  ;;  %5566 = vmatpush3.bf16.msra.mxu1 %v5563_v30  ;;  %v5567_v40 = vpack.c.bf16 %v4534_v26, %v4533_v42  ;;  %v4535_v59 = vld [vmem:[%s7323_s4 + $0x68] sm:$0xff]  ;;  %v5607_v30 = vpack.c.bf16 %v4560_v34, %v4559_v60  ;;  %v4150_v60 = vld [vmem:[%s7325_s6 + $0x30] sm:$0xff]  ;;  %v4151_v34 = vld [vmem:[%s7325_s6 + $0x38] sm:$0xff] }
0x1380   :  { %v5551_v27 = vpack.c.bf16 %v5805_v39, %v5804_v2  ;;  %v3561_v32 = vmul.f32 %v5964_v53, %v5958_v20  ;;  %v5966_v4 = vpop.eup %5965  ;;  %v4536_v39 = vld [vmem:[%s7323_s4 + $0x70] sm:$0xff]  ;;  %v4537_v53 = vld [vmem:[%s7323_s4 + $0x78] sm:$0xff]  ;;  %v4540_v42 = vld [vmem:[%s7323_s4 + $0x88] ss:$0 sm:$0xff] }
0x1381   :  { %v3563_v62 = vmul.f32 %v5966_v4, %v5956_v33  ;;  %5568 = vmatprep.subr.bf16.mxu1 %v5567_v40  ;;  %v5571_v2 = vpack.c.bf16 %v4536_v39, %v4535_v59  ;;  %v4548_v4 = vld [vmem:[%s7324_s5 + $0xa0] sm:$0xff] }
0x1382   :  { %5552 = vmatprep.subr.bf16.mxu0 %v5551_v27  ;;  %5177 = vmatprep.mubr.msk.f32.mxu0 %vm373_vm3, %v3561_v32 }
0x1383   :  { %5554 = vmatpush3.bf16.msra.mxu0 %v5551_v27  ;;  %5570 = vmatpush3.bf16.msra.mxu1 %v5567_v40  ;;  %v4538_v27 = vld [vmem:[%s7323_s4 + $0x80] sm:$0xff] }
0x1384   :  { %5556 = vmatprep.subr.bf16.mxu0 %v5555_v17  ;;  %v5968_v18 = vpop.eup %5967  ;;  %5572 = vmatprep.subr.bf16.mxu1 %v5571_v2  ;;  %v5575_v32 = vpack.c.bf16 %v4538_v27, %v4537_v53 }
0x1385   :  { %v5970_v5 = vpop.eup %5969  ;;  %v3565_v52 = vmul.f32 %v5968_v18, %v5962_v45 }
0x1386   :  { %v3567_v6 = vmul.f32 %v5970_v5, %v5960_v41  ;;  %v4550_v5 = vld [vmem:[%s7324_s5 + $0xb0] sm:$0xff] }
0x1387   :  { %5558 = vmatpush3.bf16.msra.mxu0 %v5555_v17  ;;  %5574 = vmatpush3.bf16.msra.mxu1 %v5571_v2  ;;  %v4547_v17 = vld [vmem:[%s7324_s5 + $0x98] sm:$0xff] }
0x1388   :  { %5560 = vmatprep.subr.bf16.mxu0 %v5559_v3  ;;  %5576 = vmatprep.subr.bf16.mxu1 %v5575_v32  ;;  %v5583_v18 = vpack.c.bf16 %v4548_v4, %v4547_v17 }
0x138a   :  { %5178 = vmatmul.mubr.msk.f32.vlgmr.msra.gmra.mrb[44].mxu0 %vm373_vm3, %v3563_v62  ;;  %v4549_v62 = vld [vmem:[%s7324_s5 + $0xa8] sm:$0xff] }
0x138b   :  { %5180 = vmatprep.mubr.msk.f32.mxu0 %vm373_vm3, %v3565_v52  ;;  %5562 = vmatpush3.bf16.msra.mxu0 %v5559_v3  ;;  %v5579_v3 = vpack.c.bf16 %v4546_v8, %v4545_v47  ;;  %v5587_v52 = vpack.c.bf16 %v4550_v5, %v4549_v62 }
0x138c   :  { %5578 = vmatpush3.bf16.msra.mxu1 %v5575_v32 }
0x138d   :  { %5580 = vmatprep.subr.bf16.mxu0 %v5579_v3 }
0x138e   :  { %5181 = vmatmul.mubr.msk.f32.gmra.mrb[46].mxu0 %vm373_vm3, %v3567_v6 }
0x145d   :  { %v5179_v9 = vpop.f32.mrb[44].mxu0 }
0x145e   :  { %v3658_v19 = vpop.f32.mrb[45].mxu0 }
0x145f   :  { %5187 = vmatprep.mubr.msk.f32.mxu0 %vm263_vm1, %v3658_v19 }
0x1460   :  { %5188 = vmatmul.mubr.msk.f32.vlgmr.msra.gmra.mrb[36].mxu0 %vm263_vm1, %v5179_v9 }
0x1461   :  { %v5182_v7 = vpop.f32.mrb[46].mxu0  ;;  %5582 = vmatpush3.bf16.msra.mxu0 %v5579_v3 }
0x1462   :  { %v3668_v16 = vpop.f32.mrb[47].mxu0  ;;  %5584 = vmatprep.subr.bf16.mxu0 %v5583_v18 }
0x1463   :  { %5190 = vmatprep.mubr.msk.f32.mxu0 %vm263_vm1, %v3668_v16 }
0x1464   :  { %5191 = vmatmul.mubr.msk.f32.gmra.mrb[38].mxu0 %vm263_vm1, %v5182_v7 }
0x1465   :  { %5586 = vmatpush3.bf16.msra.mxu0 %v5583_v18 }
0x1466   :  { %5588 = vmatprep.subr.bf16.mxu0 %v5587_v52 }
0x1469   :  { %5590 = vmatpush3.bf16.msra.mxu0 %v5587_v52 }
0x1533   :  { %v5189_v0 = vpop.f32.mrb[36].mxu0 }
0x1534   :  { %v3784_v37 = vadd.f32 %v5189_v0, %v4526_v36  ;;  %v3755_v1 = vpop.f32.mrb[37].mxu0 }
0x1535   :  { %v3783_v61 = vadd.f32 %v4526_v36, %v3755_v1 }
0x1536   :  { %v3788_v48 = vadd.f32 %v3784_v37, %v6748_v14 }
0x1537   :  { %v3787_v55 = vadd.f32 %v3783_v61, %v6742_v63  ;;  %v5192_v10 = vpop.f32.mrb[38].mxu0 }
0x1538   :  { %v3786_v43 = vadd.f32 %v5192_v10, %v4526_v36  ;;  %v3765_v46 = vpop.f32.mrb[39].mxu0  ;;  %v3796_v23 = vsel %vm43_vm0, %v3788_v48, 0.0 }
0x1539   :  { %v3785_v11 = vadd.f32 %v4526_v36, %v3765_v46  ;;  %3797 = vadd.xlane.f32.xlu0 %v3796_v23  ;;  %v3793_v22 = vsel %vm43_vm0, %v3787_v55, 0.0 }
0x153a   :  { %v3790_v29 = vadd.f32 %v3786_v43, %v6759_v15  ;;  %3794 = vadd.xlane.f32.xlu1 %v3793_v22  ;;  %v4529_v43 = vld [vmem:[%s7322_s3 + $0x89] ss:$0 sm:$0xff]  ;;  %v4530_v22 = vld [vmem:[%s7322_s3 + $0x8a] ss:$0 sm:$0xff] }
0x153b   :  { %v3789_v28 = vadd.f32 %v3785_v11, %v6754_v31 }
0x153c   :  { %v3802_v35 = vsel %vm43_vm0, %v3790_v29, 0.0 }
0x153d   :  { %v3799_v14 = vsel %vm43_vm0, %v3789_v28, 0.0 }
0x153e   :  { %3803 = vadd.xlane.f32.xlu1 %v3802_v35  ;;  %3800 = vadd.xlane.f32.xlu0 %v3799_v14 }
0x15c6   :  { %v3798_v63 = vpop.xlane.xlu0 %3797 }
0x15c7   :  { %v3806_v38 = vmul.f32 0.015625, %v3798_v63  ;;  %v3795_v13 = vpop.xlane.xlu1 %3794 }
0x15c8   :  { %v3805_v25 = vmul.f32 0.015625, %v3795_v13 }
0x15c9   :  { %v7105_v21 = vsub.f32 %v3788_v48, %v3806_v38 }
0x15ca   :  { %v7107_v33 = vsub.f32 %v3787_v55, %v3805_v25 }
0x15cb   :  { %v3804_v20 = vpop.xlane.xlu1 %3803  ;;  %v3801_v49 = vpop.xlane.xlu0 %3800  ;;  %v3814_v15 = vmul.f32 %v7105_v21, %v7105_v21 }
0x15cc   :  { %v3808_v31 = vmul.f32 0.015625, %v3804_v20  ;;  %v3807_v51 = vmul.f32 0.015625, %v3801_v49  ;;  %v3813_v41 = vmul.f32 %v7107_v33, %v7107_v33 }
0x15cd   :  { %v3820_v45 = vsel %vm43_vm0, %v3814_v15, 0.0  ;;  %v4551_v15 = vld [vmem:[%s7324_s5 + $0xb8] sm:$0xff] }
0x15ce   :  { %v7114_v56 = vsub.f32 %v3790_v29, %v3808_v31  ;;  %v7116_v57 = vsub.f32 %v3789_v28, %v3807_v51  ;;  %3821 = vadd.xlane.f32.xlu1 %v3820_v45  ;;  %v3817_v44 = vsel %vm43_vm0, %v3813_v41, 0.0  ;;  %v4552_v31 = vld [vmem:[%s7324_s5 + $0xc0] sm:$0xff]  ;;  %v4553_v41 = vld [vmem:[%s7324_s5 + $0xc8] sm:$0xff]  ;;  %v4554_v45 = vld [vmem:[%s7324_s5 + $0xd0] sm:$0xff] }
0x15cf   :  { %3818 = vadd.xlane.f32.xlu0 %v3817_v44  ;;  %v5591_v51 = vpack.c.bf16 %v4552_v31, %v4551_v15  ;;  %v4556_v44 = vld [vmem:[%s7324_s5 + $0xe0] sm:$0xff] }
0x15d0   :  { %v3816_v24 = vmul.f32 %v7114_v56, %v7114_v56  ;;  %v3815_v54 = vmul.f32 %v7116_v57, %v7116_v57 }
0x15d1   :  { %5592 = vmatprep.subr.bf16.mxu0 %v5591_v51 }
0x15d2   :  { %v3826_v58 = vsel %vm43_vm0, %v3816_v24, 0.0  ;;  %v3823_v12 = vsel %vm43_vm0, %v3815_v54, 0.0  ;;  %5594 = vmatpush3.bf16.msra.mxu0 %v5591_v51  ;;  %v4557_v54 = vld [vmem:[%s7324_s5 + $0xe8] sm:$0xff] }
0x15d3   :  { %3827 = vadd.xlane.f32.xlu1 %v3826_v58  ;;  %3824 = vadd.xlane.f32.xlu0 %v3823_v12  ;;  %v4558_v58 = vld [vmem:[%s7324_s5 + $0xf0] sm:$0xff] }
0x15d4   :  { %v5603_v12 = vpack.c.bf16 %v4558_v58, %v4557_v54  ;;  %v4148_v54 = vld [vmem:[%s7325_s6 + $0x20] sm:$0xff]  ;;  %v4149_v58 = vld [vmem:[%s7325_s6 + $0x28] sm:$0xff] }
0x165b   :  { %v3822_v6 = vpop.xlane.xlu1 %3821 }
0x165c   :  { %v3830_v9 = vmul.f32 0.015625, %v3822_v6  ;;  %v3819_v19 = vpop.xlane.xlu0 %3818 }
0x165d   :  { %v3829_v7 = vmul.f32 0.015625, %v3819_v19 }
0x165e   :  { %v3834_v16 = vadd.f32 1e-05, %v3830_v9 }
0x165f   :  { %v3833_v36 = vadd.f32 1e-05, %v3829_v7 }
0x1660   :  { %5971 = vrsqrt.f32 %v3834_v16  ;;  %v3828_v0 = vpop.xlane.xlu1 %3827  ;;  %v3825_v37 = vpop.xlane.xlu0 %3824 }
0x1661   :  { %5973 = vrsqrt.f32 %v3833_v36  ;;  %v3832_v1 = vmul.f32 0.015625, %v3828_v0  ;;  %v3831_v61 = vmul.f32 0.015625, %v3825_v37 }
0x1663   :  { %v3836_v48 = vadd.f32 1e-05, %v3832_v1  ;;  %v3835_v55 = vadd.f32 1e-05, %v3831_v61 }
0x1665   :  { %5975 = vrsqrt.f32 %v3836_v48 }
0x1666   :  { %5977 = vrsqrt.f32 %v3835_v55  ;;  %v4562_v55 = vld [vmem:[%s7324_s5 + $0x108] ss:$0 sm:$0xff] }
0x166a   :  { %v5972_v10 = vpop.eup %5971 }
0x166b   :  { %v5974_v46 = vpop.eup %5973  ;;  %v3842_v23 = vmul.f32 %v5972_v10, %v7105_v21 }
0x166c   :  { %v3841_v11 = vmul.f32 %v5974_v46, %v7107_v33 }
0x166d   :  { %v3850_v29 = vmul.f32 %v4529_v43, %v3842_v23 }
0x166e   :  { %v3849_v28 = vmul.f32 %v4529_v43, %v3841_v11 }
0x166f   :  { %v5976_v35 = vpop.eup %5975  ;;  %v3858_v13 = vadd.f32 %v4530_v22, %v3850_v29 }
0x1670   :  { %v5978_v14 = vpop.eup %5977  ;;  %v7175_v63 = vadd.f32 %v4530_v22, %v3849_v28  ;;  %v3844_v38 = vmul.f32 %v5976_v35, %v7114_v56  ;;  %v5595_v56 = vpack.c.bf16 %v4554_v45, %v4553_v41  ;;  %v4145_v41 = vld [vmem:[%s7325_s6 + $0x8] sm:$0xff] }
0x1671   :  { %v3843_v25 = vmul.f32 %v5978_v14, %v7116_v57  ;;  %v4555_v57 = vld [vmem:[%s7324_s5 + $0xd8] sm:$0xff] }
0x1672   :  { %5209 = vmatprep.mubr.msk.f32.mxu1 %vm43_vm0, %v7175_v63  ;;  %v3852_v21 = vmul.f32 %v4529_v43, %v3844_v38  ;;  %5596 = vmatprep.subr.bf16.mxu0 %v5595_v56  ;;  %v5599_v24 = vpack.c.bf16 %v4556_v44, %v4555_v57  ;;  %v4146_v57 = vld [vmem:[%s7325_s6 + $0x10] sm:$0xff]  ;;  %v4147_v44 = vld [vmem:[%s7325_s6 + $0x18] sm:$0xff] }
0x1673   :  { %5210 = vmatmul.mubr.msk.f32.vlgmr.msra.gmra.mrb[48].mxu1 %vm43_vm0, %v3858_v13  ;;  %v3851_v33 = vmul.f32 %v4529_v43, %v3843_v25  ;;  %5598 = vmatpush3.bf16.msra.mxu0 %v5595_v56  ;;  %v6053_v56 = vmov 0.0|0.0  }
0x1674   :  { %v3860_v20 = vadd.f32 %v4530_v22, %v3852_v21  ;;  %5600 = vmatprep.subr.bf16.mxu0 %v5599_v24  ;;  %5611 = vmatprep.subr.bf16.mxu1 %v6053_v56 }
0x1675   :  { %v7182_v49 = vadd.f32 %v4530_v22, %v3851_v33 }
0x1677   :  { %5212 = vmatprep.mubr.msk.f32.mxu1 %vm43_vm0, %v7182_v49  ;;  %5602 = vmatpush3.bf16.msra.mxu0 %v5599_v24  ;;  %v5615_v24 = vpack.c.bf16 %v4147_v44, %v4146_v57 }
0x1678   :  { %5213 = vmatmul.mubr.msk.f32.gmra.mrb[50].mxu1 %vm43_vm0, %v3860_v20  ;;  %5604 = vmatprep.subr.bf16.mxu0 %v5603_v12 }
0x1679   :  { %5269 = vmatprep.mubr.msk.f32.mxu1 %vm6054_vm4, %v6045_v50 }
0x167b   :  { %5606 = vmatpush3.bf16.msra.mxu0 %v5603_v12  ;;  %v5618_v12 = vpack.c.bf16 %v4149_v58, %v4148_v54 }
0x167c   :  { %5608 = vmatprep.subr.bf16.mxu0 %v5607_v30 }
0x167f   :  { %5610 = vmatpush3.bf16.msra.mxu0 %v5607_v30  ;;  %v5621_v30 = vpack.c.bf16 %v4151_v34, %v4150_v60 }
0x1746   :  { %v5211_v26 = vpop.f32.mrb[48].mxu1 }
0x1747   :  { %v3959_v40 = vadd.f32 %v5211_v26, %v4540_v42  ;;  %v3953_v59 = vpop.f32.mrb[49].mxu1 }
0x1748   :  { %v3954_v39 = vadd.f32 %v4540_v42, %v3953_v59 }
0x1749   :  { %v3977_v2 = vmul.f32 0.70710677, %v3959_v40  ;;  %v3973_v6 = vmul.f32 0.5, %v3959_v40 }
0x174a   :  { %v3976_v53 = vmul.f32 0.70710677, %v3954_v39  ;;  %v3972_v5 = vmul.f32 0.5, %v3954_v39 }
0x174b   :  { %5979 = verf.f32 %v3977_v2  ;;  %v5214_v27 = vpop.f32.mrb[50].mxu1 }
0x174c   :  { %5981 = verf.f32 %v3976_v53  ;;  %v3969_v32 = vadd.f32 %v5214_v27, %v4540_v42  ;;  %v3963_v47 = vpop.f32.mrb[51].mxu1 }
0x174d   :  { %v3964_v8 = vadd.f32 %v4540_v42, %v3963_v47  ;;  %v4565_v47 = vld [vmem:[%s7324_s5 + $0x109] ss:$0 sm:$0xff] }
0x174e   :  { %v3979_v17 = vmul.f32 0.70710677, %v3969_v32  ;;  %v3975_v1 = vmul.f32 0.5, %v3969_v32 }
0x174f   :  { %v3978_v3 = vmul.f32 0.70710677, %v3964_v8  ;;  %v3974_v0 = vmul.f32 0.5, %v3964_v8 }
0x1750   :  { %5983 = verf.f32 %v3979_v17 }
0x1751   :  { %5985 = verf.f32 %v3978_v3 }
0x1755   :  { %v5980_v4 = vpop.eup %5979 }
0x1756   :  { %v5982_v18 = vpop.eup %5981  ;;  %v3985_v62 = vadd.f32 1.0, %v5980_v4  ;;  %v4566_v4 = vld [vmem:[%s7324_s5 + $0x10a] ss:$0 sm:$0xff] }
0x1757   :  { %v3984_v52 = vadd.f32 1.0, %v5982_v18  ;;  %v4231_v18 = vld [vmem:[%s7326_s7] sm:$0xff] }
0x1758   :  { %v3989_v7 = vmul.f32 %v3985_v62, %v3973_v6  ;;  %v4232_v62 = vld [vmem:[%s7326_s7 + $0x8] sm:$0xff] }
0x1759   :  { %v3988_v9 = vmul.f32 %v3984_v52, %v3972_v5 }
0x175a   :  { %v5984_v19 = vpop.eup %5983 }
0x175b   :  { %v5986_v16 = vpop.eup %5985  ;;  %v3987_v36 = vadd.f32 1.0, %v5984_v19  ;;  %5247 = vmatprep.mubr.f32.mxu0 %v3988_v9  ;;  %v5624_v9 = vpack.c.bf16 %v4232_v62, %v4231_v18 }
0x175c   :  { %v3986_v37 = vadd.f32 1.0, %v5986_v16  ;;  %5248 = vmatmul.mubr.f32.vlgmr.msra.gmra.mrb[48].mxu0 %v3989_v7  ;;  %v4233_v7 = vld [vmem:[%s7326_s7 + $0x10] sm:$0xff]  ;;  %v4234_v16 = vld [vmem:[%s7326_s7 + $0x18] sm:$0xff] }
0x175d   :  { %v3991_v48 = vmul.f32 %v3987_v36, %v3975_v1  ;;  %v5627_v36 = vpack.c.bf16 %v4234_v16, %v4233_v7  ;;  %v4237_v1 = vld [vmem:[%s7326_s7 + $0x30] sm:$0xff] }
0x175e   :  { %v3990_v61 = vmul.f32 %v3986_v37, %v3974_v0  ;;  %v4235_v0 = vld [vmem:[%s7326_s7 + $0x20] sm:$0xff]  ;;  %v4236_v37 = vld [vmem:[%s7326_s7 + $0x28] sm:$0xff] }
0x1760   :  { %5250 = vmatprep.mubr.f32.mxu0 %v3990_v61  ;;  %v4238_v61 = vld [vmem:[%s7326_s7 + $0x38] sm:$0xff] }
0x1761   :  { %5251 = vmatmul.mubr.f32.gmra.mrb[50].mxu0 %v3991_v48  ;;  %v5633_v48 = vpack.c.bf16 %v4238_v61, %v4237_v1 }
0x182f   :  { %v5249_v10 = vpop.f32.mrb[48].mxu0 }
0x1830   :  { %v4080_v43 = vpop.f32.mrb[49].mxu0 }
0x1831   :  { %v4081_v46 = vadd.f32 %v4562_v55, %v4080_v43 }
0x1833   :  { %v4097_v23 = vadd.f32 %v4081_v46, %v7175_v63 }
0x1834   :  { %v5252_v11 = vpop.f32.mrb[50].mxu0 }
0x1835   :  { %v4089_v22 = vpop.f32.mrb[51].mxu0  ;;  %v4101_v29 = vsel %vm43_vm0, %v4097_v23, 0.0 }
0x1836   :  { %v4090_v28 = vadd.f32 %v4562_v55, %v4089_v22  ;;  %4102 = vadd.xlane.f32.xlu1 %v4101_v29  ;;  %v4567_v55 = vld [vmem:[%s7325_s6 + $0x40] ss:$0 sm:$0xff] }
0x1838   :  { %v4098_v35 = vadd.f32 %v4090_v28, %v7182_v49  ;;  %v4144_v49 = vld [vmem:[%s7325_s6] sm:$0xff] }
0x1839   :  { %v5612_v45 = vpack.c.bf16 %v4145_v41, %v4144_v49 }
0x183a   :  { %v4104_v14 = vsel %vm43_vm0, %v4098_v35, 0.0 }
0x183b   :  { %4105 = vadd.xlane.f32.xlu0 %v4104_v14  ;;  %5613 = vmatpush3.bf16.msra.mxu1 %v5612_v45 }
0x183c   :  { %5614 = vmatprep.subr.bf16.mxu1 %v6053_v56 }
0x183f   :  { %5616 = vmatpush3.bf16.msra.mxu1 %v5615_v24 }
0x1840   :  { %5617 = vmatprep.subr.bf16.mxu1 %v6053_v56 }
0x1843   :  { %5619 = vmatpush3.bf16.msra.mxu1 %v5618_v12 }
0x1844   :  { %5620 = vmatprep.subr.bf16.mxu1 %v6053_v56 }
0x1847   :  { %5622 = vmatpush3.bf16.msra.mxu1 %v5621_v30 }
0x1848   :  { %5623 = vmatprep.subr.bf16.mxu1 %v6053_v56 }
0x18c3   :  { %v4103_v38 = vpop.xlane.xlu1 %4102 }
0x18c4   :  { %v4107_v13 = vmul.f32 0.015625, %v4103_v38 }
0x18c6   :  { %v4109_v25 = vsub.f32 %v4097_v23, %v4107_v13 }
0x18c8   :  { %v4106_v21 = vpop.xlane.xlu0 %4105  ;;  %v4111_v33 = vmul.f32 %v4109_v25, %v4109_v25 }
0x18c9   :  { %v4108_v20 = vmul.f32 0.015625, %v4106_v21 }
0x18ca   :  { %v4113_v15 = vsel %vm43_vm0, %v4111_v33, 0.0 }
0x18cb   :  { %v4110_v63 = vsub.f32 %v4098_v35, %v4108_v20  ;;  %4114 = vadd.xlane.f32.xlu1 %v4113_v15 }
0x18cd   :  { %v4112_v31 = vmul.f32 %v4110_v63, %v4110_v63 }
0x18cf   :  { %v4116_v51 = vsel %vm43_vm0, %v4112_v31, 0.0 }
0x18d0   :  { %4117 = vadd.xlane.f32.xlu0 %v4116_v51 }
0x1958   :  { %v4115_v42 = vpop.xlane.xlu1 %4114 }
0x1959   :  { %v4119_v26 = vmul.f32 0.015625, %v4115_v42 }
0x195b   :  { %v4121_v40 = vadd.f32 1e-05, %v4119_v26 }
0x195d   :  { %v4118_v59 = vpop.xlane.xlu0 %4117  ;;  %5987 = vrsqrt.f32 %v4121_v40 }
0x195e   :  { %v4120_v39 = vmul.f32 0.015625, %v4118_v59 }
0x1960   :  { %v4122_v2 = vadd.f32 1e-05, %v4120_v39 }
0x1962   :  { %5989 = vrsqrt.f32 %v4122_v2 }
0x1967   :  { %v5988_v53 = vpop.eup %5987 }
0x1968   :  { %v4125_v27 = vmul.f32 %v5988_v53, %v4109_v25 }
0x196a   :  { %v4131_v17 = vmul.f32 %v4565_v47, %v4125_v27 }
0x196c   :  { %v5990_v32 = vpop.eup %5989  ;;  %v4137_v52 = vadd.f32 %v4566_v4, %v4131_v17 }
0x196d   :  { %v4126_v8 = vmul.f32 %v5990_v32, %v4110_v63 }
0x196f   :  { %v4132_v3 = vmul.f32 %v4565_v47, %v4126_v8 }
0x1971   :  { %v4138_v5 = vadd.f32 %v4566_v4, %v4132_v3 }
0x1973   :  { %v4140_v6 = vrot.slane %v4138_v5, 7 }
0x1975   :  { %v4143_v19 = vsel %vm4142_vm5, %v4137_v52, %v4140_v6 }
0x1976   :  { %5270 = vmatmul.mubr.msk.f32.vlgmr.msra.gmra.mrb[52].mxu1 %vm43_vm0, %v4143_v19 }
0x1977   :  { %5625 = vmatpush3.bf16.msra.mxu1 %v5624_v9  ;;  %5288 = vmatprep.mubr.msk.f32.mxu1 %vm6054_vm4, %v6045_v50  ;;  %v5630_v50 = vpack.c.bf16 %v4236_v37, %v4235_v0 }
0x1978   :  { %5626 = vmatprep.subr.bf16.mxu1 %v6053_v56 }
0x197b   :  { %5628 = vmatpush3.bf16.msra.mxu1 %v5627_v36 }
0x197c   :  { %5629 = vmatprep.subr.bf16.mxu1 %v6053_v56 }
0x197f   :  { %5631 = vmatpush3.bf16.msra.mxu1 %v5630_v50 }
0x1980   :  { %5632 = vmatprep.subr.bf16.mxu1 %v6053_v56 }
0x1983   :  { %5634 = vmatpush3.bf16.msra.mxu1 %v5633_v48 }
0x1a49   :  { %v4226_v10 = vpop.f32.mrb[52].mxu1 }
0x1a4a   :  { %v4227_v43 = vadd.f32 %v4567_v55, %v4226_v10  ;;  %v5271_v46 = vpop.f32.mrb[53].mxu1 }
0x1a4c   :  { %5991 = vtanh.f32 %v4227_v43 }
0x1a56   :  { %v5992_v23 = vpop.eup %5991 }
0x1a57   :  { %5289 = vmatmul.mubr.msk.f32.vlgmr.msra.gmra.mrb[54].mxu1 %vm43_vm0, %v5992_v23  ;;  %4318 = vst.msk [vmem:[#allocation2] sm:$0x3] %vm4317_vm6, %v5992_v23 }
0x1a58   :  { %6008 = shalt.err (!%p6005_p4)
}
0x1a59   :  { %s6009_s30 = scalar_lea.hbm %s7327_s8, 32 }
0x1a5a   :  { %p6010_p5 = scmp.ne.s32.totalorder %s7327_s8, %s6009_s30  ;;  %p6013_p6 = scmp.lt.u32.totalorder %s6009_s30, %s7327_s8 }
0x1a5c   :  { %p6015_p7 = pnand %p6013_p6, %p6010_p5 }
0x1a5e   :  { %6018 = shalt.err (!%p6015_p7)
}
0x1a5f   :  { %4330 = dma.vmem_to_hbm [thread:$0]  %s4328_s28, 32, %s7327_s8, [#allocation3]   ;;  %v4569_v11 = vld [vmem:[%s7326_s7 + $0x40] ss:$0 sm:$0xff]  ;;  %vm4319_vm7 = vcmask 17408  }
0x1a60   :  { %s6056_s5 = smov [#allocation4]  }
0x1a61   :  { %s4337_s4 = sshll.u32 %s6056_s5, 4  ;;  %s4338_s4 = int_to_ptr.vmem [resolvable:$true] %s4337_s4 }
0x1a62   :  { %s6019_s0 = scalar_lea.vmem %s4338_s4, 32  ;;  %p6024_p9 = scmp.lt.s32.totalorder %s4338_s4, %s4338_s4 }
0x1a63   :  { %p6020_p8 = scmp.ne.s32.totalorder %s4338_s4, %s6019_s0  ;;  %p6025_p10 = scmp.lt.s32.totalorder %s6019_s0, %s6019_s0 }
0x1a65   :  { %p6026_p11 = por %p6025_p10, %p6024_p9 }
0x1a67   :  { %p6027_p12 = pnand %p6026_p11, %p6020_p8 }
0x1b2a   :  { %v4313_v22 = vpop.f32.mrb[54].mxu1 }
0x1b2b   :  { %v4314_v29 = vadd.f32 %v4569_v11, %v4313_v22  ;;  %v5290_v28 = vpop.f32.mrb[55].mxu1 }
0x1b2d   :  { %4320 = vst.msk [vmem:[#allocation4] sm:$0x3] %vm4319_vm7, %v4314_v29 }
0x1b2e   :  { %6030 = shalt.err (!%p6027_p12)
}
0x1b2f   :  { %s6031_s12 = scalar_lea.hbm %s7328_s9, 32 }
0x1b30   :  { %p6032_p13 = scmp.ne.s32.totalorder %s7328_s9, %s6031_s12  ;;  %p6035_p0 = scmp.lt.u32.totalorder %s6031_s12, %s7328_s9 }
0x1b32   :  { %p6037_p1 = pnand %p6035_p0, %p6032_p13 }
0x1b34   :  { %6040 = shalt.err (!%p6037_p1)
}
0x1b35   :  { %4340 = dma.vmem_to_hbm [thread:$0]  %s4338_s4, 32, %s7328_s9, [#allocation5]  }
0x1b36   :  { %6041 = dma.done.wait [#allocation3], 32  }
0x1b37   :  { %6042 = vsyncadd [#allocation3], 4294967264 }
0x1b38   :  { %6043 = dma.done.wait [#allocation5], 32  }
0x1b39   :  { %6044 = vsyncadd [#allocation5], 4294967264 }
0x1b3a   :  { %4347 = vsyncpa [#allocation3], 1 }
0x1b3b   :  { %4348 = vsyncpa [#allocation5], 1 }

</bundles_post_ra>
